<compile_context>
chip_gen: v7x
topology: tpu7x:2x2x1
jax: 0.10.0
libtpu: 0.0.40
codegen_flags: <defaults>
</compile_context>

<pallas_src>
import jax
import jax.numpy as jnp
from jax.experimental import pallas as pl
from jax.experimental.pallas import tpu as pltpu


def _external_attention_kernel(x_ref, wt_ref, bt_ref, w0b_ref, b0b_ref,
                               sum_ref, bcast_ref, w1b_ref, b1b_ref,
                               wp_ref, bp_ref, o_ref):
    Bt, N, C = x_ref.shape
    HS = w0b_ref.shape[1]                               # num_heads * S

    # (Bt, N, C) -> (Bt*N, C): leading-dim merge, layout-free.
    x = x_ref[...].reshape(Bt * N, C)                   # bf16

    # trans_dims: bf16 operands, f32 accumulate.
    y = jnp.dot(x, wt_ref[...], preferred_element_type=jnp.float32) + bt_ref[...]

    # linear_0 for all heads at once via block-diagonal weight:
    # (Bt*N, C) @ (C, H*S) -> (Bt*N, H*S); column block h*S:(h+1)*S is head h.
    a = jnp.dot(y.astype(jnp.bfloat16), w0b_ref[...],
                preferred_element_type=jnp.float32) + b0b_ref[...]

    # softmax over the token axis (dim=-2 of (B, H, N, S)) == axis=1 of (Bt, N, H*S).
    a3 = a.reshape(Bt, N, HS)
    a3 = a3 - jnp.max(a3, axis=1, keepdims=True)
    e = jnp.exp(a3)
    attn = e * pl.reciprocal(jnp.sum(e, axis=1, keepdims=True), approx=True)
    attn = attn.reshape(Bt * N, HS)

    # Per-(row, head) sum over S via two skinny ones-mask matmuls on the MXU:
    # (Bt*N, HS) @ (HS, H) -> per-head sums, then (Bt*N, H) @ (H, HS) broadcasts them
    # back across each head's S lanes.  No lane-splitting reshape / relayout.
    per_head = jnp.dot(attn.astype(jnp.bfloat16), sum_ref[...],
                       preferred_element_type=jnp.float32)            # (Bt*N, H)
    seg = jnp.dot(per_head.astype(jnp.bfloat16), bcast_ref[...],
                  preferred_element_type=jnp.float32)                 # (Bt*N, HS)
    attn = attn * pl.reciprocal(1e-9 + seg, approx=True)
    # attn_drop: p = 0.0 -> identity

    # linear_1 for all heads at once: (Bt*N, H*S) @ (H*S, C).  Head h's block writes
    # columns h*d:(h+1)*d, so the result is already the concatenated-heads layout.
    z = jnp.dot(attn.astype(jnp.bfloat16), w1b_ref[...],
                preferred_element_type=jnp.float32) + b1b_ref[...]

    # proj
    out = jnp.dot(z.astype(jnp.bfloat16), wp_ref[...],
                  preferred_element_type=jnp.float32) + bp_ref[...]
    # proj_drop: p = 0.0 -> identity

    o_ref[...] = out.reshape(Bt, N, C).astype(o_ref.dtype)


def _pick_block_b(B, max_block=8):
    """Largest batch block that divides B while keeping the grid length >= 2
    (so both v7x TensorCores get work); falls back to the largest divisor."""
    cands = [bt for bt in range(1, min(B, max_block) + 1) if B % bt == 0]
    multi = [bt for bt in cands if B // bt >= 2]
    return max(multi) if multi else max(cands)


def external_attention(x, params, *, num_heads, S, block_b=None):
    """x: (B, N, C).  params: Linear weights pre-transposed to (in, out), biases (1, out)."""
    B, N, C = x.shape
    assert C % num_heads == 0
    d = C // num_heads
    H = num_heads

    wt, bt = params["wt"], params["bt"]        # (C, C), (1, C)
    w0, b0 = params["w0"], params["b0"]        # (d, S), (1, S)
    w1, b1 = params["w1"], params["b1"]        # (S, d), (1, d)
    wp, bp = params["wp"], params["bp"]        # (C, C), (1, C)

    # Fuse the per-head linear_0/linear_1 into single matmuls: block-diagonal weights.
    # (In a real model these would be precomputed once, not rebuilt per forward.)
    w0b = jax.scipy.linalg.block_diag(*([w0] * H))                     # (C, H*S)
    w1b = jax.scipy.linalg.block_diag(*([w1] * H))                     # (H*S, C)
    b0b = jnp.tile(b0.reshape(1, S), (1, H)).astype(jnp.float32)       # (1, H*S)
    b1b = jnp.tile(b1.reshape(1, d), (1, H)).astype(jnp.float32)       # (1, C)
    # Skinny ones masks -> per-head segmented row-sum over S + broadcast back.
    ones_col = jnp.ones((S, 1), jnp.float32)
    ones_row = jnp.ones((1, S), jnp.float32)
    sum_mask = jax.scipy.linalg.block_diag(*([ones_col] * H))          # (H*S, H)
    bcast_mask = jax.scipy.linalg.block_diag(*([ones_row] * H))        # (H, H*S)

    # bf16 MXU operands (f32 accumulation inside the kernel); biases stay f32.
    bf16 = jnp.bfloat16
    x_bf = x.astype(bf16)
    wt_bf, w0b_bf, w1b_bf, wp_bf, sum_bf, bcast_bf = (
        a.astype(bf16) for a in (wt, w0b, w1b, wp, sum_mask, bcast_mask))
    bt_f = bt.reshape(1, C).astype(jnp.float32)
    bp_f = bp.reshape(1, C).astype(jnp.float32)

    Bt = block_b if block_b is not None else _pick_block_b(B)
    assert B % Bt == 0
    grid = (B // Bt,)

    full = lambda a: pl.BlockSpec(a.shape, lambda b: (0,) * a.ndim)

    return pl.pallas_call(
        _external_attention_kernel,
        out_shape=jax.ShapeDtypeStruct((B, N, C), x.dtype),
        grid_spec=pltpu.PrefetchScalarGridSpec(
            num_scalar_prefetch=0,
            grid=grid,
            in_specs=[
                pl.BlockSpec((Bt, N, C), lambda b: (b, 0, 0)),   # x block
                full(wt_bf), full(bt_f),
                full(w0b_bf), full(b0b),
                full(sum_bf), full(bcast_bf),
                full(w1b_bf), full(b1b),
                full(wp_bf), full(bp_f),
            ],
            out_specs=pl.BlockSpec((Bt, N, C), lambda b: (b, 0, 0)),
        ),
        compiler_params=pltpu.CompilerParams(
            dimension_semantics=("parallel",)),
    )(x_bf, wt_bf, bt_f, w0b_bf, b0b, sum_bf, bcast_bf, w1b_bf, b1b, wp_bf, bp_f)


def _init_linear(key, fan_in, fan_out):
    """torch.nn.Linear-style init; weight already transposed to (in, out), bias (1, out)."""
    kw, kb = jax.random.split(key)
    bound = 1.0 / jnp.sqrt(fan_in)
    w = jax.random.uniform(kw, (fan_in, fan_out), jnp.float32, -bound, bound)
    b = jax.random.uniform(kb, (1, fan_out), jnp.float32, -bound, bound)
    return w, b


def _reference(x, params, num_heads, S):
    """Pure-JAX f32 reference mirroring the PyTorch forward exactly."""
    B, N, C = x.shape
    d = C // num_heads
    y = x @ params["wt"] + params["bt"]                       # (B, N, C)
    y = y.reshape(B, N, num_heads, d).transpose(0, 2, 1, 3)   # (B, H, N, d)
    a = y @ params["w0"] + params["b0"]                       # (B, H, N, S)
    a = jax.nn.softmax(a, axis=-2)
    a = a / (1e-9 + a.sum(axis=-1, keepdims=True))
    z = a @ params["w1"] + params["b1"]                       # (B, H, N, d)
    z = z.transpose(0, 2, 1, 3).reshape(B, N, C)
    return z @ params["wp"] + params["bp"]


if __name__ == "__main__":
    # Small ViT-ish shapes; num_heads/S are the module defaults. C=128 -> lane-dense IO.
    B, N, C = 4, 64, 128
    num_heads, S = 8, 64
    d = C // num_heads

    root = jax.random.PRNGKey(0)
    kx, kt, k0, k1, kp = jax.random.split(root, 5)

    x = jax.random.normal(kx, (B, N, C), jnp.float32)

    wt, bt = _init_linear(kt, C, C)     # trans_dims
    w0, b0 = _init_linear(k0, d, S)     # linear_0
    w1, b1 = _init_linear(k1, S, d)     # linear_1
    wp, bp = _init_linear(kp, C, C)     # proj
    params = dict(wt=wt, bt=bt, w0=w0, b0=b0, w1=w1, b1=b1, wp=wp, bp=bp)

    out = external_attention(x, params, num_heads=num_heads, S=S)
    out = jax.block_until_ready(out)

    ref = _reference(x, params, num_heads, S)
    assert out.shape == (B, N, C)
    err = float(jnp.max(jnp.abs(out - ref)))
    # bf16 MXU operands with f32 accumulation + approx reciprocal -> ~1e-3 abs error.
    assert err < 2e-2, f"mismatch vs reference: max abs err {err}"

    print("KERNEL_OK")
</pallas_src>

<mosaic_0001>
module attributes {stable_mosaic.version = 11 : i64} {
  func.func @_external_attention_kernel(%arg0: i32, %arg1: memref<2x64x128xbf16, #tpu.memory_space<vmem>>, %arg2: memref<128x128xbf16, #tpu.memory_space<vmem>>, %arg3: memref<1x128xf32, #tpu.memory_space<vmem>>, %arg4: memref<128x512xbf16, #tpu.memory_space<vmem>>, %arg5: memref<1x512xf32, #tpu.memory_space<vmem>>, %arg6: memref<512x8xbf16, #tpu.memory_space<vmem>>, %arg7: memref<8x512xbf16, #tpu.memory_space<vmem>>, %arg8: memref<512x128xbf16, #tpu.memory_space<vmem>>, %arg9: memref<1x128xf32, #tpu.memory_space<vmem>>, %arg10: memref<128x128xbf16, #tpu.memory_space<vmem>>, %arg11: memref<1x128xf32, #tpu.memory_space<vmem>>, %arg12: memref<2x64x128xf32, #tpu.memory_space<vmem>>) attributes {dimension_semantics = [#tpu.dimension_semantics<parallel>], iteration_bounds = array<i64: 2>, scalar_prefetch = 0 : i64, scratch_operands = 0 : i64, tpu.core_type = #tpu.core_type<tc>, window_params = [{transform_indices = @transform_0, window_bounds = array<i64: 2, 64, 128>}, {pipeline_mode = #tpu.pipeline_mode<synchronous>, transform_indices = @transform_1, window_bounds = array<i64: 128, 128>}, {pipeline_mode = #tpu.pipeline_mode<synchronous>, transform_indices = @transform_2, window_bounds = array<i64: 1, 128>}, {pipeline_mode = #tpu.pipeline_mode<synchronous>, transform_indices = @transform_3, window_bounds = array<i64: 128, 512>}, {pipeline_mode = #tpu.pipeline_mode<synchronous>, transform_indices = @transform_4, window_bounds = array<i64: 1, 512>}, {pipeline_mode = #tpu.pipeline_mode<synchronous>, transform_indices = @transform_5, window_bounds = array<i64: 512, 8>}, {pipeline_mode = #tpu.pipeline_mode<synchronous>, transform_indices = @transform_6, window_bounds = array<i64: 8, 512>}, {pipeline_mode = #tpu.pipeline_mode<synchronous>, transform_indices = @transform_7, window_bounds = array<i64: 512, 128>}, {pipeline_mode = #tpu.pipeline_mode<synchronous>, transform_indices = @transform_8, window_bounds = array<i64: 1, 128>}, {pipeline_mode = #tpu.pipeline_mode<synchronous>, transform_indices = @transform_9, window_bounds = array<i64: 128, 128>}, {pipeline_mode = #tpu.pipeline_mode<synchronous>, transform_indices = @transform_10, window_bounds = array<i64: 1, 128>}, {transform_indices = @transform_11, window_bounds = array<i64: 2, 64, 128>}]} {
    %c0 = arith.constant 0 : index
    %c0_0 = arith.constant 0 : index
    %c0_1 = arith.constant 0 : index
    %0 = vector.load %arg1[%c0, %c0_0, %c0_1] : memref<2x64x128xbf16, #tpu.memory_space<vmem>>, vector<2x64x128xbf16>
    %1 = vector.shape_cast %0 : vector<2x64x128xbf16> to vector<128x128xbf16>
    %c0_2 = arith.constant 0 : index
    %c0_3 = arith.constant 0 : index
    %2 = vector.load %arg2[%c0_2, %c0_3] : memref<128x128xbf16, #tpu.memory_space<vmem>>, vector<128x128xbf16>
    %cst = arith.constant dense<0.000000e+00> : vector<128x128xf32>
    %3 = tpu.matmul %1, %2, %cst {dimension_numbers = #tpu.dot_dimension_numbers<[1], [0], [0], [1], [0, 0, 1, 1], [], []>} : vector<128x128xbf16>, vector<128x128xbf16>, vector<128x128xf32> -> vector<128x128xf32>
    %c0_4 = arith.constant 0 : index
    %c0_5 = arith.constant 0 : index
    %4 = vector.load %arg3[%c0_4, %c0_5] : memref<1x128xf32, #tpu.memory_space<vmem>>, vector<1x128xf32>
    %5 = vector.broadcast %4 : vector<1x128xf32> to vector<128x128xf32>
    %6 = arith.addf %3, %5 : vector<128x128xf32>
    %7 = arith.truncf %6 : vector<128x128xf32> to vector<128x128xbf16>
    %c0_6 = arith.constant 0 : index
    %c0_7 = arith.constant 0 : index
    %8 = vector.load %arg4[%c0_6, %c0_7] : memref<128x512xbf16, #tpu.memory_space<vmem>>, vector<128x512xbf16>
    %cst_8 = arith.constant dense<0.000000e+00> : vector<128x512xf32>
    %9 = tpu.matmul %7, %8, %cst_8 {dimension_numbers = #tpu.dot_dimension_numbers<[1], [0], [0], [1], [0, 0, 1, 1], [], []>} : vector<128x128xbf16>, vector<128x512xbf16>, vector<128x512xf32> -> vector<128x512xf32>
    %c0_9 = arith.constant 0 : index
    %c0_10 = arith.constant 0 : index
    %10 = vector.load %arg5[%c0_9, %c0_10] : memref<1x512xf32, #tpu.memory_space<vmem>>, vector<1x512xf32>
    %11 = vector.broadcast %10 : vector<1x512xf32> to vector<128x512xf32>
    %12 = arith.addf %9, %11 : vector<128x512xf32>
    %13 = vector.shape_cast %12 : vector<128x512xf32> to vector<2x64x512xf32>
    %cst_11 = arith.constant dense<0xFF800000> : vector<2x512xf32>
    %14 = vector.multi_reduction <maximumf>, %13, %cst_11 [1] : vector<2x64x512xf32> to vector<2x512xf32>
    %15 = vector.shape_cast %14 : vector<2x512xf32> to vector<2x1x512xf32>
    %16 = vector.broadcast %15 : vector<2x1x512xf32> to vector<2x64x512xf32>
    %17 = arith.subf %13, %16 : vector<2x64x512xf32>
    %18 = math.exp %17 : vector<2x64x512xf32>
    %cst_12 = arith.constant dense<0.000000e+00> : vector<2x512xf32>
    %19 = vector.multi_reduction <add>, %18, %cst_12 [1] : vector<2x64x512xf32> to vector<2x512xf32>
    %20 = vector.shape_cast %19 : vector<2x512xf32> to vector<2x1x512xf32>
    %21 = tpu.reciprocal %20 {approx = true} : vector<2x1x512xf32> -> vector<2x1x512xf32>
    %22 = vector.broadcast %21 : vector<2x1x512xf32> to vector<2x64x512xf32>
    %23 = arith.mulf %18, %22 : vector<2x64x512xf32>
    %24 = vector.shape_cast %23 : vector<2x64x512xf32> to vector<128x512xf32>
    %25 = arith.truncf %24 : vector<128x512xf32> to vector<128x512xbf16>
    %c0_13 = arith.constant 0 : index
    %c0_14 = arith.constant 0 : index
    %26 = vector.load %arg6[%c0_13, %c0_14] : memref<512x8xbf16, #tpu.memory_space<vmem>>, vector<512x8xbf16>
    %cst_15 = arith.constant dense<0.000000e+00> : vector<128x8xf32>
    %27 = tpu.matmul %25, %26, %cst_15 {dimension_numbers = #tpu.dot_dimension_numbers<[1], [0], [0], [1], [0, 0, 1, 1], [], []>} : vector<128x512xbf16>, vector<512x8xbf16>, vector<128x8xf32> -> vector<128x8xf32>
    %28 = arith.truncf %27 : vector<128x8xf32> to vector<128x8xbf16>
    %c0_16 = arith.constant 0 : index
    %c0_17 = arith.constant 0 : index
    %29 = vector.load %arg7[%c0_16, %c0_17] : memref<8x512xbf16, #tpu.memory_space<vmem>>, vector<8x512xbf16>
    %cst_18 = arith.constant dense<0.000000e+00> : vector<128x512xf32>
    %30 = tpu.matmul %28, %29, %cst_18 {dimension_numbers = #tpu.dot_dimension_numbers<[1], [0], [0], [1], [0, 0, 1, 1], [], []>} : vector<128x8xbf16>, vector<8x512xbf16>, vector<128x512xf32> -> vector<128x512xf32>
    %cst_19 = arith.constant 9.99999971E-10 : f32
    %31 = vector.broadcast %cst_19 : f32 to vector<128x512xf32>
    %32 = arith.addf %31, %30 : vector<128x512xf32>
    %33 = tpu.reciprocal %32 {approx = true} : vector<128x512xf32> -> vector<128x512xf32>
    %34 = arith.mulf %24, %33 : vector<128x512xf32>
    %35 = arith.truncf %34 : vector<128x512xf32> to vector<128x512xbf16>
    %c0_20 = arith.constant 0 : index
    %c0_21 = arith.constant 0 : index
    %36 = vector.load %arg8[%c0_20, %c0_21] : memref<512x128xbf16, #tpu.memory_space<vmem>>, vector<512x128xbf16>
    %cst_22 = arith.constant dense<0.000000e+00> : vector<128x128xf32>
    %37 = tpu.matmul %35, %36, %cst_22 {dimension_numbers = #tpu.dot_dimension_numbers<[1], [0], [0], [1], [0, 0, 1, 1], [], []>} : vector<128x512xbf16>, vector<512x128xbf16>, vector<128x128xf32> -> vector<128x128xf32>
    %c0_23 = arith.constant 0 : index
    %c0_24 = arith.constant 0 : index
    %38 = vector.load %arg9[%c0_23, %c0_24] : memref<1x128xf32, #tpu.memory_space<vmem>>, vector<1x128xf32>
    %39 = vector.broadcast %38 : vector<1x128xf32> to vector<128x128xf32>
    %40 = arith.addf %37, %39 : vector<128x128xf32>
    %41 = arith.truncf %40 : vector<128x128xf32> to vector<128x128xbf16>
    %c0_25 = arith.constant 0 : index
    %c0_26 = arith.constant 0 : index
    %42 = vector.load %arg10[%c0_25, %c0_26] : memref<128x128xbf16, #tpu.memory_space<vmem>>, vector<128x128xbf16>
    %cst_27 = arith.constant dense<0.000000e+00> : vector<128x128xf32>
    %43 = tpu.matmul %41, %42, %cst_27 {dimension_numbers = #tpu.dot_dimension_numbers<[1], [0], [0], [1], [0, 0, 1, 1], [], []>} : vector<128x128xbf16>, vector<128x128xbf16>, vector<128x128xf32> -> vector<128x128xf32>
    %c0_28 = arith.constant 0 : index
    %c0_29 = arith.constant 0 : index
    %44 = vector.load %arg11[%c0_28, %c0_29] : memref<1x128xf32, #tpu.memory_space<vmem>>, vector<1x128xf32>
    %45 = vector.broadcast %44 : vector<1x128xf32> to vector<128x128xf32>
    %46 = arith.addf %43, %45 : vector<128x128xf32>
    %47 = vector.shape_cast %46 : vector<128x128xf32> to vector<2x64x128xf32>
    %c0_30 = arith.constant 0 : index
    %c0_31 = arith.constant 0 : index
    %c0_32 = arith.constant 0 : index
    %48 = vector.load %arg12[%c0_30, %c0_31, %c0_32] : memref<2x64x128xf32, #tpu.memory_space<vmem>>, vector<2x64x128xf32>
    tpu.vector_store %arg12[%c0_30, %c0_31, %c0_32], %47 {strides = array<i32>} : memref<2x64x128xf32, #tpu.memory_space<vmem>>, vector<2x64x128xf32>,
    return
  }
  func.func @transform_0(%arg0: i32) -> (i32, i32, i32) {
    %c0_i32 = arith.constant 0 : i32
    %c0_i32_0 = arith.constant 0 : i32
    %c0_i32_1 = arith.constant 0 : i32
    return %arg0, %c0_i32, %c0_i32_0 : i32, i32, i32
  }
  func.func @transform_1(%arg0: i32) -> (i32, i32) {
    %c0_i32 = arith.constant 0 : i32
    %c0_i32_0 = arith.constant 0 : i32
    %c0_i32_1 = arith.constant 0 : i32
    return %c0_i32, %c0_i32_0 : i32, i32
  }
  func.func @transform_2(%arg0: i32) -> (i32, i32) {
    %c0_i32 = arith.constant 0 : i32
    %c0_i32_0 = arith.constant 0 : i32
    %c0_i32_1 = arith.constant 0 : i32
    return %c0_i32, %c0_i32_0 : i32, i32
  }
  func.func @transform_3(%arg0: i32) -> (i32, i32) {
    %c0_i32 = arith.constant 0 : i32
    %c0_i32_0 = arith.constant 0 : i32
    %c0_i32_1 = arith.constant 0 : i32
    return %c0_i32, %c0_i32_0 : i32, i32
  }
  func.func @transform_4(%arg0: i32) -> (i32, i32) {
    %c0_i32 = arith.constant 0 : i32
    %c0_i32_0 = arith.constant 0 : i32
    %c0_i32_1 = arith.constant 0 : i32
    return %c0_i32, %c0_i32_0 : i32, i32
  }
  func.func @transform_5(%arg0: i32) -> (i32, i32) {
    %c0_i32 = arith.constant 0 : i32
    %c0_i32_0 = arith.constant 0 : i32
    %c0_i32_1 = arith.constant 0 : i32
    return %c0_i32, %c0_i32_0 : i32, i32
  }
  func.func @transform_6(%arg0: i32) -> (i32, i32) {
    %c0_i32 = arith.constant 0 : i32
    %c0_i32_0 = arith.constant 0 : i32
    %c0_i32_1 = arith.constant 0 : i32
    return %c0_i32, %c0_i32_0 : i32, i32
  }
  func.func @transform_7(%arg0: i32) -> (i32, i32) {
    %c0_i32 = arith.constant 0 : i32
    %c0_i32_0 = arith.constant 0 : i32
    %c0_i32_1 = arith.constant 0 : i32
    return %c0_i32, %c0_i32_0 : i32, i32
  }
  func.func @transform_8(%arg0: i32) -> (i32, i32) {
    %c0_i32 = arith.constant 0 : i32
    %c0_i32_0 = arith.constant 0 : i32
    %c0_i32_1 = arith.constant 0 : i32
    return %c0_i32, %c0_i32_0 : i32, i32
  }
  func.func @transform_9(%arg0: i32) -> (i32, i32) {
    %c0_i32 = arith.constant 0 : i32
    %c0_i32_0 = arith.constant 0 : i32
    %c0_i32_1 = arith.constant 0 : i32
    return %c0_i32, %c0_i32_0 : i32, i32
  }
  func.func @transform_10(%arg0: i32) -> (i32, i32) {
    %c0_i32 = arith.constant 0 : i32
    %c0_i32_0 = arith.constant 0 : i32
    %c0_i32_1 = arith.constant 0 : i32
    return %c0_i32, %c0_i32_0 : i32, i32
  }
  func.func @transform_11(%arg0: i32) -> (i32, i32, i32) {
    %c0_i32 = arith.constant 0 : i32
    %c0_i32_0 = arith.constant 0 : i32
    %c0_i32_1 = arith.constant 0 : i32
    return %arg0, %c0_i32, %c0_i32_0 : i32, i32, i32
  }
}

</mosaic_0001>

<bundles_post_ra>
// kernel: tpu_custom_call.1
= control target key start
LH: loop header
LB: loop body
LE: loop exit
PB: predicated region body
PF: predicated region fallthrough
CT: control target
= control target key end

     0   :  { %s6248_s0 = inlined_call_operand.hbm [shape: bf16[4,64,128], index: 0, kind: input, shape index: {}]   ;;  %s6249_s1 = inlined_call_operand.hbm [shape: bf16[128,128], index: 1, kind: input, shape index: {}]   ;;  %s6250_s2 = inlined_call_operand.vmem [shape: f32[1,128], index: 2, kind: input, shape index: {}]   ;;  %s6251_s3 = inlined_call_operand.vmem [shape: bf16[128,512], index: 3, kind: input, shape index: {}]   ;;  %s6252_s4 = inlined_call_operand.hbm [shape: f32[1,512], index: 4, kind: input, shape index: {}]   ;;  %s6253_s5 = inlined_call_operand.vmem [shape: bf16[512,8], index: 5, kind: input, shape index: {}]   ;;  %s6254_s6 = inlined_call_operand.vmem [shape: bf16[8,512], index: 6, kind: input, shape index: {}]   ;;  %s6255_s7 = inlined_call_operand.hbm [shape: bf16[512,128], index: 7, kind: input, shape index: {}]   ;;  %s6256_s8 = inlined_call_operand.vmem [shape: f32[1,128], index: 8, kind: input, shape index: {}]   ;;  %s6257_s9 = inlined_call_operand.hbm [shape: bf16[128,128], index: 9, kind: input, shape index: {}]   ;;  %s6258_s10 = inlined_call_operand.vmem [shape: f32[1,128], index: 10, kind: input, shape index: {}]   ;;  %s6259_s11 = inlined_call_operand.hbm [shape: f32[4,64,128], index: 11, kind: output, shape index: {}]  }
   0x1   :  { %6327 = sst [smem:[#allocation46_spill]] %s6256_s8 }
   0x2   :  { %6328 = sst [smem:[#allocation47_spill]] %s6258_s10 }
   0x3   :  { %6329 = sst [smem:[#allocation48_spill]] %s6259_s11 }
   0x4   :  { %16 = vsyncpa [#allocation3], 0 }
   0x5   :  { %18 = vsyncpa [#allocation3 + $0x1], 0 }
   0x6   :  { %19 = vsyncpa [#allocation6], 0 }
   0x7   :  { %20 = vsyncpa [#allocation9], 0 }
   0x8   :  { %21 = vsyncpa [#allocation4], 0 }
   0x9   :  { %23 = vsyncpa [#allocation4 + $0x1], 0  ;;  %s4636_s17 = smov 0   ;;  %s4638_s18 = smov 0  }
   0xa   :  { %s4640_s19 = smov 0   ;;  %s4642_s20 = smov 0  }
   0xb LB: > { %6330 = sst [smem:[#allocation16_spill]] %s4551_s17  ;;  %s4657_s21 = sadd.s32 4294967295, %s4563_s20   ;;  %s4563_s20 = sphi %s4642_s20, %s6480_s20   ;;  %s4559_s19 = sphi %s4640_s19, %s6479_s19   ;;  %s4555_s18 = sphi %s4638_s18, %s6478_s18   ;;  %s4551_s17 = sphi %s4636_s17, %s6477_s17  }
   0xc   : > { %s3318_s22 = sadd.s32 4294967294, %s4563_s20   ;;  %p49_p0 = scmp.ne.s32.totalorder %s4555_s18, %s4551_s17 }
   0xd   : > { %p6261_p1 = scmp.eq.s32.totalorder %s4657_s21, 0  ;;  %p289_p3 = scmp.eq.s32.totalorder %s3318_s22, 1 }
   0xe   : > { %p3319_p5 = scmp.ge.s32.totalorder %s4563_s20, 1  ;;  %p296_p7 = scmp.lt.s32.totalorder %s4563_s20, 3 }
   0xf   : > { %p4666_p4 = por %p6261_p1, %p49_p0  ;;  %p4671_p6 = por %p289_p3, %p49_p0 }
  0x10   : > { %p4676_p8 = pnand %p3319_p5, %p296_p7  ;;  %s4565_s26 = smov [#allocation5]  }
  0x11   : > { %s6331_s23 = scalar_select %p4666_p4, 1, 0 }
  0x12   : > { %s6332_s24 = scalar_select %p4671_p6, 1, 0 }
  0x13   : > { %s6334_s25 = scalar_select %p4676_p8, 1, 0 }
  0x14   : > { %6333 = sst [smem:[#allocation17_spill]] %s6332_s24  ;;  %s308_s27 = sshll.u32 %s4565_s26, 4  ;;  %s4680_s27 = int_to_ptr.vmem [resolvable:$true] %s308_s27 }
  0x15   : > { %p3863_p9 = pneg %p4676_p8  ;;  %s4566_s29 = smov [#allocation8]  }
  0x16   : > { %s344_s30 = sshll.u32 %s4566_s29, 4  ;;  %s4567_s12 = smov [#allocation7]   ;;  %s4691_s30 = int_to_ptr.vmem [resolvable:$true] %s344_s30 }
  0x17   : > { %p4687_p11 = pnand %p3863_p9, %p6261_p1  ;;  %s4693_s13 = sshll.u32 %s4567_s12, 4  ;;  %s329_s13 = int_to_ptr.vmem [resolvable:$true] %s4693_s13 }
  0x18   : > { %s4347_s16 = scalar_lea.hbm %s6249_s1, 1024 }
  0x19   : > { %p4348_p12 = scmp.ne.s32.totalorder %s6249_s1, %s4347_s16  ;;  %p4703_p13 = pneg %p4687_p11 }
  0x1a   : > { %p4354_p5 = scmp.lt.u32.totalorder %s4347_s16, %s6249_s1 }
  0x1b   : > { %p4350_p0 = pnand %p4703_p13, %p4348_p12 }
  0x1d   : > { %p4351_p3 = pneg %p4350_p0 }
  0x1f   : > { %p4356_p7 = pnand %p4354_p5, %p4351_p3 }
  0x21   : > { %4359 = shalt.err (!%p4356_p7)
}
  0x22   : > { %s4360_s14 = scalar_lea.vmem %s4680_s27, 1024  ;;  %p4368_p2 = scmp.lt.s32.totalorder %s4680_s27, %s4680_s27 }
  0x23   : > { %p4361_p9 = scmp.ne.s32.totalorder %s4680_s27, %s4360_s14  ;;  %p4369_p6 = scmp.lt.s32.totalorder %s4360_s14, %s4360_s14 }
  0x25   : > { %p4363_p10 = pnand %p4361_p9, %p4703_p13  ;;  %p4370_p12 = por %p4369_p6, %p4368_p2 }
  0x27   : > { %p4364_p1 = pneg %p4363_p10 }
  0x29   : > { %p4371_p0 = pnand %p4370_p12, %p4364_p1 }
  0x2b   : > { %4374 = shalt.err (!%p4371_p0)
}
  0x2c   : > { %s4568_s15 = smov 64   ;;  %s4569_s16 = smov 4  }
  0x2d   : > { %3866 = dma.hbm_to_vmem [thread:$0]  (!%p4687_p11), %s6249_s1, 1024, %s4680_s27, [#allocation6], %s4568_s15, %s4568_s15, %s4569_s16  }
  0x2e   : > { %s4375_s14 = scalar_lea.hbm %s6255_s7, 4096 }
  0x2f   : > { %p4376_p1 = scmp.ne.s32.totalorder %s6255_s7, %s4375_s14  ;;  %p4382_p10 = scmp.lt.u32.totalorder %s4375_s14, %s6255_s7 }
  0x31   : > { %p4378_p2 = pnand %p4376_p1, %p4703_p13 }
  0x33   : > { %p4379_p6 = pneg %p4378_p2 }
  0x35   : > { %p4384_p3 = pnand %p4382_p10, %p4379_p6 }
  0x37   : > { %4387 = shalt.err (!%p4384_p3)
}
  0x38   : > { %s4388_s27 = scalar_lea.vmem %s4691_s30, 4096  ;;  %p4396_p12 = scmp.lt.s32.totalorder %s4691_s30, %s4691_s30 }
  0x39   : > { %p4389_p5 = scmp.ne.s32.totalorder %s4691_s30, %s4388_s27  ;;  %p4397_p0 = scmp.lt.s32.totalorder %s4388_s27, %s4388_s27 }
  0x3b   : > { %p4391_p7 = pnand %p4389_p5, %p4703_p13  ;;  %p4398_p1 = por %p4397_p0, %p4396_p12 }
  0x3d   : > { %p4392_p9 = pneg %p4391_p7 }
  0x3f   : > { %p4399_p2 = pnand %p4398_p1, %p4392_p9 }
  0x41   : > { %4402 = shalt.err (!%p4399_p2)
}
  0x42   : > { %3872 = dma.hbm_to_vmem [thread:$0]  (!%p4687_p11), %s6255_s7, 4096, %s4691_s30, [#allocation9], %s4568_s15, %s4568_s15, %s4569_s16  }
  0x43   : > { %s4403_s22 = scalar_lea.hbm %s6252_s4, 64 }
  0x44   : > { %p4404_p6 = scmp.ne.s32.totalorder %s6252_s4, %s4403_s22  ;;  %p4410_p5 = scmp.lt.u32.totalorder %s4403_s22, %s6252_s4 }
  0x46   : > { %p4406_p10 = pnand %p4404_p6, %p4703_p13 }
  0x48   : > { %p4407_p3 = pneg %p4406_p10 }
  0x4a   : > { %p4412_p7 = pnand %p4410_p5, %p4407_p3 }
  0x4c   : > { %4415 = shalt.err (!%p4412_p7)
}
  0x4d   : > { %s4416_s27 = scalar_lea.vmem %s329_s13, 64  ;;  %p4424_p1 = scmp.lt.s32.totalorder %s329_s13, %s329_s13 }
  0x4e   : > { %p4417_p9 = scmp.ne.s32.totalorder %s329_s13, %s4416_s27  ;;  %p4425_p2 = scmp.lt.s32.totalorder %s4416_s27, %s4416_s27 }
  0x50   : > { %p4419_p12 = pnand %p4417_p9, %p4703_p13  ;;  %p4426_p4 = por %p4425_p2, %p4424_p1 }
  0x52   : > { %p4420_p0 = pneg %p4419_p12 }
  0x54   : > { %p4427_p8 = pnand %p4426_p4, %p4420_p0 }
  0x56   : > { %4430 = shalt.err (!%p4427_p8)
}
  0x57   : > { %3869 = dma.hbm_to_vmem [thread:$0]  (!%p4687_p11), %s6252_s4, 64, %s329_s13, [#allocation6]  }
  0x58   : > { %s4570_s10 = smov [#allocation10]   ;;  %s4431_s26 = scalar_lea.hbm %s6257_s9, 1024 }
  0x59   : > { %s360_s11 = sshll.u32 %s4570_s10, 4  ;;  %p4432_p6 = scmp.ne.s32.totalorder %s6257_s9, %s4431_s26  ;;  %s361_s11 = int_to_ptr.vmem [resolvable:$true] %s360_s11 }
  0x5a   : > { %p4438_p10 = scmp.lt.u32.totalorder %s4431_s26, %s6257_s9 }
  0x5b   : > { %p4434_p4 = pnand %p4432_p6, %p4703_p13 }
  0x5d   : > { %p4435_p8 = pneg %p4434_p4 }
  0x5f   : > { %p4440_p3 = pnand %p4438_p10, %p4435_p8 }
  0x61   : > { %4443 = shalt.err (!%p4440_p3)
}
  0x62   : > { %s4444_s13 = scalar_lea.vmem %s361_s11, 1024  ;;  %p4452_p12 = scmp.lt.s32.totalorder %s361_s11, %s361_s11 }
  0x63   : > { %p4445_p5 = scmp.ne.s32.totalorder %s361_s11, %s4444_s13  ;;  %p4453_p0 = scmp.lt.s32.totalorder %s4444_s13, %s4444_s13 }
  0x65   : > { %p4447_p7 = pnand %p4445_p5, %p4703_p13  ;;  %p4454_p1 = por %p4453_p0, %p4452_p12 }
  0x67   : > { %p4448_p9 = pneg %p4447_p7 }
  0x69   : > { %p4455_p2 = pnand %p4454_p1, %p4448_p9 }
  0x6b   : > { %4458 = shalt.err (!%p4455_p2)
}
  0x6c   : > { %3875 = dma.hbm_to_vmem [thread:$0]  (!%p4687_p11), %s6257_s9, 1024, %s361_s11, [#allocation9], %s4568_s15, %s4568_s15, %s4569_s16  }
  0x6d   : > { %s4794_s24 = sadd.s32 1, %s4563_s20   ;;  %s36_s28 = sadd.s32 1, %s4559_s19 }
  0x6e   : > { %s33_s10 = ssub.s32 %s4563_s20, %s4794_s24  ;;  %p43_p13 = scmp.ne.s32.totalorder %s4559_s19, %s4555_s18 }
  0x6f   : > { %p34_p6 = scmp.eq.s32.totalorder %s33_s10, 0  ;;  %p44_p4 = scmp.eq.s32.totalorder %s4563_s20, 0 }
  0x70   : > { %p6337_p8 = scmp.eq.s32.totalorder %s4657_s21, 1  ;;  %p3888_p3 = scmp.lt.s32.totalorder %s4563_s20, 2 }
  0x71   : > { %s4810_s22 = scalar_select %p34_p6, %s4559_s19, %s36_s28  }
  0x72   : > { %p4804_p10 = por %p6337_p8, %p43_p13  ;;  %p45_p5 = por %p44_p4, %p43_p13 }
  0x73   : > { %s377_s26 = sand.u32 1, %s4559_s19   ;;  %s3488_s11 = sshll.u32 %s4563_s20, 10 }
  0x74   : > { %s3325_s29 = sshll.u32 %s377_s26, 6  ;;  %s4817_s27 = scalar_lea.hbm %s6248_s0, %s3488_s11 }
  0x75   : > { %s381_s13 = scalar_lea.vmem [#allocation2], %s3325_s29  ;;  %p4821_p11 = pnand %p3888_p3, %p45_p5 }
  0x76   : > { %s389_s30 = sshll.u32 %s381_s13, 4  ;;  %s4825_s28 = scalar_lea.sflag [#allocation3], %s377_s26  ;;  %s4819_s30 = int_to_ptr.vmem [resolvable:$true] %s389_s30 }
  0x77   : > { %s4459_s10 = scalar_lea.hbm %s4817_s27, 1024  ;;  %p4461_p9 = pneg %p4821_p11 }
  0x78   : > { %p4460_p7 = scmp.ne.s32.totalorder %s4817_s27, %s4459_s10  ;;  %s4464_s12 = scalar_lea.hbm %s6248_s0, 2048 }
  0x79   : > { %p4465_p1 = scmp.lt.u32.totalorder %s4817_s27, %s6248_s0  ;;  %p4466_p2 = scmp.lt.u32.totalorder %s4464_s12, %s4459_s10 }
  0x7a   : > { %p4462_p12 = pnand %p4461_p9, %p4460_p7  ;;  %p4468_p6 = scmp.lt.u32.totalorder %s4459_s10, %s4817_s27 }
  0x7b   : > { %p4467_p13 = por %p4466_p2, %p4465_p1 }
  0x7c   : > { %p4463_p0 = pneg %p4462_p12 }
  0x7d   : > { %p4469_p4 = por %p4468_p6, %p4467_p13 }
  0x7f   : > { %p4470_p8 = pnand %p4469_p4, %p4463_p0 }
  0x81   : > { %4473 = shalt.err (!%p4470_p8)
}
  0x82   : > { %s4474_s26 = scalar_lea.vmem %s4819_s30, 1024  ;;  %s4571_s29 = smov [#allocation2]  }
  0x83   : > { %p4475_p3 = scmp.ne.s32.totalorder %s4819_s30, %s4474_s26  ;;  %s4479_s11 = sshll.u32 %s4571_s29, 4  ;;  %s4480_s11 = int_to_ptr.vmem [resolvable:$false] %s4479_s11 }
  0x84   : > { %s4481_s14 = scalar_lea.vmem %s4480_s11, 2048  ;;  %p4482_p12 = scmp.lt.s32.totalorder %s4819_s30, %s4480_s11 }
  0x85   : > { %p4477_p5 = pnand %p4475_p3, %p4461_p9  ;;  %p4483_p1 = scmp.lt.s32.totalorder %s4481_s14, %s4474_s26 }
  0x87   : > { %p4478_p7 = pneg %p4477_p5  ;;  %p4484_p2 = por %p4483_p1, %p4482_p12 }
  0x89   : > { %p4485_p13 = pnand %p4484_p2, %p4478_p7 }
  0x8b   : > { %4488 = shalt.err (!%p4485_p13)
}
  0x8c   : > { %3879 = dma.hbm_to_vmem [thread:$0]  (!%p4821_p11), %s4817_s27, 1024, %s4819_s30, %s4825_s28, %s4568_s15, %s4568_s15, %s4569_s16  }
  0x8d   : > { %p6340_p9 = scmp.ne.s32.totalorder %s6334_s25, 0 }
  0x8f   : > { %401 = sbr.rel (%p6340_p9) target bundleno = 1746 (0x6d2), region = 64 }
  0x96   : > { %s4859_s10 = sand.u32 1, %s4555_s18   ;;  %p6341_p0 = scmp.ne.s32.totalorder %s6331_s23, 0 }
  0x97   : > { %s3330_s12 = sshll.u32 %s4859_s10, 6  ;;  %s404_s13 = scalar_lea.sflag [#allocation3], %s4859_s10 }
  0x98   : > { %s4863_s26 = scalar_lea.vmem [#allocation2], %s3330_s12 }
  0x99   : > { %4534 = dma.done.wait (%p6341_p0), %s404_s13, 1024  }
  0x9a   : > { %4536 = vsyncadd (%p6341_p0), %s404_s13, 4294966272  ;;  %p6342_p11 = scmp.eq.s32.totalorder %s4657_s21, 0 }
  0x9c   : > { %4538 = dma.done.wait (%p6342_p11), [#allocation6], 1088   ;;  %p6343_p6 = pmov %p6342_p11 }
  0x9e   : > { %4540 = vsyncadd (%p6343_p6), [#allocation6], 4294966208  ;;  %p6344_p4 = pmov %p6343_p6 }
  0xa0   : > { %4542 = dma.done.wait (%p6344_p4), [#allocation9], 5120   ;;  %p6345_p8 = pmov %p6344_p4 }
  0xa1   : > { %v3935_v0 = vld [vmem:[#allocation5] sm:$0xff]   ;;  %v3936_v1 = vld [vmem:[#allocation5 + $0x8] sm:$0xff]   ;;  %v3937_v2 = vld [vmem:[#allocation5 + $0x10] sm:$0xff]   ;;  %v6266_v48 = vmov 0   ;;  %vm2144_vm0 = vcmask 1043456   ;;  %vm2119_vm1 = vcmask 64512  }
  0xa2   : > { %4544 = vsyncadd (%p6345_p8), [#allocation9], 4294962176  ;;  %3779 = vmatprep.subr.bf16.mxu0 %v3935_v0  ;;  %v3938_v3 = vld [vmem:[#allocation5 + $0x18] sm:$0xff]   ;;  %v3943_v4 = vld [vmem:[%s4863_s26] sm:$0xff]   ;;  %951 = vmatprep.mubr.bf16.mxu1 %v6266_v48  ;;  %s6470_s23 = sld [smem:[#allocation46_spill]]  ;;  %s3335_s25 = sshll.u32 %s4859_s10, 7 }
  0xa3   : > { %3780 = vmatpush3.bf16.msra.mxu0 %v3935_v0  ;;  %3795 = vmatprep.mubr.bf16.mxu0 %v3943_v4  ;;  %v3939_v5 = vld [vmem:[#allocation5 + $0x20] sm:$0xff]   ;;  %v3940_v6 = vld [vmem:[#allocation5 + $0x28] sm:$0xff]   ;;  %v3941_v9 = vld [vmem:[#allocation5 + $0x30] sm:$0xff]   ;;  %s6179_s27 = scalar_lea.vmem [#allocation11], %s3335_s25  ;;  %s3490_s30 = sshll.u32 %s4657_s21, 11 }
  0xa4   : > { %3781 = vmatprep.subr.bf16.mxu0 %v3936_v1  ;;  %v3954_v7 = vld [vmem:[%s6251_s3 + $0x4] ss:$16 sps:$4 sm:$0xff]   ;;  %v3956_v8 = vld [vmem:[%s6251_s3] ss:$16 sps:$4 sm:$0xff]   ;;  %v3942_v13 = vld [vmem:[#allocation5 + $0x38] sm:$0xff]   ;;  %s3207_s8 = sshll.u32 %s6179_s27, 4  ;;  %s6201_s8 = int_to_ptr.vmem [resolvable:$true] %s3207_s8 }
  0xa5   : > { %919 = vmatprep.subr.bf16.mxu1 %v3954_v7  ;;  %v3960_v10 = vld [vmem:[%s6251_s3 + $0x24] ss:$16 sps:$4 sm:$0xff]   ;;  %v3962_v11 = vld [vmem:[%s6251_s3 + $0x20] ss:$16 sps:$4 sm:$0xff]   ;;  %v3944_v16 = vld [vmem:[%s4863_s26 + $0x8] sm:$0xff]   ;;  %s6472_s11 = sld [smem:[#allocation48_spill]] }
  0xa6   : > { %920 = vmatpush1.bf16.msra.mxu1 %v3956_v8  ;;  %v3966_v12 = vld [vmem:[%s6251_s3 + $0x44] ss:$16 sps:$4 sm:$0xff]   ;;  %v3968_v14 = vld [vmem:[%s6251_s3 + $0x40] ss:$16 sps:$4 sm:$0xff]   ;;  %v3953_v17 = vld [vmem:[%s6251_s3 + $0xc] ss:$16 sps:$4 sm:$0xff]  }
  0xa7   : > { %3782 = vmatpush3.bf16.msra.mxu0 %v3936_v1  ;;  %921 = vmatprep.subr.bf16.mxu1 %v3960_v10  ;;  %v3972_v15 = vld [vmem:[%s6251_s3 + $0x64] ss:$16 sps:$4 sm:$0xff]   ;;  %v3974_v18 = vld [vmem:[%s6251_s3 + $0x60] ss:$16 sps:$4 sm:$0xff]   ;;  %v3951_v21 = vld [vmem:[%s6251_s3 + $0x8] ss:$16 sps:$4 sm:$0xff]  }
  0xa8   : > { %3783 = vmatprep.subr.bf16.mxu0 %v3937_v2  ;;  %v3945_v19 = vld [vmem:[%s4863_s26 + $0x10] sm:$0xff]   ;;  %v3959_v22 = vld [vmem:[%s6251_s3 + $0x2c] ss:$16 sps:$4 sm:$0xff]   ;;  %v3957_v24 = vld [vmem:[%s6251_s3 + $0x28] ss:$16 sps:$4 sm:$0xff]   ;;  %s3193_s21 = scalar_lea.sflag [#allocation4], %s4859_s10 }
  0xa9   : > { %v3978_v20 = vld [vmem:[%s6251_s3 + $0x84] ss:$16 sps:$4 sm:$0xff]   ;;  %v3980_v23 = vld [vmem:[%s6251_s3 + $0x80] ss:$16 sps:$4 sm:$0xff]   ;;  %v3965_v26 = vld [vmem:[%s6251_s3 + $0x4c] ss:$16 sps:$4 sm:$0xff]  }
  0xaa   : > { %922 = vmatpush1.bf16.msra.mxu1 %v3962_v11  ;;  %v3984_v25 = vld [vmem:[%s6251_s3 + $0xa4] ss:$16 sps:$4 sm:$0xff]   ;;  %v3986_v27 = vld [vmem:[%s6251_s3 + $0xa0] ss:$16 sps:$4 sm:$0xff]   ;;  %v3946_v28 = vld [vmem:[%s4863_s26 + $0x18] sm:$0xff]   ;;  %s4489_s12 = scalar_lea.vmem %s6201_s8, 2048 }
  0xab   : > { %3784 = vmatpush3.bf16.msra.mxu0 %v3937_v2  ;;  %923 = vmatprep.subr.bf16.mxu1 %v3966_v12  ;;  %v3947_v29 = vld [vmem:[%s4863_s26 + $0x20] sm:$0xff]   ;;  %v3963_v30 = vld [vmem:[%s6251_s3 + $0x48] ss:$16 sps:$4 sm:$0xff]   ;;  %v3971_v31 = vld [vmem:[%s6251_s3 + $0x6c] ss:$16 sps:$4 sm:$0xff]   ;;  %s6199_s14 = scalar_lea.hbm %s6472_s11, %s3490_s30  ;;  %p4490_p3 = scmp.ne.s32.totalorder %s6201_s8, %s4489_s12 }
  0xac   : > { %3785 = vmatprep.subr.bf16.mxu0 %v3938_v3  ;;  %v3969_v32 = vld [vmem:[%s6251_s3 + $0x68] ss:$16 sps:$4 sm:$0xff]   ;;  %v3977_v33 = vld [vmem:[%s6251_s3 + $0x8c] ss:$16 sps:$4 sm:$0xff]   ;;  %v3949_v35 = vld [vmem:[%s4863_s26 + $0x30] sm:$0xff]   ;;  %s4573_s13 = smov [#allocation11]  }
  0xad   : > { %v3948_v34 = vld [vmem:[%s4863_s26 + $0x28] sm:$0xff]   ;;  %v3950_v40 = vld [vmem:[%s4863_s26 + $0x38] sm:$0xff]   ;;  %v3990_v42 = vld [vmem:[%s6251_s3 + $0xc4] ss:$16 sps:$4 sm:$0xff]   ;;  %s6471_s26 = sld [smem:[#allocation47_spill]]  ;;  %p4491_p5 = pnand %p4490_p3, %p4804_p10 }
  0xae   : > { %924 = vmatpush1.bf16.msra.mxu1 %v3968_v14  ;;  %v3975_v36 = vld [vmem:[%s6251_s3 + $0x88] ss:$16 sps:$4 sm:$0xff]   ;;  %v3983_v37 = vld [vmem:[%s6251_s3 + $0xac] ss:$16 sps:$4 sm:$0xff]   ;;  %v3992_v43 = vld [vmem:[%s6251_s3 + $0xc0] ss:$16 sps:$4 sm:$0xff]  }
  0xaf   : > { %3786 = vmatpush3.bf16.msra.mxu0 %v3938_v3  ;;  %925 = vmatprep.subr.bf16.mxu1 %v3972_v15  ;;  %v3981_v38 = vld [vmem:[%s6251_s3 + $0xa8] ss:$16 sps:$4 sm:$0xff]   ;;  %v3989_v39 = vld [vmem:[%s6251_s3 + $0xcc] ss:$16 sps:$4 sm:$0xff]   ;;  %v3996_v45 = vld [vmem:[%s6251_s3 + $0xe4] ss:$16 sps:$4 sm:$0xff]   ;;  %p4492_p7 = pneg %p4491_p5 }
  0xb0   : > { %3787 = vmatprep.subr.bf16.mxu0 %v3939_v5  ;;  %v3987_v41 = vld [vmem:[%s6251_s3 + $0xc8] ss:$16 sps:$4 sm:$0xff]   ;;  %v3995_v44 = vld [vmem:[%s6251_s3 + $0xec] ss:$16 sps:$4 sm:$0xff]   ;;  %v3998_v47 = vld [vmem:[%s6251_s3 + $0xe0] ss:$16 sps:$4 sm:$0xff]  }
  0xb1   : > { %v3993_v46 = vld [vmem:[%s6251_s3 + $0xe8] ss:$16 sps:$4 sm:$0xff]   ;;  %v3336_v50 = vld [vmem:[%s6250_s2] ss:$0 sm:$0xff] }
  0xb2   : > { %926 = vmatpush1.bf16.msra.mxu1 %v3974_v18 }
  0xb3   : > { %3788 = vmatpush3.bf16.msra.mxu0 %v3939_v5  ;;  %927 = vmatprep.subr.bf16.mxu1 %v3978_v20 }
  0xb4   : > { %3789 = vmatprep.subr.bf16.mxu0 %v3940_v6 }
  0xb6   : > { %928 = vmatpush1.bf16.msra.mxu1 %v3980_v23 }
  0xb7   : > { %3790 = vmatpush3.bf16.msra.mxu0 %v3940_v6  ;;  %929 = vmatprep.subr.bf16.mxu1 %v3984_v25 }
  0xb8   : > { %3791 = vmatprep.subr.bf16.mxu0 %v3941_v9 }
  0xba   : > { %930 = vmatpush1.bf16.msra.mxu1 %v3986_v27  ;;  %v4000_v27 = vld [vmem:[%s6253_s5 + $0xc0] sm:$0xff]  }
  0xbb   : > { %3792 = vmatpush3.bf16.msra.mxu0 %v3941_v9  ;;  %931 = vmatprep.subr.bf16.mxu1 %v3990_v42  ;;  %v737_v42 = vld [vmem:[#allocation7] sm:$0xf] }
  0xbc   : > { %3793 = vmatprep.subr.bf16.mxu0 %v3942_v13 }
  0xbe   : > { %932 = vmatpush1.bf16.msra.mxu1 %v3992_v43 }
  0xbf   : > { %3794 = vmatpush3.bf16.msra.mxu0 %v3942_v13  ;;  %933 = vmatprep.subr.bf16.mxu1 %v3996_v45 }
  0xc0   : > { %1032 = vmatprep.subr.bf16.mxu0 %v3953_v17 }
  0xc2   : > { %3796 = vmatmul.mubr.bf16.vlgmr.msra.gmra.mrb[0].mxu0 %v3944_v16  ;;  %934 = vmatpush1.bf16.msra.mxu1 %v3998_v47 }
  0xc3   : > { %3799 = vmatprep.mubr.bf16.mxu0 %v3945_v19  ;;  %1033 = vmatpush1.bf16.msra.mxu0 %v3951_v21 }
  0xc4   : > { %1034 = vmatprep.subr.bf16.mxu0 %v3959_v22 }
  0xc7   : > { %1035 = vmatpush1.bf16.msra.mxu0 %v3957_v24 }
  0xc8   : > { %1036 = vmatprep.subr.bf16.mxu0 %v3965_v26  ;;  %v3999_v26 = vld [vmem:[%s6253_s5 + $0x40] sm:$0xff]  }
  0xc9   : > { %3507 = vmatprep.subr.bf16.mxu1 %v3999_v26 }
  0xca   : > { %3800 = vmatmul.mubr.bf16.gmra.mrb[4].mxu0 %v3946_v28  ;;  %v4001_v28 = vld [vmem:[%s6253_s5] sm:$0xff]  }
  0xcb   : > { %3803 = vmatprep.mubr.bf16.mxu0 %v3947_v29  ;;  %1037 = vmatpush1.bf16.msra.mxu0 %v3963_v30  ;;  %v4002_v29 = vld [vmem:[%s6253_s5 + $0x80] sm:$0xff]   ;;  %v4003_v30 = vld [vmem:[%s6253_s5 + $0x48] sm:$0xff]  }
  0xcc   : > { %1038 = vmatprep.subr.bf16.mxu0 %v3971_v31  ;;  %v4004_v31 = vld [vmem:[%s6253_s5 + $0xc8] sm:$0xff]  }
  0xcf   : > { %1039 = vmatpush1.bf16.msra.mxu0 %v3969_v32  ;;  %v4005_v32 = vld [vmem:[%s6253_s5 + $0x8] sm:$0xff]  }
  0xd0   : > { %1040 = vmatprep.subr.bf16.mxu0 %v3977_v33  ;;  %v4006_v33 = vld [vmem:[%s6253_s5 + $0x88] sm:$0xff]  }
  0xd2   : > { %3804 = vmatmul.mubr.bf16.gmra.mrb[8].mxu0 %v3948_v34  ;;  %v4007_v34 = vld [vmem:[%s6253_s5 + $0x50] sm:$0xff]  }
  0xd3   : > { %3807 = vmatprep.mubr.bf16.mxu0 %v3949_v35  ;;  %1041 = vmatpush1.bf16.msra.mxu0 %v3975_v36  ;;  %v4008_v35 = vld [vmem:[%s6253_s5 + $0xd0] sm:$0xff]  }
  0xd4   : > { %1042 = vmatprep.subr.bf16.mxu0 %v3983_v37  ;;  %v4009_v36 = vld [vmem:[%s6253_s5 + $0x10] sm:$0xff]  }
  0xd5   : > { %v4010_v37 = vld [vmem:[%s6253_s5 + $0x90] sm:$0xff]  }
  0xd7   : > { %1043 = vmatpush1.bf16.msra.mxu0 %v3981_v38  ;;  %v739_v38 = vlaneseq }
  0xd8   : > { %1044 = vmatprep.subr.bf16.mxu0 %v3989_v39 }
  0xd9   : > { %v740_v39 = vshrl.u32 %v739_v38, 7  ;;  %v4021_v38 = vld [vmem:[%s6253_s5 + $0x28] sm:$0xff]  }
  0xda   : > { %3808 = vmatmul.mubr.bf16.gmra.mrb[12].mxu0 %v3950_v40 }
  0xdb   : > { %1045 = vmatpush1.bf16.msra.mxu0 %v3987_v41  ;;  %1064 = vmatprep.mubr.bf16.mxu0 %v6266_v48  ;;  %v741_v40 = vsub.s32 0, %v740_v39  ;;  %v749_v41 = vsub.s32 2, %v740_v39  ;;  %v745_v43 = vsub.s32 1, %v740_v39 }
  0xdc   : > { %1046 = vmatprep.subr.bf16.mxu0 %v3995_v44  ;;  %v753_v44 = vsub.s32 3, %v740_v39  ;;  %v4022_v39 = vld [vmem:[%s6253_s5 + $0xa8] sm:$0xff]  }
  0xdd   : > { %v5036_v45 = vrot.slane %v737_v42, %v741_v40 }
  0xdf   : > { %1047 = vmatpush1.bf16.msra.mxu0 %v3993_v46  ;;  %v5038_v46 = vrot.slane %v737_v42, %v749_v41 }
  0xe0   : > { %3571 = vmatprep.subr.bf16.mxu0 %v4000_v27 }
  0xe1   : > { %6346 = vst [vmem:[#allocation18_spill] sm:$0xff] %v5038_v46 }
 0x195   : > { %v3797_v49 = vpop.f32.mrb[0].mxu0 }
 0x196   : > { %v634_v51 = vpop.f32.mrb[1].mxu0  ;;  %v643_v53 = vadd.f32 %v3797_v49, %v3336_v50 }
 0x197   : > { %v3798_v52 = vpop.f32.mrb[2].mxu0  ;;  %v635_v56 = vadd.f32 %v3336_v50, %v634_v51  ;;  %v5042_v51 = vrot.slane %v737_v42, %v753_v44  ;;  %v4023_v44 = vld [vmem:[%s6253_s5 + $0x70] sm:$0xff]  }
 0x198   : > { %v646_v54 = vadd.f32 %v3798_v52, %v3336_v50  ;;  %v637_v55 = vpop.f32.mrb[3].mxu0 }
 0x199   : > { %v638_v57 = vadd.f32 %v3336_v50, %v637_v55  ;;  %6348 = vst [vmem:[#allocation20_spill] sm:$0xff] %v5042_v51 }
 0x19a   : > { %v698_v58 = vpack.c.bf16 %v646_v54, %v643_v53 }
 0x19b   : > { %v697_v59 = vpack.c.bf16 %v638_v57, %v635_v56 }
 0x19d   : > { %952 = vmatmul.mubr.bf16.vlgmr.msra.gmra.mrb[0].mxu1 %v697_v59  ;;  %1065 = vmatmul.mubr.bf16.vlgmr.msra.gmra.mrb[16].mxu0 %v697_v59  ;;  %v3801_v60 = vpop.f32.mrb[4].mxu0 }
 0x19e   : > { %v659_v61 = vadd.f32 %v3801_v60, %v3336_v50  ;;  %v650_v62 = vpop.f32.mrb[5].mxu0  ;;  %961 = vmatprep.mubr.bf16.mxu1 %v6266_v48  ;;  %1074 = vmatprep.mubr.bf16.mxu0 %v6266_v48 }
 0x19f   : > { %v651_v63 = vadd.f32 %v3336_v50, %v650_v62  ;;  %v3802_v0 = vpop.f32.mrb[6].mxu0  ;;  %3508 = vmatpush3.bf16.msra.mxu1 %v4001_v28  ;;  %3572 = vmatpush3.bf16.msra.mxu0 %v4002_v29 }
 0x1a0   : > { %v662_v1 = vadd.f32 %v3802_v0, %v3336_v50  ;;  %v653_v2 = vpop.f32.mrb[7].mxu0  ;;  %3509 = vmatprep.subr.bf16.mxu1 %v4003_v30  ;;  %3573 = vmatprep.subr.bf16.mxu0 %v4004_v31 }
 0x1a1   : > { %v654_v3 = vadd.f32 %v3336_v50, %v653_v2  ;;  %v4011_v2 = vld [vmem:[%s6253_s5 + $0x58] sm:$0xff]  }
 0x1a2   : > { %v700_v4 = vpack.c.bf16 %v662_v1, %v659_v61 }
 0x1a3   : > { %v699_v5 = vpack.c.bf16 %v654_v3, %v651_v63  ;;  %3510 = vmatpush3.bf16.msra.mxu1 %v4005_v32  ;;  %3574 = vmatpush3.bf16.msra.mxu0 %v4006_v33  ;;  %v4012_v3 = vld [vmem:[%s6253_s5 + $0xd8] sm:$0xff]  }
 0x1a4   : > { %3511 = vmatprep.subr.bf16.mxu1 %v4007_v34  ;;  %3575 = vmatprep.subr.bf16.mxu0 %v4008_v35  ;;  %v4019_v34 = vld [vmem:[%s6253_s5 + $0x68] sm:$0xff]  }
 0x1a5   : > { %962 = vmatmul.mubr.bf16.gmra.mrb[4].mxu1 %v698_v58  ;;  %1075 = vmatmul.mubr.bf16.gmra.mrb[20].mxu0 %v698_v58  ;;  %v3805_v6 = vpop.f32.mrb[8].mxu0  ;;  %v4020_v35 = vld [vmem:[%s6253_s5 + $0xe8] sm:$0xff]  }
 0x1a6   : > { %971 = vmatprep.mubr.bf16.mxu1 %v6266_v48  ;;  %1084 = vmatprep.mubr.bf16.mxu0 %v6266_v48  ;;  %v675_v7 = vadd.f32 %v3805_v6, %v3336_v50  ;;  %v666_v8 = vpop.f32.mrb[9].mxu0  ;;  %v4013_v6 = vld [vmem:[%s6253_s5 + $0x18] sm:$0xff]  }
 0x1a7   : > { %v667_v9 = vadd.f32 %v3336_v50, %v666_v8  ;;  %v3806_v10 = vpop.f32.mrb[10].mxu0  ;;  %3512 = vmatpush3.bf16.msra.mxu1 %v4009_v36  ;;  %3576 = vmatpush3.bf16.msra.mxu0 %v4010_v37 }
 0x1a8   : > { %v678_v11 = vadd.f32 %v3806_v10, %v3336_v50  ;;  %v669_v12 = vpop.f32.mrb[11].mxu0  ;;  %3513 = vmatprep.subr.bf16.mxu1 %v4011_v2  ;;  %3577 = vmatprep.subr.bf16.mxu0 %v4012_v3 }
 0x1a9   : > { %v670_v13 = vadd.f32 %v3336_v50, %v669_v12  ;;  %v4015_v12 = vld [vmem:[%s6253_s5 + $0x60] sm:$0xff]  }
 0x1aa   : > { %v702_v14 = vpack.c.bf16 %v678_v11, %v675_v7  ;;  %v4014_v7 = vld [vmem:[%s6253_s5 + $0x98] sm:$0xff]  }
 0x1ab   : > { %v701_v15 = vpack.c.bf16 %v670_v13, %v667_v9  ;;  %3514 = vmatpush3.bf16.msra.mxu1 %v4013_v6  ;;  %3578 = vmatpush3.bf16.msra.mxu0 %v4014_v7  ;;  %v4016_v13 = vld [vmem:[%s6253_s5 + $0xe0] sm:$0xff]  }
 0x1ac   : > { %3515 = vmatprep.subr.bf16.mxu1 %v4015_v12  ;;  %3579 = vmatprep.subr.bf16.mxu0 %v4016_v13 }
 0x1ad   : > { %972 = vmatmul.mubr.bf16.gmra.mrb[8].mxu1 %v699_v5  ;;  %1085 = vmatmul.mubr.bf16.gmra.mrb[24].mxu0 %v699_v5  ;;  %v3809_v16 = vpop.f32.mrb[12].mxu0 }
 0x1ae   : > { %981 = vmatprep.mubr.bf16.mxu1 %v6266_v48  ;;  %1094 = vmatprep.mubr.bf16.mxu0 %v6266_v48  ;;  %v691_v17 = vadd.f32 %v3809_v16, %v3336_v50  ;;  %v682_v18 = vpop.f32.mrb[13].mxu0 }
 0x1af   : > { %v683_v19 = vadd.f32 %v3336_v50, %v682_v18  ;;  %v3810_v20 = vpop.f32.mrb[14].mxu0  ;;  %v4017_v18 = vld [vmem:[%s6253_s5 + $0x20] sm:$0xff]  }
 0x1b0   : > { %v694_v21 = vadd.f32 %v3810_v20, %v3336_v50  ;;  %v685_v22 = vpop.f32.mrb[15].mxu0  ;;  %3516 = vmatpush3.bf16.msra.mxu1 %v4017_v18  ;;  %v4028_v18 = vld [vmem:[%s6253_s5 + $0xf8] sm:$0xff]  }
 0x1b1   : > { %v686_v23 = vadd.f32 %v3336_v50, %v685_v22  ;;  %v5040_v50 = vrot.slane %v737_v42, %v745_v43  ;;  %3517 = vmatprep.subr.bf16.mxu1 %v4019_v34 }
 0x1b2   : > { %v704_v24 = vpack.c.bf16 %v694_v21, %v691_v17 }
 0x1b3   : > { %v703_v25 = vpack.c.bf16 %v686_v23, %v683_v19  ;;  %6347 = vst [vmem:[#allocation19_spill] sm:$0xff] %v5040_v50  ;;  %v4018_v19 = vld [vmem:[%s6253_s5 + $0xa0] sm:$0xff]  }
 0x1b4   : > { %3580 = vmatpush3.bf16.msra.mxu0 %v4018_v19  ;;  %3518 = vmatpush3.bf16.msra.mxu1 %v4021_v38 }
 0x1b5   : > { %982 = vmatmul.mubr.bf16.gmra.mrb[12].mxu1 %v700_v4  ;;  %1095 = vmatmul.mubr.bf16.gmra.mrb[28].mxu0 %v700_v4 }
 0x1b6   : > { %991 = vmatprep.mubr.bf16.mxu1 %v6266_v48  ;;  %1104 = vmatprep.mubr.bf16.mxu0 %v6266_v48 }
 0x1b7   : > { %3581 = vmatprep.subr.bf16.mxu0 %v4020_v35  ;;  %3519 = vmatprep.subr.bf16.mxu1 %v4023_v44 }
 0x1b8   : > { %3582 = vmatpush3.bf16.msra.mxu0 %v4022_v39 }
 0x1bd   : > { %992 = vmatmul.mubr.bf16.gmra.mrb[16].mxu1 %v701_v15  ;;  %1105 = vmatmul.mubr.bf16.gmra.mrb[32].mxu0 %v701_v15 }
 0x1be   : > { %1001 = vmatprep.mubr.bf16.mxu1 %v6266_v48  ;;  %1114 = vmatprep.mubr.bf16.mxu0 %v6266_v48 }
 0x1c5   : > { %1002 = vmatmul.mubr.bf16.gmra.mrb[20].mxu1 %v702_v14  ;;  %1115 = vmatmul.mubr.bf16.gmra.mrb[36].mxu0 %v702_v14 }
 0x1c6   : > { %1011 = vmatprep.mubr.bf16.mxu1 %v6266_v48  ;;  %1124 = vmatprep.mubr.bf16.mxu0 %v6266_v48 }
 0x1cd   : > { %1012 = vmatmul.mubr.bf16.gmra.mrb[24].mxu1 %v703_v25  ;;  %1125 = vmatmul.mubr.bf16.gmra.mrb[40].mxu0 %v703_v25 }
 0x1ce   : > { %1021 = vmatprep.mubr.bf16.mxu1 %v6266_v48  ;;  %1134 = vmatprep.mubr.bf16.mxu0 %v6266_v48 }
 0x1d5   : > { %1022 = vmatmul.mubr.bf16.gmra.mrb[28].mxu1 %v704_v24  ;;  %1135 = vmatmul.mubr.bf16.gmra.mrb[44].mxu0 %v704_v24 }
 0x270   : > { %v953_v47 = vpop.f32.mrb[0].mxu1  ;;  %v1066_v49 = vpop.f32.mrb[16].mxu0 }
 0x271   : > { %v955_v52 = vpop.f32.mrb[1].mxu1  ;;  %v1068_v53 = vpop.f32.mrb[17].mxu0  ;;  %v5045_v56 = vadd.f32 %v953_v47, %v5036_v45  ;;  %v5048_v57 = vadd.f32 %v1066_v49, %v5038_v46  ;;  %v4024_v47 = vld [vmem:[%s6253_s5 + $0xf0] sm:$0xff]  }
 0x272   : > { %v957_v54 = vpop.f32.mrb[2].mxu1  ;;  %v1070_v55 = vpop.f32.mrb[18].mxu0  ;;  %v5057_v62 = vadd.f32 %v955_v52, %v5040_v50  ;;  %v5060_v63 = vadd.f32 %v1068_v53, %v5042_v51  ;;  %3583 = vmatprep.subr.bf16.mxu0 %v4024_v47 }
 0x273   : > { %v5051_v58 = vadd.f32 %v957_v54, %v5036_v45  ;;  %v5054_v59 = vadd.f32 %v1070_v55, %v5038_v46  ;;  %v959_v60 = vpop.f32.mrb[3].mxu1  ;;  %v1072_v61 = vpop.f32.mrb[19].mxu0  ;;  %v4025_v55 = vld [vmem:[%s6253_s5 + $0x30] sm:$0xff]  }
 0x274   : > { %v5063_v0 = vadd.f32 %v959_v60, %v5040_v50  ;;  %v5066_v1 = vadd.f32 %v1072_v61, %v5042_v51  ;;  %v4026_v60 = vld [vmem:[%s6253_s5 + $0xb0] sm:$0xff]   ;;  %3520 = vmatpush3.bf16.msra.mxu1 %v4025_v55 }
 0x275   : > { %v1145_v4 = vmax.f32 %v5045_v56, %v5051_v58  ;;  %v1171_v5 = vmax.f32 %v5048_v57, %v5054_v59  ;;  %3584 = vmatpush3.bf16.msra.mxu0 %v4026_v60 }
 0x276   : > { %v1158_v8 = vmax.f32 %v5057_v62, %v5063_v0  ;;  %v1184_v9 = vmax.f32 %v5060_v63, %v5066_v1  ;;  %3585 = vmatprep.subr.bf16.mxu0 %v4028_v18 }
 0x278   : > { %v963_v10 = vpop.f32.mrb[4].mxu1  ;;  %v1076_v11 = vpop.f32.mrb[20].mxu0 }
 0x279   : > { %v5095_v14 = vadd.f32 %v963_v10, %v5036_v45  ;;  %v5098_v15 = vadd.f32 %v1076_v11, %v5038_v46  ;;  %v965_v16 = vpop.f32.mrb[5].mxu1  ;;  %v1078_v17 = vpop.f32.mrb[21].mxu0 }
 0x27a   : > { %v5107_v20 = vadd.f32 %v965_v16, %v5040_v50  ;;  %v5110_v21 = vadd.f32 %v1078_v17, %v5042_v51  ;;  %v967_v22 = vpop.f32.mrb[6].mxu1  ;;  %v1080_v23 = vpop.f32.mrb[22].mxu0  ;;  %v4027_v17 = vld [vmem:[%s6253_s5 + $0x78] sm:$0xff]  }
 0x27b   : > { %v1146_v24 = vmax.f32 %v1145_v4, %v5095_v14  ;;  %v1172_v25 = vmax.f32 %v1171_v5, %v5098_v15  ;;  %v5115_v26 = vadd.f32 %v967_v22, %v5036_v45  ;;  %v5118_v27 = vadd.f32 %v1080_v23, %v5038_v46  ;;  %v969_v28 = vpop.f32.mrb[7].mxu1  ;;  %v1082_v29 = vpop.f32.mrb[23].mxu0  ;;  %v4029_v23 = vld [vmem:[%s6253_s5 + $0x38] sm:$0xff]   ;;  %3521 = vmatprep.subr.bf16.mxu1 %v4027_v17 }
 0x27c   : > { %v1159_v30 = vmax.f32 %v1158_v8, %v5107_v20  ;;  %v1185_v31 = vmax.f32 %v1184_v9, %v5110_v21  ;;  %v5123_v32 = vadd.f32 %v969_v28, %v5040_v50  ;;  %v5126_v33 = vadd.f32 %v1082_v29, %v5042_v51  ;;  %3522 = vmatpush3.bf16.msra.mxu1 %v4029_v23 }
 0x27d   : > { %v1147_v36 = vmax.f32 %v1146_v24, %v5115_v26  ;;  %v1173_v37 = vmax.f32 %v1172_v25, %v5118_v27  ;;  %v4030_v24 = vld [vmem:[%s6253_s5 + $0xb8] sm:$0xff]  }
 0x27e   : > { %v1160_v40 = vmax.f32 %v1159_v30, %v5123_v32  ;;  %v1186_v41 = vmax.f32 %v1185_v31, %v5126_v33  ;;  %3586 = vmatpush3.bf16.msra.mxu0 %v4030_v24 }
 0x280   : > { %v973_v42 = vpop.f32.mrb[8].mxu1  ;;  %v1086_v43 = vpop.f32.mrb[24].mxu0 }
 0x281   : > { %v5151_v49 = vadd.f32 %v973_v42, %v5036_v45  ;;  %v5154_v52 = vadd.f32 %v1086_v43, %v5038_v46  ;;  %v975_v53 = vpop.f32.mrb[9].mxu1  ;;  %v1088_v54 = vpop.f32.mrb[25].mxu0 }
 0x282   : > { %v5163_v61 = vadd.f32 %v975_v53, %v5040_v50  ;;  %v5166_v2 = vadd.f32 %v1088_v54, %v5042_v51  ;;  %v977_v3 = vpop.f32.mrb[10].mxu1  ;;  %v1090_v4 = vpop.f32.mrb[26].mxu0 }
 0x283   : > { %v1148_v5 = vmax.f32 %v1147_v36, %v5151_v49  ;;  %v1174_v6 = vmax.f32 %v1173_v37, %v5154_v52  ;;  %v5171_v7 = vadd.f32 %v977_v3, %v5036_v45  ;;  %v5174_v8 = vadd.f32 %v1090_v4, %v5038_v46  ;;  %v979_v9 = vpop.f32.mrb[11].mxu1  ;;  %v1092_v10 = vpop.f32.mrb[27].mxu0 }
 0x284   : > { %v1161_v11 = vmax.f32 %v1160_v40, %v5163_v61  ;;  %v1187_v12 = vmax.f32 %v1186_v41, %v5166_v2  ;;  %v5179_v13 = vadd.f32 %v979_v9, %v5040_v50  ;;  %v5182_v16 = vadd.f32 %v1092_v10, %v5042_v51 }
 0x285   : > { %v1149_v19 = vmax.f32 %v1148_v5, %v5171_v7  ;;  %v1175_v22 = vmax.f32 %v1174_v6, %v5174_v8 }
 0x286   : > { %v1162_v25 = vmax.f32 %v1161_v11, %v5179_v13  ;;  %v1188_v28 = vmax.f32 %v1187_v12, %v5182_v16 }
 0x288   : > { %v983_v29 = vpop.f32.mrb[12].mxu1  ;;  %v1096_v30 = vpop.f32.mrb[28].mxu0 }
 0x289   : > { %v5201_v31 = vadd.f32 %v983_v29, %v5036_v45  ;;  %v5204_v34 = vadd.f32 %v1096_v30, %v5038_v46  ;;  %v985_v35 = vpop.f32.mrb[13].mxu1  ;;  %v1098_v36 = vpop.f32.mrb[29].mxu0 }
 0x28a   : > { %v5207_v37 = vadd.f32 %v985_v35, %v5040_v50  ;;  %v5210_v38 = vadd.f32 %v1098_v36, %v5042_v51  ;;  %v987_v39 = vpop.f32.mrb[14].mxu1  ;;  %v1100_v40 = vpop.f32.mrb[30].mxu0 }
 0x28b   : > { %v1150_v41 = vmax.f32 %v1149_v19, %v5201_v31  ;;  %v1176_v42 = vmax.f32 %v1175_v22, %v5204_v34  ;;  %v5215_v43 = vadd.f32 %v987_v39, %v5036_v45  ;;  %v5218_v44 = vadd.f32 %v1100_v40, %v5038_v46  ;;  %v989_v47 = vpop.f32.mrb[15].mxu1  ;;  %v1102_v53 = vpop.f32.mrb[31].mxu0 }
 0x28c   : > { %v1163_v54 = vmax.f32 %v1162_v25, %v5207_v37  ;;  %v1189_v55 = vmax.f32 %v1188_v28, %v5210_v38  ;;  %v5223_v60 = vadd.f32 %v989_v47, %v5040_v50  ;;  %v5226_v3 = vadd.f32 %v1102_v53, %v5042_v51 }
 0x28d   : > { %v1151_v4 = vmax.f32 %v1150_v41, %v5215_v43  ;;  %v1177_v5 = vmax.f32 %v1176_v42, %v5218_v44 }
 0x28e   : > { %v1164_v6 = vmax.f32 %v1163_v54, %v5223_v60  ;;  %v1190_v9 = vmax.f32 %v1189_v55, %v5226_v3 }
 0x28f   : > { %v1152_v10 = vrot.slane %v1151_v4, 4  ;;  %v1178_v11 = vrot.slane %v1177_v5, 4 }
 0x290   : > { %v1165_v12 = vrot.slane %v1164_v6, 4  ;;  %v1191_v17 = vrot.slane %v1190_v9, 4  ;;  %v993_v18 = vpop.f32.mrb[16].mxu1  ;;  %v1106_v19 = vpop.f32.mrb[32].mxu0 }
 0x291   : > { %v1153_v22 = vmax.f32 %v1151_v4, %v1152_v10  ;;  %v1179_v23 = vmax.f32 %v1177_v5, %v1178_v11  ;;  %v5233_v24 = vadd.f32 %v993_v18, %v5036_v45  ;;  %v5236_v25 = vadd.f32 %v1106_v19, %v5038_v46  ;;  %v995_v28 = vpop.f32.mrb[17].mxu1  ;;  %v1108_v29 = vpop.f32.mrb[33].mxu0 }
 0x292   : > { %v1166_v30 = vmax.f32 %v1164_v6, %v1165_v12  ;;  %v1192_v35 = vmax.f32 %v1190_v9, %v1191_v17  ;;  %v5239_v36 = vadd.f32 %v995_v28, %v5040_v50  ;;  %v5242_v39 = vadd.f32 %v1108_v29, %v5042_v51  ;;  %v997_v40 = vpop.f32.mrb[18].mxu1  ;;  %v1110_v41 = vpop.f32.mrb[34].mxu0 }
 0x293   : > { %v1154_v42 = vrot.slane %v1153_v22, 2  ;;  %v1180_v47 = vrot.slane %v1179_v23, 2  ;;  %v5245_v53 = vadd.f32 %v997_v40, %v5036_v45  ;;  %v5248_v54 = vadd.f32 %v1110_v41, %v5038_v46  ;;  %v999_v55 = vpop.f32.mrb[19].mxu1  ;;  %v1112_v4 = vpop.f32.mrb[35].mxu0 }
 0x294   : > { %6349 = vst [vmem:[#allocation21_spill] sm:$0xff] %v5242_v39  ;;  %v1167_v5 = vrot.slane %v1166_v30, 2  ;;  %v1193_v6 = vrot.slane %v1192_v35, 2  ;;  %v5251_v9 = vadd.f32 %v999_v55, %v5040_v50  ;;  %v5254_v10 = vadd.f32 %v1112_v4, %v5042_v51 }
 0x295   : > { %v1155_v11 = vmax.f32 %v1153_v22, %v1154_v42  ;;  %v1181_v12 = vmax.f32 %v1179_v23, %v1180_v47 }
 0x296   : > { %6350 = vst [vmem:[#allocation22_spill] sm:$0xff] %v5254_v10  ;;  %v1168_v19 = vmax.f32 %v1166_v30, %v1167_v5  ;;  %v1194_v28 = vmax.f32 %v1192_v35, %v1193_v6 }
 0x297   : > { %v1156_v41 = vrot.slane %v1155_v11, 1  ;;  %v1182_v55 = vrot.slane %v1181_v12, 1 }
 0x298   : > { %v1169_v4 = vrot.slane %v1168_v19, 1  ;;  %v1195_v48 = vrot.slane %v1194_v28, 1  ;;  %v1003_v22 = vpop.f32.mrb[20].mxu1  ;;  %v1116_v23 = vpop.f32.mrb[36].mxu0 }
 0x299   : > { %v1157_v42 = vmax.f32 %v1155_v11, %v1156_v41  ;;  %v1183_v47 = vmax.f32 %v1181_v12, %v1182_v55  ;;  %v5265_v17 = vadd.f32 %v1003_v22, %v5036_v45  ;;  %v5268_v30 = vadd.f32 %v1116_v23, %v5038_v46  ;;  %v1005_v35 = vpop.f32.mrb[21].mxu1  ;;  %v1118_v5 = vpop.f32.mrb[37].mxu0 }
 0x29a   : > { %v5270_v6 = vmax.f32 %v1168_v19, %v1169_v4  ;;  %v5272_v29 = vmax.f32 %v1194_v28, %v1195_v48  ;;  %v5275_v40 = vadd.f32 %v1005_v35, %v5040_v50  ;;  %v5278_v18 = vadd.f32 %v1118_v5, %v5042_v51  ;;  %v5280_v11 = vpop.f32.mrb[22].mxu1  ;;  %v5282_v12 = vpop.f32.mrb[38].mxu0 }
 0x29b   : > { %6353 = vst [vmem:[#allocation25_spill] sm:$0xff] %v5282_v12  ;;  %v1249_v41 = vsub.f32 %v5045_v56, %v1157_v42  ;;  %v1253_v55 = vsub.f32 %v5051_v58, %v1157_v42  ;;  %v1257_v22 = vsub.f32 %v5095_v14, %v1157_v42  ;;  %v1261_v19 = vsub.f32 %v5115_v26, %v1157_v42  ;;  %v5288_v48 = vpop.f32.mrb[23].mxu1  ;;  %v5290_v28 = vpop.f32.mrb[39].mxu0 }
 0x29c   : > { %6351 = vst [vmem:[#allocation23_spill] sm:$0xff] %v5275_v40  ;;  %6352 = vst [vmem:[#allocation24_spill] sm:$0xff] %v5278_v18  ;;  %v1265_v4 = vsub.f32 %v5151_v49, %v1157_v42  ;;  %v1269_v23 = vsub.f32 %v5171_v7, %v1157_v42  ;;  %v1273_v35 = vsub.f32 %v5201_v31, %v1157_v42 }
 0x29d   : > { %6354 = vst [vmem:[#allocation26_spill] sm:$0xff] %v5288_v48  ;;  %6355 = vst [vmem:[#allocation27_spill] sm:$0xff] %v5290_v28  ;;  %v1277_v5 = vsub.f32 %v5215_v43, %v1157_v42  ;;  %v1313_v51 = vmul.f32 1.442695, %v1249_v41  ;;  %v1321_v56 = vmul.f32 1.442695, %v1253_v55  ;;  %v1251_v58 = vsub.f32 %v5048_v57, %v1183_v47 }
 0x29e   : > { %v1329_v50 = vmul.f32 1.442695, %v1257_v22  ;;  %v1337_v14 = vmul.f32 1.442695, %v1261_v19  ;;  %v1345_v12 = vmul.f32 1.442695, %v1265_v4  ;;  %v1255_v48 = vsub.f32 %v5054_v59, %v1183_v47 }
 0x29f   : > { %v1353_v26 = vmul.f32 1.442695, %v1269_v23  ;;  %4075 = vpow2.f32 %v1313_v51  ;;  %v1361_v28 = vmul.f32 1.442695, %v1273_v35  ;;  %v1369_v46 = vmul.f32 1.442695, %v1277_v5 }
 0x2a0   : > { %v1259_v49 = vsub.f32 %v5098_v15, %v1183_v47  ;;  %4077 = vpow2.f32 %v1321_v56  ;;  %v1263_v7 = vsub.f32 %v5118_v27, %v1183_v47  ;;  %v1267_v31 = vsub.f32 %v5154_v52, %v1183_v47  ;;  %v5302_v42 = vpop.f32.mrb[24].mxu1  ;;  %v5304_v57 = vpop.f32.mrb[40].mxu0 }
 0x2a1   : > { %v1271_v43 = vsub.f32 %v5174_v8, %v1183_v47  ;;  %4079 = vpow2.f32 %v1329_v50  ;;  %v1275_v41 = vsub.f32 %v5204_v34, %v1183_v47  ;;  %v1279_v51 = vsub.f32 %v5218_v44, %v1183_v47  ;;  %v5308_v55 = vpop.f32.mrb[25].mxu1  ;;  %v5310_v15 = vpop.f32.mrb[41].mxu0 }
 0x2a2   : > { %v1317_v59 = vmul.f32 1.442695, %v1251_v58  ;;  %4081 = vpow2.f32 %v1337_v14  ;;  %v1325_v27 = vmul.f32 1.442695, %v1255_v48  ;;  %v1333_v22 = vmul.f32 1.442695, %v1259_v49 }
 0x2a3   : > { %v1341_v52 = vmul.f32 1.442695, %v1263_v7  ;;  %4083 = vpow2.f32 %v1345_v12  ;;  %v1349_v8 = vmul.f32 1.442695, %v1267_v31  ;;  %v1357_v19 = vmul.f32 1.442695, %v1271_v43 }
 0x2a4   : > { %v1365_v4 = vmul.f32 1.442695, %v1275_v41  ;;  %4085 = vpow2.f32 %v1353_v26  ;;  %v1373_v23 = vmul.f32 1.442695, %v1279_v51  ;;  %v1250_v50 = vsub.f32 %v5057_v62, %v5270_v6  ;;  %v5316_v44 = vpop.f32.mrb[26].mxu1  ;;  %v5318_v47 = vpop.f32.mrb[42].mxu0 }
 0x2a5   : > { %v1254_v34 = vsub.f32 %v5063_v0, %v5270_v6  ;;  %4087 = vpow2.f32 %v1361_v28  ;;  %v1258_v48 = vsub.f32 %v5107_v20, %v5270_v6  ;;  %v1262_v12 = vsub.f32 %v5123_v32, %v5270_v6  ;;  %v5326_v5 = vpop.f32.mrb[27].mxu1  ;;  %v5328_v62 = vpop.f32.mrb[43].mxu0 }
 0x2a6   : > { %v1266_v35 = vsub.f32 %v5163_v61, %v5270_v6  ;;  %4089 = vpow2.f32 %v1369_v46  ;;  %v1270_v0 = vsub.f32 %v5179_v13, %v5270_v6  ;;  %v1274_v28 = vsub.f32 %v5207_v37, %v5270_v6 }
 0x2a7   : > { %v1278_v20 = vsub.f32 %v5223_v60, %v5270_v6  ;;  %4091 = vpow2.f32 %v1317_v59  ;;  %v1315_v56 = vmul.f32 1.442695, %v1250_v50  ;;  %v1323_v32 = vmul.f32 1.442695, %v1254_v34 }
 0x2a8   : > { %v1331_v58 = vmul.f32 1.442695, %v1258_v48  ;;  %4093 = vpow2.f32 %v1325_v27  ;;  %v1339_v61 = vmul.f32 1.442695, %v1262_v12  ;;  %v5336_v14 = vmul.f32 1.442695, %v1266_v35 }
 0x2a9   : > { %v5338_v26 = vmul.f32 1.442695, %v1270_v0  ;;  %v5340_v46 = vpop.eup %4075  ;;  %4095 = vpow2.f32 %v1333_v22  ;;  %v5342_v13 = vmul.f32 1.442695, %v1274_v28  ;;  %v5344_v49 = vmul.f32 1.442695, %v1278_v20 }
 0x2aa   : > { %v1252_v37 = vsub.f32 %v5060_v63, %v5272_v29  ;;  %v5348_v60 = vpop.f32.mrb[28].mxu1  ;;  %v5350_v6 = vpop.f32.mrb[44].mxu0  ;;  %4097 = vpow2.f32 %v1341_v52  ;;  %v1256_v31 = vsub.f32 %v5066_v1, %v5272_v29  ;;  %v1260_v43 = vsub.f32 %v5110_v21, %v5272_v29 }
 0x2ab   : > { %v5352_v7 = vpop.eup %4077  ;;  %v1264_v41 = vsub.f32 %v5126_v33, %v5272_v29  ;;  %v5360_v51 = vpop.f32.mrb[29].mxu1  ;;  %4099 = vpow2.f32 %v1349_v8  ;;  %v1268_v22 = vsub.f32 %v5166_v2, %v5272_v29  ;;  %v1272_v1 = vsub.f32 %v5182_v16, %v5272_v29 }
 0x2ac   : > { %6356 = vst [vmem:[#allocation28_spill] sm:$0xff] %v5352_v7  ;;  %v5362_v59 = vpop.f32.mrb[45].mxu0  ;;  %v5364_v63 = vpop.eup %4079  ;;  %v1441_v27 = vadd.f32 %v5352_v7, %v5340_v46  ;;  %4101 = vpow2.f32 %v1357_v19  ;;  %v1276_v50 = vsub.f32 %v5210_v38, %v5272_v29  ;;  %v1280_v34 = vsub.f32 %v5226_v3, %v5272_v29 }
 0x2ad   : > { %6357 = vst [vmem:[#allocation29_spill] sm:$0xff] %v5364_v63  ;;  %v5372_v21 = vpop.f32.mrb[30].mxu1  ;;  %v5374_v52 = vpop.f32.mrb[46].mxu0  ;;  %v1319_v8 = vmul.f32 1.442695, %v1252_v37  ;;  %4103 = vpow2.f32 %v1365_v4 }
 0x2ae   : > { %v5376_v33 = vpop.eup %4081  ;;  %v5382_v48 = vpop.f32.mrb[31].mxu1  ;;  %v1442_v16 = vadd.f32 %v5364_v63, %v1441_v27  ;;  %v1327_v35 = vmul.f32 1.442695, %v1256_v31  ;;  %v1335_v0 = vmul.f32 1.442695, %v1260_v43  ;;  %4105 = vpow2.f32 %v1373_v23  ;;  %v6371_v63 = vld [vmem:[#allocation26_spill] sm:$0xff] }
 0x2af   : > { %6358 = vst [vmem:[#allocation30_spill] sm:$0xff] %v5376_v33  ;;  %v5384_v2 = vpop.f32.mrb[47].mxu0  ;;  %v5386_v12 = vpop.eup %4083  ;;  %v1343_v19 = vmul.f32 1.442695, %v1264_v41  ;;  %v5391_v38 = vmul.f32 1.442695, %v1268_v22  ;;  %4107 = vpow2.f32 %v1315_v56  ;;  %v6363_v23 = vmax.f32 %v5233_v24, %v5245_v53 }
 0x2b0   : > { %6359 = vst [vmem:[#allocation31_spill] sm:$0xff] %v5386_v12  ;;  %v5389_v28 = vpop.eup %4085  ;;  %v5393_v20 = vmul.f32 1.442695, %v1272_v1  ;;  %v1443_v29 = vadd.f32 %v5376_v33, %v1442_v16  ;;  %v5398_v37 = vmul.f32 1.442695, %v1276_v50  ;;  %4109 = vpow2.f32 %v1323_v32  ;;  %v6370_v33 = vld [vmem:[#allocation19_spill] sm:$0xff] }
 0x2b1   : > { %6360 = vst [vmem:[#allocation32_spill] sm:$0xff] %v5389_v28  ;;  %v5395_v3 = vpop.eup %4087  ;;  %v5400_v7 = vmul.f32 1.442695, %v1280_v34  ;;  %v1198_v31 = vmax.f32 %v6363_v23, %v5265_v17  ;;  %v6364_v43 = vmax.f32 %v5236_v25, %v5248_v54  ;;  %v6365_v56 = vmax.f32 %v5239_v36, %v5251_v9  ;;  %v6368_v23 = vld [vmem:[#allocation18_spill] sm:$0xff] }
 0x2b2   : > { %6361 = vst [vmem:[#allocation33_spill] sm:$0xff] %v5395_v3  ;;  %v5402_v4 = vpop.eup %4089  ;;  %v1444_v1 = vadd.f32 %v5386_v12, %v1443_v29  ;;  %4111 = vpow2.f32 %v1331_v58  ;;  %v6366_v32 = vmax.f32 %v5242_v39, %v5254_v10  ;;  %v5425_v34 = vadd.f32 %v5280_v11, %v5036_v45  ;;  %v6372_v58 = vld [vmem:[#allocation20_spill] sm:$0xff]  ;;  %v6373_v12 = vld [vmem:[#allocation27_spill] sm:$0xff] }
 0x2b3   : > { %6362 = vst [vmem:[#allocation34_spill] sm:$0xff] %v5402_v4  ;;  %v1224_v41 = vmax.f32 %v6364_v43, %v5268_v30  ;;  %v1211_v27 = vmax.f32 %v6365_v56, %v5275_v40  ;;  %v5416_v22 = vpop.eup %4091  ;;  %4113 = vpow2.f32 %v1339_v61  ;;  %v6369_v43 = vld [vmem:[#allocation25_spill] sm:$0xff]  ;;  %v5435_v29 = vadd.f32 %v6371_v63, %v6370_v33 }
 0x2b4   : > { %v1237_v50 = vmax.f32 %v6366_v32, %v5278_v18  ;;  %v5427_v16 = vpop.eup %4093  ;;  %v5431_v56 = vadd.f32 %v6369_v43, %v6368_v23  ;;  %v5439_v40 = vadd.f32 %v6373_v12, %v6372_v58  ;;  %v1445_v11 = vadd.f32 %v5389_v28, %v1444_v1 }
 0x2b5   : > { %6367 = vst [vmem:[#allocation35_spill] sm:$0xff] %v5427_v16  ;;  %v5441_v32 = vpop.eup %4095  ;;  %v1467_v18 = vadd.f32 %v5427_v16, %v5416_v22  ;;  %4115 = vpow2.f32 %v5336_v14  ;;  %v1199_v61 = vmax.f32 %v1198_v31, %v5425_v34  ;;  %v1212_v12 = vmax.f32 %v1211_v27, %v5435_v29 }
 0x2b6   : > { %6374 = vst [vmem:[#allocation18_spill] sm:$0xff] %v5441_v32  ;;  %v5448_v43 = vpop.eup %4097  ;;  %4117 = vpow2.f32 %v5338_v26  ;;  %v1225_v63 = vmax.f32 %v1224_v41, %v5431_v56  ;;  %v1238_v10 = vmax.f32 %v1237_v50, %v5439_v40  ;;  %v1446_v1 = vadd.f32 %v5395_v3, %v1445_v11 }
 0x2b7   : > { %6375 = vst [vmem:[#allocation25_spill] sm:$0xff] %v5448_v43  ;;  %v5454_v39 = vpop.eup %4099  ;;  %v1468_v28 = vadd.f32 %v5441_v32, %v1467_v18  ;;  %4119 = vpow2.f32 %v5342_v13  ;;  %v5461_v14 = vadd.f32 %v5302_v42, %v5036_v45  ;;  %v5468_v26 = vadd.f32 %v5304_v57, %v6368_v23 }
 0x2b8   : > { %6376 = vst [vmem:[#allocation19_spill] sm:$0xff] %v5454_v39  ;;  %v5463_v31 = vpop.eup %4101  ;;  %4121 = vpow2.f32 %v5344_v49  ;;  %v5472_v41 = vadd.f32 %v5308_v55, %v6370_v33  ;;  %v5476_v18 = vadd.f32 %v5310_v15, %v6372_v58  ;;  %v1447_v42 = vadd.f32 %v5402_v4, %v1446_v1 }
 0x2b9   : > { %6377 = vst [vmem:[#allocation26_spill] sm:$0xff] %v5463_v31  ;;  %v5478_v13 = vpop.eup %4103  ;;  %v1469_v27 = vadd.f32 %v5448_v43, %v1468_v28  ;;  %4123 = vpow2.f32 %v1319_v8  ;;  %v1200_v49 = vmax.f32 %v1199_v61, %v5461_v14  ;;  %v1226_v57 = vmax.f32 %v1225_v63, %v5468_v26 }
 0x2ba   : > { %6378 = vst [vmem:[#allocation20_spill] sm:$0xff] %v5478_v13  ;;  %v5483_v50 = vpop.eup %4105  ;;  %4125 = vpow2.f32 %v1327_v35  ;;  %v1213_v55 = vmax.f32 %v1212_v12, %v5472_v41  ;;  %v1239_v11 = vmax.f32 %v1238_v10, %v5476_v18  ;;  %v1448_v3 = vrot.slane %v1447_v42, 4 }
 0x2bb   : > { %6379 = vst [vmem:[#allocation27_spill] sm:$0xff] %v5483_v50  ;;  %v5488_v15 = vpop.eup %4107  ;;  %v1470_v32 = vadd.f32 %v5454_v39, %v1469_v27  ;;  %4127 = vpow2.f32 %v1335_v0  ;;  %v5493_v8 = vadd.f32 %v5316_v44, %v5036_v45  ;;  %v5499_v35 = vadd.f32 %v5318_v47, %v6368_v23 }
 0x2bc   : > { %v5495_v28 = vpop.eup %4109  ;;  %4129 = vpow2.f32 %v1343_v19  ;;  %v5503_v10 = vadd.f32 %v5326_v5, %v6370_v33  ;;  %v5507_v61 = vadd.f32 %v5328_v62, %v6372_v58  ;;  %v1449_v63 = vadd.f32 %v1448_v3, %v1447_v42 }
 0x2bd   : > { %v5509_v0 = vpop.eup %4111  ;;  %v1471_v44 = vadd.f32 %v5463_v31, %v1470_v32  ;;  %v1454_v19 = vadd.f32 %v5495_v28, %v5488_v15  ;;  %4131 = vpow2.f32 %v5391_v38  ;;  %v1201_v5 = vmax.f32 %v1200_v49, %v5493_v8 }
 0x2be   : > { %6380 = vst [vmem:[#allocation36_spill] sm:$0xff] %v5509_v0  ;;  %v5515_v47 = vpop.eup %4113  ;;  %4133 = vpow2.f32 %v5393_v20  ;;  %v1227_v12 = vmax.f32 %v1226_v57, %v5499_v35  ;;  %v1214_v62 = vmax.f32 %v1213_v55, %v5503_v10  ;;  %v1450_v3 = vrot.slane %v1449_v63, 2 }
 0x2bf   : > { %6381 = vst [vmem:[#allocation37_spill] sm:$0xff] %v5515_v47  ;;  %v5521_v1 = vpop.eup %4115  ;;  %v1472_v32 = vadd.f32 %v5478_v13, %v1471_v44  ;;  %v1455_v42 = vadd.f32 %v5509_v0, %v1454_v19  ;;  %4135 = vpow2.f32 %v5398_v37  ;;  %v1240_v20 = vmax.f32 %v1239_v11, %v5507_v61 }
 0x2c0   : > { %6382 = vst [vmem:[#allocation38_spill] sm:$0xff] %v5521_v1  ;;  %v5526_v38 = vpop.eup %4117  ;;  %4137 = vpow2.f32 %v5400_v7  ;;  %v5532_v27 = vadd.f32 %v5348_v60, %v5036_v45  ;;  %v5536_v49 = vadd.f32 %v5350_v6, %v6368_v23  ;;  %v1451_v55 = vadd.f32 %v1450_v3, %v1449_v63 }
 0x2c1   : > { %6383 = vst [vmem:[#allocation39_spill] sm:$0xff] %v5526_v38  ;;  %v5538_v57 = vpop.eup %4119  ;;  %v1473_v44 = vadd.f32 %v5483_v50, %v1472_v32  ;;  %v1456_v37 = vadd.f32 %v5515_v47, %v1455_v42  ;;  %v5544_v7 = vadd.f32 %v5360_v51, %v6370_v33  ;;  %v5552_v6 = vadd.f32 %v5362_v59, %v6372_v58 }
 0x2c2   : > { %6384 = vst [vmem:[#allocation40_spill] sm:$0xff] %v5538_v57  ;;  %v5546_v11 = vpop.eup %4121  ;;  %v1202_v60 = vmax.f32 %v1201_v5, %v5532_v27  ;;  %v1228_v19 = vmax.f32 %v1227_v12, %v5536_v49  ;;  %v5556_v63 = vadd.f32 %v5372_v21, %v5036_v45  ;;  %v1452_v32 = vrot.slane %v1451_v55, 1 }
 0x2c3   : > { %6385 = vst [vmem:[#allocation41_spill] sm:$0xff] %v5546_v11  ;;  %v5558_v3 = vpop.eup %4123  ;;  %v1474_v42 = vrot.slane %v1473_v44, 4  ;;  %v1457_v51 = vadd.f32 %v5521_v1, %v1456_v37  ;;  %v1215_v50 = vmax.f32 %v1214_v62, %v5544_v7  ;;  %v1241_v5 = vmax.f32 %v1240_v20, %v5552_v6 }
 0x2c4   : > { %v5562_v13 = vpop.eup %4125  ;;  %v1203_v12 = vmax.f32 %v1202_v60, %v5556_v63  ;;  %v5568_v59 = vadd.f32 %v5374_v52, %v6368_v23  ;;  %v5572_v45 = vadd.f32 %v5382_v48, %v6370_v33  ;;  %v1453_v4 = vadd.f32 %v1452_v32, %v1451_v55  ;;  %v2107_v48 = vld [vmem:[%s6254_s6] sm:$0xff] }
 0x2c5   : > { %6386 = vst [vmem:[#allocation42_spill] sm:$0xff] %v5562_v13  ;;  %v5574_v21 = vpop.eup %4127  ;;  %v1475_v37 = vadd.f32 %v1474_v42, %v1473_v44  ;;  %v1458_v62 = vadd.f32 %v5526_v38, %v1457_v51  ;;  %v1480_v31 = vadd.f32 %v5562_v13, %v5558_v3  ;;  %v5585_v33 = vadd.f32 %v5384_v2, %v6372_v58 }
 0x2c6   : > { %6387 = vst [vmem:[#allocation43_spill] sm:$0xff] %v5574_v21  ;;  %v5579_v20 = vpop.eup %4129  ;;  %v1204_v60 = vrot.slane %v1203_v12, 4  ;;  %v1229_v39 = vmax.f32 %v1228_v19, %v5568_v59  ;;  %v1216_v52 = vmax.f32 %v1215_v50, %v5572_v45  ;;  %4139 = vrcp.f32 %v1453_v4 }
 0x2c7   : > { %6388 = vst [vmem:[#allocation44_spill] sm:$0xff] %v5579_v20  ;;  %v5590_v23 = vpop.eup %4131  ;;  %v1476_v55 = vrot.slane %v1475_v37, 2  ;;  %v1459_v44 = vadd.f32 %v5538_v57, %v1458_v62  ;;  %v1481_v32 = vadd.f32 %v5574_v21, %v1480_v31  ;;  %v1242_v2 = vmax.f32 %v1241_v5, %v5585_v33 }
 0x2c8   : > { %v5594_v42 = vpop.eup %4133  ;;  %v1205_v19 = vmax.f32 %v1203_v12, %v1204_v60  ;;  %v1230_v50 = vrot.slane %v1229_v39, 4  ;;  %v1217_v51 = vrot.slane %v1216_v52, 4  ;;  %v3418_v4 = vcombine.high %v2107_v48, %v2107_v48 }
 0x2c9   : > { %v5597_v58 = vpop.eup %4135  ;;  %v1477_v38 = vadd.f32 %v1476_v55, %v1475_v37  ;;  %v1460_v1 = vadd.f32 %v5546_v11, %v1459_v44  ;;  %v1482_v43 = vadd.f32 %v5579_v20, %v1481_v32  ;;  %v1243_v21 = vrot.slane %v1242_v2, 4 }
 0x2ca   : > { %v5601_v47 = vpop.eup %4137  ;;  %v1206_v62 = vrot.slane %v1205_v19, 2  ;;  %v1231_v57 = vmax.f32 %v1229_v39, %v1230_v50  ;;  %v1218_v31 = vmax.f32 %v1216_v52, %v1217_v51  ;;  %3421 = vmatprep.subr.msk.bf16.mxu1 %vm2144_vm0, %v3418_v4  ;;  %v3417_v11 = vcombine.low %v2107_v48, %v2107_v48 }
 0x2cb   : > { %6389 = vst [vmem:[#allocation45_spill] sm:$0xff] %v5601_v47  ;;  %v1478_v0 = vrot.slane %v1477_v38, 1  ;;  %v1461_v12 = vrot.slane %v1460_v1, 4  ;;  %v1483_v60 = vadd.f32 %v5590_v23, %v1482_v43  ;;  %v1244_v37 = vmax.f32 %v1242_v2, %v1243_v21  ;;  %v5609_v43 = vld [vmem:[%s6254_s6 + $0x8] sm:$0xff] }
 0x2cc   : > { %v1207_v5 = vmax.f32 %v1205_v19, %v1206_v62  ;;  %v1232_v16 = vrot.slane %v1231_v57, 2  ;;  %v1219_v13 = vrot.slane %v1218_v31, 2  ;;  %v5613_v51 = vsel %vm2144_vm0, %v3417_v11, 0 }
 0x2cd   : > { %v1479_v55 = vadd.f32 %v1478_v0, %v1477_v38  ;;  %v1462_v44 = vadd.f32 %v1461_v12, %v1460_v1  ;;  %v1484_v32 = vadd.f32 %v5594_v42, %v1483_v60  ;;  %v1245_v50 = vrot.slane %v1244_v37, 2 }
 0x2ce   : > { %v1208_v20 = vrot.slane %v1207_v5, 1  ;;  %v1233_v39 = vmax.f32 %v1231_v57, %v1232_v16  ;;  %v1220_v52 = vmax.f32 %v1218_v31, %v1219_v13  ;;  %v3420_v2 = vcombine.high %v5609_v43, %v5609_v43 }
 0x2cf   : > { %4141 = vrcp.f32 %v1479_v55  ;;  %v1463_v19 = vrot.slane %v1462_v44, 2  ;;  %v1485_v21 = vadd.f32 %v5597_v58, %v1484_v32  ;;  %v5615_v48 = vmax.f32 %v1244_v37, %v1245_v50 }
 0x2d0   : > { %v1209_v0 = vmax.f32 %v1207_v5, %v1208_v20  ;;  %v1234_v1 = vrot.slane %v1233_v39, 1  ;;  %v1221_v38 = vrot.slane %v1220_v52, 1  ;;  %v5617_v16 = vpop.eup %4139  ;;  %3430 = vmatprep.subr.msk.bf16.mxu0 %vm2144_vm0, %v3420_v2 }
 0x2d1   : > { %v1464_v13 = vadd.f32 %v1463_v19, %v1462_v44  ;;  %v1486_v57 = vadd.f32 %v5601_v47, %v1485_v21 }
 0x2d2   : > { %v1281_v62 = vsub.f32 %v5233_v24, %v1209_v0  ;;  %v1285_v11 = vsub.f32 %v5245_v53, %v1209_v0  ;;  %v1289_v20 = vsub.f32 %v5265_v17, %v1209_v0  ;;  %v1293_v31 = vsub.f32 %v5425_v34, %v1209_v0 }
 0x2d3   : > { %v1465_v12 = vrot.slane %v1464_v13, 1  ;;  %v1487_v60 = vrot.slane %v1486_v57, 4  ;;  %v1297_v5 = vsub.f32 %v5461_v14, %v1209_v0  ;;  %v1301_v37 = vsub.f32 %v5493_v8, %v1209_v0 }
 0x2d4   : > { %v1305_v55 = vsub.f32 %v5532_v27, %v1209_v0  ;;  %v1309_v44 = vsub.f32 %v5556_v63, %v1209_v0  ;;  %v1377_v32 = vmul.f32 1.442695, %v1281_v62  ;;  %v1385_v24 = vmul.f32 1.442695, %v1285_v11 }
 0x2d5   : > { %v1466_v50 = vadd.f32 %v1465_v12, %v1464_v13  ;;  %v1488_v53 = vadd.f32 %v1487_v60, %v1486_v57  ;;  %v1393_v19 = vmul.f32 1.442695, %v1289_v20  ;;  %v1401_v17 = vmul.f32 1.442695, %v1293_v31 }
 0x2d6   : > { %4143 = vpow2.f32 %v1377_v32  ;;  %v1409_v34 = vmul.f32 1.442695, %v1297_v5  ;;  %v1417_v21 = vmul.f32 1.442695, %v1301_v37  ;;  %v1425_v4 = vmul.f32 1.442695, %v1305_v55 }
 0x2d7   : > { %4145 = vrcp.f32 %v1466_v50  ;;  %v1489_v14 = vrot.slane %v1488_v53, 2  ;;  %v1433_v47 = vmul.f32 1.442695, %v1309_v44  ;;  %v1235_v8 = vmax.f32 %v1233_v39, %v1234_v1 }
 0x2d8   : > { %4147 = vpow2.f32 %v1385_v24  ;;  %v1222_v2 = vmax.f32 %v1220_v52, %v1221_v38  ;;  %v1247_v27 = vrot.slane %v5615_v48, 1  ;;  %v5636_v63 = vmul.f32 %v5617_v16, %v5340_v46 }
 0x2d9   : > { %v5638_v0 = vpop.eup %4141  ;;  %v1490_v13 = vadd.f32 %v1489_v14, %v1488_v53  ;;  %4149 = vpow2.f32 %v1393_v19  ;;  %v1283_v57 = vsub.f32 %v5236_v25, %v1235_v8  ;;  %v1287_v62 = vsub.f32 %v5248_v54, %v1235_v8 }
 0x2da   : > { %4151 = vpow2.f32 %v1401_v17  ;;  %v1291_v11 = vsub.f32 %v5268_v30, %v1235_v8  ;;  %v1295_v39 = vsub.f32 %v5431_v56, %v1235_v8  ;;  %v1299_v52 = vsub.f32 %v5468_v26, %v1235_v8 }
 0x2db   : > { %v1491_v1 = vrot.slane %v1490_v13, 1  ;;  %4153 = vpow2.f32 %v1409_v34  ;;  %v1303_v46 = vsub.f32 %v5499_v35, %v1235_v8  ;;  %v1307_v38 = vsub.f32 %v5536_v49, %v1235_v8 }
 0x2dc   : > { %4155 = vpow2.f32 %v1417_v21  ;;  %v1311_v20 = vsub.f32 %v5568_v59, %v1235_v8  ;;  %v1381_v31 = vmul.f32 1.442695, %v1283_v57  ;;  %v1389_v25 = vmul.f32 1.442695, %v1287_v62  ;;  %v6390_v59 = vld [vmem:[#allocation23_spill] sm:$0xff] }
 0x2dd   : > { %v1492_v12 = vadd.f32 %v1491_v1, %v1490_v13  ;;  %4157 = vpow2.f32 %v1425_v4  ;;  %v1397_v54 = vmul.f32 1.442695, %v1291_v11  ;;  %v1405_v60 = vmul.f32 1.442695, %v1295_v39  ;;  %v6391_v11 = vld [vmem:[#allocation28_spill] sm:$0xff] }
 0x2de   : > { %4159 = vpow2.f32 %v1433_v47  ;;  %v1413_v30 = vmul.f32 1.442695, %v1299_v52  ;;  %v1421_v56 = vmul.f32 1.442695, %v1303_v46  ;;  %v1429_v5 = vmul.f32 1.442695, %v1307_v38 }
 0x2df   : > { %4161 = vrcp.f32 %v1492_v12  ;;  %v1437_v26 = vmul.f32 1.442695, %v1311_v20  ;;  %v1282_v37 = vsub.f32 %v5239_v36, %v1222_v2  ;;  %v1286_v35 = vsub.f32 %v5251_v9, %v1222_v2  ;;  %v6393_v46 = vld [vmem:[#allocation22_spill] sm:$0xff] }
 0x2e0   : > { %v5650_v49 = vpop.eup %4143  ;;  %4163 = vpow2.f32 %v1381_v31  ;;  %v1290_v55 = vsub.f32 %v6390_v59, %v1222_v2  ;;  %v1294_v44 = vsub.f32 %v5435_v29, %v1222_v2  ;;  %v1298_v4 = vsub.f32 %v5472_v41, %v1222_v2 }
 0x2e1   : > { %v5655_v32 = vpop.eup %4145  ;;  %4165 = vpow2.f32 %v1389_v25  ;;  %v1302_v47 = vsub.f32 %v5503_v10, %v1222_v2  ;;  %v1306_v24 = vsub.f32 %v5544_v7, %v1222_v2  ;;  %v1310_v36 = vsub.f32 %v5572_v45, %v1222_v2 }
 0x2e2   : > { %v5660_v50 = vpop.eup %4147  ;;  %4167 = vpow2.f32 %v1397_v54  ;;  %v1379_v9 = vmul.f32 1.442695, %v1282_v37  ;;  %v1387_v53 = vmul.f32 1.442695, %v1286_v35  ;;  %v1395_v19 = vmul.f32 1.442695, %v1290_v55 }
 0x2e3   : > { %v5662_v17 = vpop.eup %4149  ;;  %v1493_v29 = vadd.f32 %v5660_v50, %v5650_v49  ;;  %4169 = vpow2.f32 %v1405_v60  ;;  %v1403_v41 = vmul.f32 1.442695, %v1294_v44  ;;  %v1411_v34 = vmul.f32 1.442695, %v1298_v4 }
 0x2e4   : > { %v5666_v21 = vpop.eup %4151  ;;  %4171 = vpow2.f32 %v1413_v30  ;;  %v1419_v10 = vmul.f32 1.442695, %v1302_v47  ;;  %v1427_v7 = vmul.f32 1.442695, %v1306_v24  ;;  %v1435_v45 = vmul.f32 1.442695, %v1310_v36 }
 0x2e5   : > { %v5668_v14 = vpop.eup %4153  ;;  %v1494_v8 = vadd.f32 %v5662_v17, %v1493_v29  ;;  %4173 = vpow2.f32 %v1421_v56  ;;  %v1248_v2 = vmax.f32 %v5615_v48, %v1247_v27  ;;  %v5674_v13 = vmul.f32 %v5655_v32, %v5488_v15  ;;  %v6392_v27 = vld [vmem:[#allocation21_spill] sm:$0xff] }
 0x2e6   : > { %v5676_v57 = vpop.eup %4155  ;;  %4175 = vpow2.f32 %v1429_v5  ;;  %v5680_v62 = vmul.f32 %v5655_v32, %v5495_v28  ;;  %v5684_v39 = vmul.f32 %v5617_v16, %v6391_v11  ;;  %v5688_v52 = vmul.f32 %v5638_v0, %v5416_v22  ;;  %v6394_v28 = vld [vmem:[#allocation24_spill] sm:$0xff] }
 0x2e7   : > { %v5690_v48 = vpop.eup %4157  ;;  %v1495_v15 = vadd.f32 %v5666_v21, %v1494_v8  ;;  %4177 = vpow2.f32 %v1437_v26  ;;  %v1284_v1 = vsub.f32 %v6392_v27, %v1248_v2  ;;  %v1288_v38 = vsub.f32 %v6393_v46, %v1248_v2 }
 0x2e8   : > { %v5695_v20 = vpop.eup %4159  ;;  %4179 = vpow2.f32 %v1379_v9  ;;  %v1292_v31 = vsub.f32 %v6394_v28, %v1248_v2  ;;  %v1296_v25 = vsub.f32 %v5439_v40, %v1248_v2  ;;  %v1300_v12 = vsub.f32 %v5476_v18, %v1248_v2 }
 0x2e9   : > { %v5700_v22 = vpop.eup %4161  ;;  %v1496_v54 = vadd.f32 %v5668_v14, %v1495_v15  ;;  %4181 = vpow2.f32 %v1387_v53  ;;  %v1304_v60 = vsub.f32 %v5507_v61, %v1248_v2  ;;  %v1308_v30 = vsub.f32 %v5552_v6, %v1248_v2  ;;  %v6397_v15 = vld [vmem:[#allocation36_spill] sm:$0xff] }
 0x2ea   : > { %v5705_v56 = vpop.eup %4163  ;;  %4183 = vpow2.f32 %v1395_v19  ;;  %v1312_v5 = vsub.f32 %v5585_v33, %v1248_v2  ;;  %v1383_v26 = vmul.f32 1.442695, %v1284_v1  ;;  %v1391_v37 = vmul.f32 1.442695, %v1288_v38  ;;  %v6399_v38 = vld [vmem:[#allocation37_spill] sm:$0xff] }
 0x2eb   : > { %v5708_v35 = vpop.eup %4165  ;;  %v1497_v40 = vadd.f32 %v5676_v57, %v1496_v54  ;;  %4185 = vpow2.f32 %v1403_v41  ;;  %v1399_v18 = vmul.f32 1.442695, %v1292_v31  ;;  %v1407_v59 = vmul.f32 1.442695, %v1296_v25  ;;  %v6401_v54 = vld [vmem:[#allocation43_spill] sm:$0xff] }
 0x2ec   : > { %v5711_v55 = vpop.eup %4167  ;;  %v1519_v61 = vadd.f32 %v5708_v35, %v5705_v56  ;;  %4187 = vpow2.f32 %v1411_v34  ;;  %v1415_v6 = vmul.f32 1.442695, %v1300_v12  ;;  %v1423_v44 = vmul.f32 1.442695, %v1304_v60  ;;  %v6395_v34 = vld [vmem:[#allocation42_spill] sm:$0xff] }
 0x2ed   : > { %v5715_v4 = vpop.eup %4169  ;;  %v1498_v33 = vadd.f32 %v5690_v48, %v1497_v40  ;;  %4189 = vpow2.f32 %v1419_v10  ;;  %v1431_v47 = vmul.f32 1.442695, %v1308_v30  ;;  %v1439_v24 = vmul.f32 1.442695, %v1312_v5 }
 0x2ee   : > { %v5718_v36 = vpop.eup %4171  ;;  %v1520_v9 = vadd.f32 %v5711_v55, %v1519_v61  ;;  %4191 = vpow2.f32 %v1427_v7  ;;  %v1618_v53 = vpack.c.bf16 %v5680_v62, %v5674_v13  ;;  %v5725_v19 = vmul.f32 %v5700_v22, %v5558_v3  ;;  %v6396_v3 = vld [vmem:[#allocation35_spill] sm:$0xff] }
 0x2ef   : > { %v5727_v29 = vpop.eup %4173  ;;  %v1499_v41 = vadd.f32 %v5695_v20, %v1498_v33  ;;  %4193 = vpow2.f32 %v1435_v45  ;;  %v5732_v10 = vmul.f32 %v5700_v22, %v6395_v34  ;;  %v1617_v8 = vpack.c.bf16 %v5684_v39, %v5636_v63  ;;  %v6407_v34 = vld [vmem:[#allocation30_spill] sm:$0xff] }
 0x2f0   : > { %v5736_v7 = vpop.eup %4175  ;;  %v1521_v2 = vadd.f32 %v5715_v4, %v1520_v9  ;;  %4195 = vpow2.f32 %v1383_v26  ;;  %1937 = vmatprep.mubr.bf16.mxu1 %v1618_v53  ;;  %v5741_v11 = vmul.f32 %v5638_v0, %v6396_v3  ;;  %v5745_v45 = vmul.f32 %v5655_v32, %v6397_v15  ;;  %v6409_v15 = vld [vmem:[#allocation18_spill] sm:$0xff] }
 0x2f1   : > { %v5747_v27 = vpop.eup %4177  ;;  %v1500_v1 = vrot.slane %v1499_v41, 4  ;;  %4197 = vpow2.f32 %v1391_v37  ;;  %v1620_v46 = vpack.c.bf16 %v5732_v10, %v5725_v19  ;;  %1938 = vmatmul.mubr.bf16.vlgmr.msra.gmra.mrb[32].mxu1 %v1617_v8  ;;  %v5753_v28 = vmul.f32 %v5655_v32, %v6399_v38  ;;  %v6403_v37 = vld [vmem:[#allocation44_spill] sm:$0xff] }
 0x2f2   : > { %6398 = vst [vmem:[#allocation23_spill] sm:$0xff] %v5745_v45  ;;  %v5755_v31 = vpop.eup %4179  ;;  %v1522_v25 = vadd.f32 %v5718_v36, %v1521_v2  ;;  %4199 = vpow2.f32 %v1399_v18  ;;  %v1619_v12 = vpack.c.bf16 %v5741_v11, %v5688_v52  ;;  %v5762_v60 = vmul.f32 %v5700_v22, %v6401_v54  ;;  %2158 = vmatpush1.bf16.msra.mxu1 %v5613_v51  ;;  %v6405_v51 = vld [vmem:[#allocation29_spill] sm:$0xff] }
 0x2f3   : > { %6400 = vst [vmem:[#allocation28_spill] sm:$0xff] %v5753_v28  ;;  %v5765_v30 = vpop.eup %4181  ;;  %v1501_v5 = vadd.f32 %v1500_v1, %v1499_v41  ;;  %4201 = vpow2.f32 %v1407_v59  ;;  %2034 = vmatprep.mubr.bf16.mxu0 %v1620_v46  ;;  %v1622_v26 = vpack.c.bf16 %v5753_v28, %v5745_v45  ;;  %v5771_v40 = vmul.f32 %v5700_v22, %v6403_v37  ;;  %v6413_v37 = vld [vmem:[#allocation38_spill] sm:$0xff] }
 0x2f4   : > { %6402 = vst [vmem:[#allocation21_spill] sm:$0xff] %v5762_v60  ;;  %v5773_v18 = vpop.eup %4183  ;;  %v1523_v61 = vadd.f32 %v5727_v29, %v1522_v25  ;;  %v1506_v33 = vadd.f32 %v5765_v30, %v5755_v31  ;;  %4203 = vpow2.f32 %v1415_v6  ;;  %2035 = vmatmul.mubr.bf16.vlgmr.msra.gmra.mrb[48].mxu0 %v1619_v12  ;;  %v5780_v59 = vmul.f32 %v5617_v16, %v6405_v51  ;;  %v6411_v25 = vld [vmem:[#allocation25_spill] sm:$0xff] }
 0x2f5   : > { %6404 = vst [vmem:[#allocation22_spill] sm:$0xff] %v5771_v40  ;;  %v5782_v9 = vpop.eup %4185  ;;  %v1502_v53 = vrot.slane %v1501_v5, 2  ;;  %4205 = vpow2.f32 %v1423_v44  ;;  %1945 = vmatprep.mubr.bf16.mxu1 %v1622_v26  ;;  %v1624_v41 = vpack.c.bf16 %v5771_v40, %v5762_v60  ;;  %v5788_v8 = vmul.f32 %v5617_v16, %v6407_v34 }
 0x2f6   : > { %6406 = vst [vmem:[#allocation24_spill] sm:$0xff] %v5780_v59  ;;  %v5790_v2 = vpop.eup %4187  ;;  %v1524_v6 = vadd.f32 %v5736_v7, %v1523_v61  ;;  %v1507_v3 = vadd.f32 %v5773_v18, %v1506_v33  ;;  %4207 = vpow2.f32 %v1431_v47  ;;  %v5796_v1 = vmul.f32 %v5638_v0, %v6409_v15 }
 0x2f7   : > { %6408 = vst [vmem:[#allocation42_spill] sm:$0xff] %v5788_v8  ;;  %v5798_v44 = vpop.eup %4189  ;;  %v1503_v46 = vadd.f32 %v1502_v53, %v1501_v5  ;;  %4209 = vpow2.f32 %v1439_v24  ;;  %2042 = vmatprep.mubr.bf16.mxu0 %v1624_v41  ;;  %v1621_v38 = vpack.c.bf16 %v5788_v8, %v5780_v59  ;;  %v5804_v12 = vmul.f32 %v5638_v0, %v6411_v25  ;;  %v6415_v5 = vld [vmem:[#allocation39_spill] sm:$0xff] }
 0x2f8   : > { %6410 = vst [vmem:[#allocation35_spill] sm:$0xff] %v5796_v1  ;;  %v5806_v54 = vpop.eup %4191  ;;  %v1525_v47 = vadd.f32 %v5747_v27, %v1524_v6  ;;  %v1508_v26 = vadd.f32 %v5782_v9, %v1507_v3  ;;  %v5812_v61 = vmul.f32 %v5655_v32, %v6413_v37  ;;  %v5816_v24 = vmul.f32 %v5655_v32, %v6415_v5 }
 0x2f9   : > { %6412 = vst [vmem:[#allocation36_spill] sm:$0xff] %v5804_v12  ;;  %v5818_v33 = vpop.eup %4193  ;;  %v1504_v51 = vrot.slane %v1503_v46, 1  ;;  %1946 = vmatmul.mubr.bf16.gmra.mrb[36].mxu1 %v1621_v38  ;;  %v1623_v53 = vpack.c.bf16 %v5804_v12, %v5796_v1  ;;  %v5824_v41 = vmul.f32 %v5700_v22, %v5590_v23  ;;  %v5828_v34 = vmul.f32 %v5700_v22, %v5594_v42  ;;  %v6419_v38 = vld [vmem:[#allocation31_spill] sm:$0xff]  ;;  %v6421_v42 = vld [vmem:[#allocation32_spill] sm:$0xff] }
 0x2fa   : > { %6414 = vst [vmem:[#allocation37_spill] sm:$0xff] %v5812_v61  ;;  %6416 = vst [vmem:[#allocation43_spill] sm:$0xff] %v5816_v24  ;;  %v5830_v6 = vpop.eup %4195  ;;  %v1526_v3 = vrot.slane %v1525_v47, 4  ;;  %v1509_v15 = vadd.f32 %v5790_v2, %v1508_v26  ;;  %v1626_v25 = vpack.c.bf16 %v5816_v24, %v5812_v61  ;;  %v5837_v37 = vmul.f32 %v5617_v16, %v6419_v38  ;;  %v6423_v12 = vld [vmem:[#allocation19_spill] sm:$0xff] }
 0x2fb   : > { %6417 = vst [vmem:[#allocation44_spill] sm:$0xff] %v5824_v41  ;;  %6418 = vst [vmem:[#allocation29_spill] sm:$0xff] %v5828_v34  ;;  %v5839_v5 = vpop.eup %4197  ;;  %v1505_v23 = vadd.f32 %v1504_v51, %v1503_v46  ;;  %v1628_v40 = vpack.c.bf16 %v5828_v34, %v5824_v41  ;;  %v5845_v28 = vmul.f32 %v5617_v16, %v6421_v42  ;;  %v6435_v1 = vld [vmem:[#allocation27_spill] sm:$0xff] }
 0x2fc   : > { %6420 = vst [vmem:[#allocation30_spill] sm:$0xff] %v5837_v37  ;;  %v5849_v26 = vmul.f32 %v5638_v0, %v6423_v12  ;;  %v5851_v60 = vpop.eup %4199  ;;  %v1527_v24 = vadd.f32 %v1526_v3, %v1525_v47  ;;  %v1510_v38 = vadd.f32 %v5798_v44, %v1509_v15  ;;  %v1532_v61 = vadd.f32 %v5839_v5, %v5830_v6  ;;  %v6425_v12 = vld [vmem:[#allocation26_spill] sm:$0xff]  ;;  %v6427_v47 = vld [vmem:[#allocation40_spill] sm:$0xff] }
 0x2fd   : > { %6422 = vst [vmem:[#allocation18_spill] sm:$0xff] %v5845_v28  ;;  %2043 = vmatmul.mubr.bf16.gmra.mrb[52].mxu0 %v1623_v53  ;;  %1953 = vmatprep.mubr.bf16.mxu1 %v1626_v25  ;;  %v6424_v46 = vcombine.low %v5609_v43, %v5609_v43  ;;  %v5860_v42 = vpop.eup %4201  ;;  %4211 = vrcp.f32 %v1505_v23  ;;  %v5864_v34 = vmul.f32 %v5638_v0, %v6425_v12 }
 0x2fe   : > { %2050 = vmatprep.mubr.bf16.mxu0 %v1628_v40  ;;  %v5868_v3 = vmul.f32 %v5655_v32, %v6427_v47  ;;  %v5870_v53 = vpop.eup %4203  ;;  %v1528_v15 = vrot.slane %v1527_v24, 2  ;;  %v1511_v43 = vadd.f32 %v5806_v54, %v1510_v38  ;;  %v1533_v25 = vadd.f32 %v5851_v60, %v1532_v61  ;;  %v6432_v38 = vld [vmem:[#allocation33_spill] sm:$0xff] }
 0x2ff   : > { %v2152_v51 = vsel %vm2144_vm0, %v6424_v46, 0  ;;  %6426 = vst [vmem:[#allocation25_spill] sm:$0xff] %v5864_v34  ;;  %v6429_v46 = vld [vmem:[#allocation41_spill] sm:$0xff]  ;;  %v5878_v40 = vpop.eup %4205  ;;  %v1625_v12 = vpack.c.bf16 %v5845_v28, %v5837_v37  ;;  %v5884_v47 = vmul.f32 %v5700_v22, %v5597_v58  ;;  %v5892_v61 = vmul.f32 %v5617_v16, %v6432_v38  ;;  %v6433_v37 = vld [vmem:[#allocation34_spill] sm:$0xff] }
 0x300   : > { %6428 = vst [vmem:[#allocation38_spill] sm:$0xff] %v5868_v3  ;;  %2271 = vmatpush1.bf16.msra.mxu0 %v2152_v51  ;;  %v5876_v23 = vmul.f32 %v5655_v32, %v6429_v46  ;;  %v6431_v51 = vld [vmem:[#allocation45_spill] sm:$0xff]  ;;  %v5894_v8 = vpop.eup %4207  ;;  %v1529_v32 = vadd.f32 %v1528_v15, %v1527_v24  ;;  %v1512_v46 = vadd.f32 %v5818_v33, %v1511_v43 }
 0x301   : > { %v5888_v41 = vmul.f32 %v5700_v22, %v6431_v51  ;;  %v1534_v45 = vadd.f32 %v5860_v42, %v1533_v25  ;;  %v5900_v58 = vpop.eup %4209  ;;  %1954 = vmatmul.mubr.bf16.gmra.mrb[40].mxu1 %v1625_v12  ;;  %v5904_v22 = vmul.f32 %v5617_v16, %v6433_v37  ;;  %v6434_v51 = vld [vmem:[#allocation20_spill] sm:$0xff]  ;;  %v5912_v24 = vmul.f32 %v5638_v0, %v6435_v1 }
 0x302   : > { %6430 = vst [vmem:[#allocation39_spill] sm:$0xff] %v5876_v23  ;;  %v1630_v28 = vpack.c.bf16 %v5876_v23, %v5868_v3  ;;  %v5908_v38 = vmul.f32 %v5638_v0, %v6434_v51  ;;  %v1530_v15 = vrot.slane %v1529_v32, 1  ;;  %v1513_v43 = vrot.slane %v1512_v46, 4 }
 0x303   : > { %v1535_v25 = vadd.f32 %v5870_v53, %v1534_v45  ;;  %v1627_v23 = vpack.c.bf16 %v5864_v34, %v5849_v26  ;;  %v1632_v16 = vpack.c.bf16 %v5888_v41, %v5884_v47  ;;  %v1629_v45 = vpack.c.bf16 %v5904_v22, %v5892_v61 }
 0x304   : > { %1961 = vmatprep.mubr.bf16.mxu1 %v1630_v28  ;;  %v1531_v37 = vadd.f32 %v1530_v15, %v1529_v32  ;;  %v1514_v12 = vadd.f32 %v1513_v43, %v1512_v46 }
 0x305   : > { %v1536_v51 = vadd.f32 %v5878_v40, %v1535_v25  ;;  %2051 = vmatmul.mubr.bf16.gmra.mrb[56].mxu0 %v1627_v23 }
 0x306   : > { %2058 = vmatprep.mubr.bf16.mxu0 %v1632_v16  ;;  %4213 = vrcp.f32 %v1531_v37  ;;  %v1515_v0 = vrot.slane %v1514_v12, 2 }
 0x307   : > { %v1537_v1 = vadd.f32 %v5894_v8, %v1536_v51  ;;  %v4212_v3 = vpop.eup %4211 }
 0x308   : > { %v1516_v59 = vadd.f32 %v1515_v0, %v1514_v12  ;;  %v5925_v34 = vmul.f32 %v4212_v3, %v5650_v49  ;;  %v5928_v32 = vmul.f32 %v4212_v3, %v5660_v50  ;;  %v5931_v23 = vmul.f32 %v4212_v3, %v5662_v17 }
 0x309   : > { %v1538_v28 = vadd.f32 %v5900_v58, %v1537_v1  ;;  %1962 = vmatmul.mubr.bf16.gmra.mrb[44].mxu1 %v1629_v45  ;;  %v5934_v46 = vmul.f32 %v4212_v3, %v5666_v21  ;;  %v5937_v15 = vmul.f32 %v4212_v3, %v5668_v14  ;;  %v5940_v43 = vmul.f32 %v4212_v3, %v5676_v57 }
 0x30a   : > { %v1517_v25 = vrot.slane %v1516_v59, 1  ;;  %v1631_v49 = vpack.c.bf16 %v5912_v24, %v5908_v38  ;;  %v5945_v50 = vmul.f32 %v4212_v3, %v5690_v48  ;;  %v5948_v17 = vmul.f32 %v4212_v3, %v5695_v20 }
 0x30b   : > { %v1539_v16 = vrot.slane %v1538_v28, 4 }
 0x30c   : > { %6436 = vst [vmem:[#allocation31_spill] sm:$0xff] %v5945_v50  ;;  %6437 = vst [vmem:[#allocation32_spill] sm:$0xff] %v5948_v17  ;;  %v1518_v37 = vadd.f32 %v1517_v25, %v1516_v59 }
 0x30d   : > { %v1540_v21 = vadd.f32 %v1539_v16, %v1538_v28  ;;  %2059 = vmatmul.mubr.bf16.gmra.mrb[60].mxu0 %v1631_v49 }
 0x30e   : > { %4215 = vrcp.f32 %v1518_v37 }
 0x30f   : > { %v1541_v14 = vrot.slane %v1540_v21, 2 }
 0x310   : > { %v4214_v12 = vpop.eup %4213 }
 0x311   : > { %v1542_v51 = vadd.f32 %v1541_v14, %v1540_v21  ;;  %v5951_v57 = vmul.f32 %v4214_v12, %v5705_v56  ;;  %v5954_v0 = vmul.f32 %v4214_v12, %v5708_v35  ;;  %v5957_v1 = vmul.f32 %v4214_v12, %v5711_v55 }
 0x312   : > { %v5960_v48 = vmul.f32 %v4214_v12, %v5715_v4  ;;  %v5963_v59 = vmul.f32 %v4214_v12, %v5718_v36  ;;  %v5966_v3 = vmul.f32 %v4214_v12, %v5727_v29  ;;  %v5969_v45 = vmul.f32 %v4214_v12, %v5736_v7 }
 0x313   : > { %v1543_v20 = vrot.slane %v1542_v51, 1  ;;  %v5972_v56 = vmul.f32 %v4214_v12, %v5747_v27 }
 0x314   : > { %6438 = vst [vmem:[#allocation19_spill] sm:$0xff] %v5969_v45 }
 0x315   : > { %6439 = vst [vmem:[#allocation26_spill] sm:$0xff] %v5972_v56  ;;  %v1544_v35 = vadd.f32 %v1543_v20, %v1542_v51  ;;  %v1643_v51 = vpack.c.bf16 %v5966_v3, %v5963_v59  ;;  %v1645_v20 = vpack.c.bf16 %v5948_v17, %v5945_v50  ;;  %v4039_v50 = vld [vmem:[#allocation8 + $0x48] sm:$0xff]  }
 0x317   : > { %4217 = vrcp.f32 %v1544_v35 }
 0x318   : > { %v4216_v55 = vpop.eup %4215 }
 0x319   : > { %v5975_v28 = vmul.f32 %v4216_v55, %v5755_v31  ;;  %v5978_v4 = vmul.f32 %v4216_v55, %v5765_v30  ;;  %v5981_v36 = vmul.f32 %v4216_v55, %v5773_v18  ;;  %v5984_v29 = vmul.f32 %v4216_v55, %v5782_v9 }
 0x31a   : > { %v5987_v7 = vmul.f32 %v4216_v55, %v5790_v2  ;;  %v5990_v27 = vmul.f32 %v4216_v55, %v5798_v44  ;;  %v5993_v25 = vmul.f32 %v4216_v55, %v5806_v54  ;;  %v5996_v31 = vmul.f32 %v4216_v55, %v5818_v33 }
 0x31b   : > { %v1634_v30 = vpack.c.bf16 %v5978_v4, %v5975_v28  ;;  %v1633_v18 = vpack.c.bf16 %v5928_v32, %v5925_v34  ;;  %v1638_v9 = vpack.c.bf16 %v5984_v29, %v5981_v36  ;;  %v6444_v55 = vmov 0  }
 0x31c   : > { %6440 = vst [vmem:[#allocation40_spill] sm:$0xff] %v5993_v25  ;;  %6441 = vst [vmem:[#allocation41_spill] sm:$0xff] %v5996_v31  ;;  %v1646_v12 = vpack.c.bf16 %v5996_v31, %v5993_v25 }
 0x31d   : > { %1969 = vmatprep.mubr.bf16.mxu1 %v1634_v30  ;;  %v1647_v30 = vpack.c.bf16 %v5972_v56, %v5969_v45 }
 0x31e   : > { %1970 = vmatmul.mubr.bf16.gmra.mrb[48].mxu1 %v1633_v18  ;;  %v4035_v18 = vld [vmem:[#allocation8 + $0x40] sm:$0xff]  }
 0x31f   : > { %1977 = vmatprep.mubr.bf16.mxu1 %v1638_v9  ;;  %v4037_v9 = vld [vmem:[#allocation8 + $0xc0] sm:$0xff]   ;;  %3635 = vmatprep.subr.bf16.mxu1 %v4035_v18 }
 0x320   : > { %3699 = vmatprep.subr.bf16.mxu0 %v4037_v9 }
 0x321   : > { %v4218_v2 = vpop.eup %4217 }
 0x322   : > { %v6005_v44 = vmul.f32 %v4218_v2, %v5830_v6  ;;  %v6008_v54 = vmul.f32 %v4218_v2, %v5839_v5  ;;  %v6011_v33 = vmul.f32 %v4218_v2, %v5851_v60  ;;  %v6014_v16 = vmul.f32 %v4218_v2, %v5860_v42 }
 0x323   : > { %v6017_v49 = vmul.f32 %v4218_v2, %v5870_v53  ;;  %v6020_v37 = vmul.f32 %v4218_v2, %v5878_v40  ;;  %v6023_v21 = vmul.f32 %v4218_v2, %v5894_v8  ;;  %v6026_v6 = vmul.f32 %v4218_v2, %v5900_v58 }
 0x324   : > { %v1636_v5 = vpack.c.bf16 %v6008_v54, %v6005_v44  ;;  %v1635_v60 = vpack.c.bf16 %v5954_v0, %v5951_v57  ;;  %v1637_v42 = vpack.c.bf16 %v5934_v46, %v5931_v23  ;;  %v1640_v53 = vpack.c.bf16 %v6014_v16, %v6011_v33 }
 0x325   : > { %6442 = vst [vmem:[#allocation45_spill] sm:$0xff] %v6023_v21  ;;  %6443 = vst [vmem:[#allocation33_spill] sm:$0xff] %v6026_v6  ;;  %v1642_v8 = vpack.c.bf16 %v5990_v27, %v5987_v7  ;;  %v1639_v40 = vpack.c.bf16 %v5960_v48, %v5957_v1  ;;  %v1641_v58 = vpack.c.bf16 %v5940_v43, %v5937_v15 }
 0x326   : > { %2066 = vmatprep.mubr.bf16.mxu0 %v1636_v5  ;;  %1978 = vmatmul.mubr.bf16.gmra.mrb[52].mxu1 %v1637_v42  ;;  %v1644_v14 = vpack.c.bf16 %v6020_v37, %v6017_v49  ;;  %v1648_v35 = vpack.c.bf16 %v6026_v6, %v6023_v21 }
 0x327   : > { %2067 = vmatmul.mubr.bf16.gmra.mrb[64].mxu0 %v1635_v60  ;;  %1985 = vmatprep.mubr.bf16.mxu1 %v1642_v8 }
 0x328   : > { %2074 = vmatprep.mubr.bf16.mxu0 %v1640_v53 }
 0x32e   : > { %1986 = vmatmul.mubr.bf16.gmra.mrb[56].mxu1 %v1641_v58 }
 0x32f   : > { %2075 = vmatmul.mubr.bf16.gmra.mrb[68].mxu0 %v1639_v40  ;;  %1993 = vmatprep.mubr.bf16.mxu1 %v1646_v12 }
 0x330   : > { %2082 = vmatprep.mubr.bf16.mxu0 %v1644_v14 }
 0x336   : > { %1994 = vmatmul.mubr.bf16.gmra.mrb[60].mxu1 %v1645_v20 }
 0x337   : > { %2083 = vmatmul.mubr.bf16.gmra.mrb[72].mxu0 %v1643_v51  ;;  %2189 = vmatprep.mubr.bf16.mxu1 %v6444_v55 }
 0x338   : > { %2090 = vmatprep.mubr.bf16.mxu0 %v1648_v35 }
 0x33f   : > { %2091 = vmatmul.mubr.bf16.gmra.mrb[76].mxu0 %v1647_v30 }
 0x340   : > { %2302 = vmatprep.mubr.bf16.mxu0 %v6444_v55 }
 0x3c4   : > { %v3523_v2 = vpop.f32.mrb[32].mxu1 }
 0x3c5   : > { %v3524_v5 = vpop.f32.mrb[33].mxu1 }
 0x3c6   : > { %v3525_v60 = vadd.f32 %v3524_v5, %v3523_v2  ;;  %v3526_v42 = vpop.f32.mrb[34].mxu1  ;;  %v4036_v2 = vld [vmem:[#allocation8] sm:$0xff]  }
 0x3c7   : > { %v3587_v53 = vpop.f32.mrb[48].mxu0  ;;  %v3527_v8 = vpop.f32.mrb[35].mxu1  ;;  %v4038_v5 = vld [vmem:[#allocation8 + $0x80] sm:$0xff]  }
 0x3c8   : > { %v3588_v40 = vpop.f32.mrb[49].mxu0  ;;  %v3528_v58 = vadd.f32 %v3527_v8, %v3526_v42  ;;  %v4041_v42 = vld [vmem:[#allocation8 + $0xc8] sm:$0xff]  }
 0x3c9   : > { %v3589_v14 = vadd.f32 %v3588_v40, %v3587_v53  ;;  %v3590_v12 = vpop.f32.mrb[50].mxu0  ;;  %v4040_v40 = vld [vmem:[#allocation8 + $0x8] sm:$0xff]  }
 0x3ca   : > { %v3591_v51 = vpop.f32.mrb[51].mxu0 }
 0x3cb   : > { %v2037_v20 = vadd.f32 %v3589_v14, %v3525_v60  ;;  %v3592_v35 = vadd.f32 %v3591_v51, %v3590_v12 }
 0x3cc   : > { %v3529_v30 = vpop.f32.mrb[36].mxu1 }
 0x3cd   : > { %v2040_v6 = vadd.f32 %v3592_v35, %v3528_v58  ;;  %v3530_v21 = vpop.f32.mrb[37].mxu1  ;;  %v4042_v58 = vld [vmem:[#allocation8 + $0x88] sm:$0xff]  }
 0x3ce   : > { %v3531_v31 = vadd.f32 %v3530_v21, %v3529_v30  ;;  %v3532_v25 = vpop.f32.mrb[38].mxu1 }
 0x3cf   : > { %v2099_v18 = vpack.c.bf16 %v2040_v6, %v2037_v20  ;;  %v3533_v56 = vpop.f32.mrb[39].mxu1 }
 0x3d0   : > { %v3593_v9 = vpop.f32.mrb[52].mxu0  ;;  %v3534_v17 = vadd.f32 %v3533_v56, %v3532_v25  ;;  %v4045_v25 = vld [vmem:[#allocation8 + $0xd0] sm:$0xff]  }
 0x3d1   : > { %v3594_v45 = vpop.f32.mrb[53].mxu0  ;;  %3422 = vmatmul.mubr.msk.bf16.vlgmr.msra.gmra.mrb[64].mxu1 %vm2119_vm1, %v2099_v18  ;;  %3431 = vmatmul.mubr.msk.bf16.vlgmr.msra.gmra.mrb[80].mxu0 %vm2119_vm1, %v2099_v18 }
 0x3d2   : > { %v3595_v53 = vadd.f32 %v3594_v45, %v3593_v9  ;;  %v3596_v8 = vpop.f32.mrb[54].mxu0  ;;  %2199 = vmatprep.mubr.bf16.mxu1 %v6444_v55  ;;  %2312 = vmatprep.mubr.bf16.mxu0 %v6444_v55  ;;  %v4043_v45 = vld [vmem:[#allocation8 + $0x50] sm:$0xff]  }
 0x3d3   : > { %v3597_v60 = vpop.f32.mrb[55].mxu0  ;;  %3636 = vmatpush3.bf16.msra.mxu1 %v4036_v2  ;;  %3700 = vmatpush3.bf16.msra.mxu0 %v4038_v5  ;;  %v4046_v9 = vld [vmem:[#allocation8 + $0x90] sm:$0xff]  }
 0x3d4   : > { %v2045_v21 = vadd.f32 %v3595_v53, %v3531_v31  ;;  %v3598_v6 = vadd.f32 %v3597_v60, %v3596_v8  ;;  %v3535_v56 = vpop.f32.mrb[40].mxu1  ;;  %3637 = vmatprep.subr.bf16.mxu1 %v4039_v50  ;;  %3701 = vmatprep.subr.bf16.mxu0 %v4041_v42  ;;  %v4044_v31 = vld [vmem:[#allocation8 + $0x10] sm:$0xff]   ;;  %v4047_v53 = vld [vmem:[#allocation8 + $0x58] sm:$0xff]  }
 0x3d5   : > { %v3536_v12 = vpop.f32.mrb[41].mxu1  ;;  %v4049_v50 = vld [vmem:[#allocation8 + $0xd8] sm:$0xff]  }
 0x3d6   : > { %v2048_v14 = vadd.f32 %v3598_v6, %v3534_v17  ;;  %v3537_v51 = vadd.f32 %v3536_v12, %v3535_v56  ;;  %v3538_v20 = vpop.f32.mrb[42].mxu1  ;;  %v4048_v6 = vld [vmem:[#allocation8 + $0x18] sm:$0xff]   ;;  %v4051_v56 = vld [vmem:[#allocation8 + $0x60] sm:$0xff]  }
 0x3d7   : > { %v3539_v18 = vpop.f32.mrb[43].mxu1  ;;  %3638 = vmatpush3.bf16.msra.mxu1 %v4040_v40  ;;  %3702 = vmatpush3.bf16.msra.mxu0 %v4042_v58  ;;  %v4050_v40 = vld [vmem:[#allocation8 + $0x98] sm:$0xff]  }
 0x3d8   : > { %v2100_v35 = vpack.c.bf16 %v2048_v14, %v2045_v21  ;;  %v3599_v30 = vpop.f32.mrb[56].mxu0  ;;  %v3540_v5 = vadd.f32 %v3539_v18, %v3538_v20  ;;  %3639 = vmatprep.subr.bf16.mxu1 %v4043_v45  ;;  %3703 = vmatprep.subr.bf16.mxu0 %v4045_v25  ;;  %v4053_v45 = vld [vmem:[#allocation8 + $0xe0] sm:$0xff]  }
 0x3d9   : > { %v3600_v2 = vpop.f32.mrb[57].mxu0 }
 0x3da   : > { %v3601_v42 = vadd.f32 %v3600_v2, %v3599_v30  ;;  %v3602_v8 = vpop.f32.mrb[58].mxu0  ;;  %3423 = vmatmul.mubr.msk.bf16.gmra.mrb[68].mxu1 %vm2119_vm1, %v2100_v35  ;;  %3432 = vmatmul.mubr.msk.bf16.gmra.mrb[84].mxu0 %vm2119_vm1, %v2100_v35  ;;  %v4054_v2 = vld [vmem:[#allocation8 + $0xa0] sm:$0xff]  }
 0x3db   : > { %v3603_v17 = vpop.f32.mrb[59].mxu0  ;;  %2209 = vmatprep.mubr.bf16.mxu1 %v6444_v55  ;;  %2322 = vmatprep.mubr.bf16.mxu0 %v6444_v55 }
 0x3dc   : > { %v2053_v60 = vadd.f32 %v3601_v42, %v3537_v51  ;;  %v3604_v21 = vadd.f32 %v3603_v17, %v3602_v8  ;;  %3640 = vmatpush3.bf16.msra.mxu1 %v4044_v31  ;;  %3704 = vmatpush3.bf16.msra.mxu0 %v4046_v9  ;;  %v3541_v58 = vpop.f32.mrb[44].mxu1  ;;  %v4052_v51 = vld [vmem:[#allocation8 + $0x20] sm:$0xff]   ;;  %v4055_v42 = vld [vmem:[#allocation8 + $0x68] sm:$0xff]  }
 0x3dd   : > { %3641 = vmatprep.subr.bf16.mxu1 %v4047_v53  ;;  %3705 = vmatprep.subr.bf16.mxu0 %v4049_v50  ;;  %v3542_v14 = vpop.f32.mrb[45].mxu1  ;;  %v4057_v53 = vld [vmem:[#allocation8 + $0xe8] sm:$0xff]  }
 0x3de   : > { %v2056_v25 = vadd.f32 %v3604_v21, %v3540_v5  ;;  %v3543_v12 = vadd.f32 %v3542_v14, %v3541_v58  ;;  %v3544_v20 = vpop.f32.mrb[46].mxu1  ;;  %v4056_v21 = vld [vmem:[#allocation8 + $0x28] sm:$0xff]  }
 0x3df   : > { %v3545_v18 = vpop.f32.mrb[47].mxu1 }
 0x3e0   : > { %v2101_v35 = vpack.c.bf16 %v2056_v25, %v2053_v60  ;;  %v3605_v30 = vpop.f32.mrb[60].mxu0  ;;  %3642 = vmatpush3.bf16.msra.mxu1 %v4048_v6  ;;  %3706 = vmatpush3.bf16.msra.mxu0 %v4050_v40  ;;  %v3546_v9 = vadd.f32 %v3545_v18, %v3544_v20 }
 0x3e1   : > { %v3606_v31 = vpop.f32.mrb[61].mxu0  ;;  %3643 = vmatprep.subr.bf16.mxu1 %v4051_v56  ;;  %3707 = vmatprep.subr.bf16.mxu0 %v4053_v45 }
 0x3e2   : > { %v3607_v50 = vadd.f32 %v3606_v31, %v3605_v30  ;;  %v3608_v8 = vpop.f32.mrb[62].mxu0  ;;  %3424 = vmatmul.mubr.msk.bf16.gmra.mrb[72].mxu1 %vm2119_vm1, %v2101_v35  ;;  %3433 = vmatmul.mubr.msk.bf16.gmra.mrb[88].mxu0 %vm2119_vm1, %v2101_v35 }
 0x3e3   : > { %v3609_v5 = vpop.f32.mrb[63].mxu0  ;;  %2219 = vmatprep.mubr.bf16.mxu1 %v6444_v55  ;;  %2332 = vmatprep.mubr.bf16.mxu0 %v6444_v55 }
 0x3e4   : > { %v2061_v17 = vadd.f32 %v3607_v50, %v3543_v12  ;;  %v3610_v60 = vadd.f32 %v3609_v5, %v3608_v8  ;;  %3644 = vmatpush3.bf16.msra.mxu1 %v4052_v51  ;;  %3708 = vmatpush3.bf16.msra.mxu0 %v4054_v2 }
 0x3e5   : > { %3645 = vmatprep.subr.bf16.mxu1 %v4055_v42  ;;  %3709 = vmatprep.subr.bf16.mxu0 %v4057_v53 }
 0x3e6   : > { %v2064_v6 = vadd.f32 %v3610_v60, %v3546_v9 }
 0x3e8   : > { %v2102_v40 = vpack.c.bf16 %v2064_v6, %v2061_v17  ;;  %3646 = vmatpush3.bf16.msra.mxu1 %v4056_v21 }
 0x3ea   : > { %3425 = vmatmul.mubr.msk.bf16.gmra.mrb[76].mxu1 %vm2119_vm1, %v2102_v40  ;;  %3434 = vmatmul.mubr.msk.bf16.gmra.mrb[92].mxu0 %vm2119_vm1, %v2102_v40 }
 0x3eb   : > { %2229 = vmatprep.mubr.bf16.mxu1 %v6444_v55  ;;  %2342 = vmatprep.mubr.bf16.mxu0 %v6444_v55 }
 0x3f1   : > { %v3547_v58 = vpop.f32.mrb[48].mxu1 }
 0x3f2   : > { %v3548_v56 = vpop.f32.mrb[49].mxu1 }
 0x3f3   : > { %v3549_v45 = vadd.f32 %v3548_v56, %v3547_v58  ;;  %v3550_v25 = vpop.f32.mrb[50].mxu1 }
 0x3f4   : > { %v3551_v14 = vpop.f32.mrb[51].mxu1 }
 0x3f5   : > { %v3552_v12 = vadd.f32 %v3551_v14, %v3550_v25 }
 0x3f9   : > { %v3553_v35 = vpop.f32.mrb[52].mxu1 }
 0x3fa   : > { %v3611_v20 = vpop.f32.mrb[64].mxu0  ;;  %v3554_v18 = vpop.f32.mrb[53].mxu1 }
 0x3fb   : > { %v3612_v30 = vpop.f32.mrb[65].mxu0  ;;  %v3555_v31 = vadd.f32 %v3554_v18, %v3553_v35  ;;  %v3556_v9 = vpop.f32.mrb[54].mxu1 }
 0x3fc   : > { %v3613_v51 = vadd.f32 %v3612_v30, %v3611_v20  ;;  %v3614_v2 = vpop.f32.mrb[66].mxu0  ;;  %v3557_v53 = vpop.f32.mrb[55].mxu1 }
 0x3fd   : > { %v3615_v42 = vpop.f32.mrb[67].mxu0  ;;  %v3558_v5 = vadd.f32 %v3557_v53, %v3556_v9 }
 0x3fe   : > { %v2069_v50 = vadd.f32 %v3613_v51, %v3549_v45  ;;  %v3616_v8 = vadd.f32 %v3615_v42, %v3614_v2 }
 0x400   : > { %v2072_v17 = vadd.f32 %v3616_v8, %v3552_v12 }
 0x401   : > { %v3559_v6 = vpop.f32.mrb[56].mxu1 }
 0x402   : > { %v2103_v60 = vpack.c.bf16 %v2072_v17, %v2069_v50  ;;  %v3617_v21 = vpop.f32.mrb[68].mxu0  ;;  %v3560_v58 = vpop.f32.mrb[57].mxu1 }
 0x403   : > { %v3618_v40 = vpop.f32.mrb[69].mxu0  ;;  %v3561_v14 = vadd.f32 %v3560_v58, %v3559_v6  ;;  %v3562_v20 = vpop.f32.mrb[58].mxu1 }
 0x404   : > { %v3619_v56 = vadd.f32 %v3618_v40, %v3617_v21  ;;  %v3620_v25 = vpop.f32.mrb[70].mxu0  ;;  %3426 = vmatmul.mubr.msk.bf16.gmra.mrb[80].mxu1 %vm2119_vm1, %v2103_v60  ;;  %3435 = vmatmul.mubr.msk.bf16.gmra.mrb[96].mxu0 %vm2119_vm1, %v2103_v60  ;;  %v3563_v45 = vpop.f32.mrb[59].mxu1 }
 0x405   : > { %v3621_v35 = vpop.f32.mrb[71].mxu0  ;;  %2239 = vmatprep.mubr.bf16.mxu1 %v6444_v55  ;;  %2352 = vmatprep.mubr.bf16.mxu0 %v6444_v55  ;;  %v3564_v18 = vadd.f32 %v3563_v45, %v3562_v20 }
 0x406   : > { %v2077_v12 = vadd.f32 %v3619_v56, %v3555_v31  ;;  %v3622_v30 = vadd.f32 %v3621_v35, %v3620_v25 }
 0x408   : > { %v2080_v51 = vadd.f32 %v3622_v30, %v3558_v5 }
 0x409   : > { %v3565_v42 = vpop.f32.mrb[60].mxu1 }
 0x40a   : > { %v2104_v2 = vpack.c.bf16 %v2080_v51, %v2077_v12  ;;  %v3623_v9 = vpop.f32.mrb[72].mxu0  ;;  %v3566_v50 = vpop.f32.mrb[61].mxu1 }
 0x40b   : > { %v3624_v53 = vpop.f32.mrb[73].mxu0  ;;  %v3567_v60 = vadd.f32 %v3566_v50, %v3565_v42  ;;  %v3568_v21 = vpop.f32.mrb[62].mxu1  ;;  %v4059_v42 = vld [vmem:[#allocation8 + $0x70] sm:$0xff]  }
 0x40c   : > { %v3625_v8 = vadd.f32 %v3624_v53, %v3623_v9  ;;  %v3626_v17 = vpop.f32.mrb[74].mxu0  ;;  %3427 = vmatmul.mubr.msk.bf16.gmra.mrb[84].mxu1 %vm2119_vm1, %v2104_v2  ;;  %3436 = vmatmul.mubr.msk.bf16.gmra.mrb[100].mxu0 %vm2119_vm1, %v2104_v2  ;;  %v3569_v31 = vpop.f32.mrb[63].mxu1  ;;  %v4060_v53 = vld [vmem:[#allocation8 + $0x30] sm:$0xff]  }
 0x40d   : > { %v3627_v6 = vpop.f32.mrb[75].mxu0  ;;  %2249 = vmatprep.mubr.bf16.mxu1 %v6444_v55  ;;  %2362 = vmatprep.mubr.bf16.mxu0 %v6444_v55  ;;  %v3570_v58 = vadd.f32 %v3569_v31, %v3568_v21  ;;  %v4061_v50 = vld [vmem:[#allocation8 + $0xf0] sm:$0xff]   ;;  %v4065_v21 = vld [vmem:[#allocation8 + $0xf8] sm:$0xff]  }
 0x40e   : > { %v2085_v5 = vadd.f32 %v3625_v8, %v3561_v14  ;;  %v3628_v40 = vadd.f32 %v3627_v6, %v3626_v17  ;;  %v4062_v8 = vld [vmem:[#allocation8 + $0xb0] sm:$0xff]   ;;  %v4063_v17 = vld [vmem:[#allocation8 + $0x78] sm:$0xff]   ;;  %3647 = vmatprep.subr.bf16.mxu1 %v4059_v42  ;;  %v6086_v6 = vld [vmem:[#allocation10] sm:$0xff]  }
 0x40f   : > { %3648 = vmatpush3.bf16.msra.mxu1 %v4060_v53 }
 0x410   : > { %v2088_v56 = vadd.f32 %v3628_v40, %v3564_v18  ;;  %v4058_v18 = vld [vmem:[#allocation8 + $0xa8] sm:$0xff]   ;;  %3649 = vmatprep.subr.bf16.mxu1 %v4063_v17 }
 0x411   : > { %3710 = vmatpush3.bf16.msra.mxu0 %v4058_v18 }
 0x412   : > { %v2105_v25 = vpack.c.bf16 %v2088_v56, %v2085_v5  ;;  %v3629_v20 = vpop.f32.mrb[76].mxu0  ;;  %3711 = vmatprep.subr.bf16.mxu0 %v4061_v50 }
 0x413   : > { %v3630_v35 = vpop.f32.mrb[77].mxu0 }
 0x414   : > { %v3631_v45 = vadd.f32 %v3630_v35, %v3629_v20  ;;  %v3632_v12 = vpop.f32.mrb[78].mxu0  ;;  %3428 = vmatmul.mubr.msk.bf16.gmra.mrb[88].mxu1 %vm2119_vm1, %v2105_v25  ;;  %3437 = vmatmul.mubr.msk.bf16.gmra.mrb[104].mxu0 %vm2119_vm1, %v2105_v25 }
 0x415   : > { %v3633_v30 = vpop.f32.mrb[79].mxu0  ;;  %2259 = vmatprep.mubr.bf16.mxu1 %v6444_v55  ;;  %2372 = vmatprep.mubr.bf16.mxu0 %v6444_v55  ;;  %v4064_v55 = vld [vmem:[#allocation8 + $0x38] sm:$0xff]  }
 0x416   : > { %v2093_v51 = vadd.f32 %v3631_v45, %v3567_v60  ;;  %v3634_v2 = vadd.f32 %v3633_v30, %v3632_v12  ;;  %3712 = vmatpush3.bf16.msra.mxu0 %v4062_v8  ;;  %v4066_v60 = vld [vmem:[#allocation8 + $0xb8] sm:$0xff]   ;;  %3650 = vmatpush3.bf16.msra.mxu1 %v4064_v55 }
 0x417   : > { %3713 = vmatprep.subr.bf16.mxu0 %v4065_v21  ;;  %3811 = vmatprep.subr.bf16.mxu1 %v6086_v6 }
 0x418   : > { %v2096_v14 = vadd.f32 %v3634_v2, %v3570_v58 }
 0x41a   : > { %v2106_v9 = vpack.c.bf16 %v2096_v14, %v2093_v51  ;;  %3714 = vmatpush3.bf16.msra.mxu0 %v4066_v60 }
 0x41c   : > { %3429 = vmatmul.mubr.msk.bf16.gmra.mrb[92].mxu1 %vm2119_vm1, %v2106_v9  ;;  %3438 = vmatmul.mubr.msk.bf16.gmra.mrb[108].mxu0 %vm2119_vm1, %v2106_v9 }
 0x4a4   : > { %v2191_v31 = vpop.f32.mrb[64].mxu1  ;;  %v2304_v5 = vpop.f32.mrb[80].mxu0 }
 0x4a5   : > { %v2192_v40 = vadd.f32 1e-09, %v2191_v31  ;;  %v2305_v58 = vadd.f32 1e-09, %v2304_v5  ;;  %v2193_v56 = vpop.f32.mrb[65].mxu1  ;;  %v2306_v25 = vpop.f32.mrb[81].mxu0 }
 0x4a6   : > { %v2194_v20 = vadd.f32 1e-09, %v2193_v56  ;;  %v2307_v35 = vadd.f32 1e-09, %v2306_v25  ;;  %v2195_v45 = vpop.f32.mrb[66].mxu1  ;;  %v2308_v12 = vpop.f32.mrb[82].mxu0 }
 0x4a7   : > { %4219 = vrcp.f32 %v2192_v40  ;;  %v2196_v30 = vadd.f32 1e-09, %v2195_v45  ;;  %v2197_v51 = vpop.f32.mrb[67].mxu1  ;;  %v2310_v2 = vpop.f32.mrb[83].mxu0  ;;  %v2309_v14 = vadd.f32 1e-09, %v2308_v12 }
 0x4a8   : > { %4221 = vrcp.f32 %v2305_v58  ;;  %v2198_v9 = vadd.f32 1e-09, %v2197_v51  ;;  %v2311_v18 = vadd.f32 1e-09, %v2310_v2 }
 0x4a9   : > { %4223 = vrcp.f32 %v2194_v20 }
 0x4aa   : > { %4225 = vrcp.f32 %v2307_v35 }
 0x4ab   : > { %4227 = vrcp.f32 %v2196_v30 }
 0x4ac   : > { %4229 = vrcp.f32 %v2309_v14 }
 0x4ad   : > { %v2201_v42 = vpop.f32.mrb[68].mxu1  ;;  %v2314_v53 = vpop.f32.mrb[84].mxu0  ;;  %4231 = vrcp.f32 %v2198_v9 }
 0x4ae   : > { %v2202_v50 = vadd.f32 1e-09, %v2201_v42  ;;  %v2315_v8 = vadd.f32 1e-09, %v2314_v53  ;;  %v2203_v17 = vpop.f32.mrb[69].mxu1  ;;  %v2316_v21 = vpop.f32.mrb[85].mxu0  ;;  %4233 = vrcp.f32 %v2311_v18 }
 0x4af   : > { %v2204_v55 = vadd.f32 1e-09, %v2203_v17  ;;  %v2317_v60 = vadd.f32 1e-09, %v2316_v21  ;;  %v2205_v31 = vpop.f32.mrb[70].mxu1  ;;  %v2318_v5 = vpop.f32.mrb[86].mxu0 }
 0x4b0   : > { %4235 = vrcp.f32 %v2202_v50  ;;  %v2206_v40 = vadd.f32 1e-09, %v2205_v31  ;;  %v2207_v58 = vpop.f32.mrb[71].mxu1  ;;  %v2320_v56 = vpop.f32.mrb[87].mxu0  ;;  %v2319_v25 = vadd.f32 1e-09, %v2318_v5 }
 0x4b1   : > { %4237 = vrcp.f32 %v2315_v8  ;;  %v4220_v20 = vpop.eup %4219  ;;  %v2208_v35 = vadd.f32 1e-09, %v2207_v58  ;;  %v2321_v12 = vadd.f32 1e-09, %v2320_v56 }
 0x4b2   : > { %4239 = vrcp.f32 %v2204_v55  ;;  %v4222_v45 = vpop.eup %4221  ;;  %v2447_v2 = vmul.f32 %v4220_v20, %v5636_v63 }
 0x4b3   : > { %4241 = vrcp.f32 %v2317_v60  ;;  %v4224_v30 = vpop.eup %4223  ;;  %v2449_v14 = vmul.f32 %v4222_v45, %v5688_v52 }
 0x4b4   : > { %4243 = vrcp.f32 %v2206_v40  ;;  %v4226_v51 = vpop.eup %4225  ;;  %v2448_v21 = vmul.f32 %v4224_v30, %v5674_v13 }
 0x4b5   : > { %4245 = vrcp.f32 %v2319_v25  ;;  %v2211_v9 = vpop.f32.mrb[72].mxu1  ;;  %v2324_v18 = vpop.f32.mrb[88].mxu0 }
 0x4b6   : > { %v4228_v42 = vpop.eup %4227  ;;  %4247 = vrcp.f32 %v2208_v35  ;;  %v2212_v53 = vadd.f32 1e-09, %v2211_v9  ;;  %v2325_v50 = vadd.f32 1e-09, %v2324_v18  ;;  %v2213_v8 = vpop.f32.mrb[73].mxu1  ;;  %v2450_v35 = vmul.f32 %v4226_v51, %v5725_v19  ;;  %v4068_v19 = vld [vmem:[#allocation10 + $0x8] sm:$0xff]  }
 0x4b7   : > { %v2326_v17 = vpop.f32.mrb[89].mxu0  ;;  %v4230_v55 = vpop.eup %4229  ;;  %v2451_v60 = vmul.f32 %v4228_v42, %v5684_v39  ;;  %4249 = vrcp.f32 %v2321_v12  ;;  %v2214_v31 = vadd.f32 1e-09, %v2213_v8 }
 0x4b8   : > { %v2327_v5 = vadd.f32 1e-09, %v2326_v17  ;;  %v2215_v63 = vpop.f32.mrb[74].mxu1  ;;  %v2328_v40 = vpop.f32.mrb[90].mxu0  ;;  %v2453_v58 = vmul.f32 %v4230_v55, %v5741_v11  ;;  %4251 = vrcp.f32 %v2212_v53 }
 0x4b9   : > { %v4232_v52 = vpop.eup %4231  ;;  %v2216_v56 = vadd.f32 1e-09, %v2215_v63  ;;  %v2217_v25 = vpop.f32.mrb[75].mxu1  ;;  %4253 = vrcp.f32 %v2325_v50  ;;  %v2329_v13 = vadd.f32 1e-09, %v2328_v40  ;;  %v2511_v18 = vpack.c.bf16 %v2451_v60, %v2447_v2 }
 0x4ba   : > { %v2330_v20 = vpop.f32.mrb[91].mxu0  ;;  %v4234_v45 = vpop.eup %4233  ;;  %v2218_v30 = vadd.f32 1e-09, %v2217_v25  ;;  %v2452_v39 = vmul.f32 %v4232_v52, %v5680_v62  ;;  %4255 = vrcp.f32 %v2214_v31  ;;  %v2513_v42 = vpack.c.bf16 %v2453_v58, %v2449_v14  ;;  %v6445_v62 = vld [vmem:[#allocation24_spill] sm:$0xff]  ;;  %v6446_v31 = vld [vmem:[#allocation35_spill] sm:$0xff] }
 0x4bb   : > { %v4236_v12 = vpop.eup %4235  ;;  %v2454_v9 = vmul.f32 %v4234_v45, %v5732_v10  ;;  %4257 = vrcp.f32 %v2327_v5  ;;  %v2331_v11 = vadd.f32 1e-09, %v2330_v20  ;;  %v6447_v5 = vld [vmem:[#allocation23_spill] sm:$0xff] }
 0x4bc   : > { %v4238_v8 = vpop.eup %4237  ;;  %v2512_v53 = vpack.c.bf16 %v2452_v39, %v2448_v21  ;;  %4259 = vrcp.f32 %v2216_v56  ;;  %v2455_v40 = vmul.f32 %v4236_v12, %v6445_v62  ;;  %v6451_v62 = vld [vmem:[#allocation28_spill] sm:$0xff] }
 0x4bd   : > { %v4240_v17 = vpop.eup %4239  ;;  %v2514_v55 = vpack.c.bf16 %v2454_v9, %v2450_v35  ;;  %4261 = vrcp.f32 %v2329_v13  ;;  %v2221_v50 = vpop.f32.mrb[76].mxu1  ;;  %v2457_v52 = vmul.f32 %v4238_v8, %v6446_v31  ;;  %v6448_v13 = vld [vmem:[#allocation42_spill] sm:$0xff]  ;;  %v6449_v8 = vld [vmem:[#allocation21_spill] sm:$0xff] }
 0x4be   : > { %v4242_v51 = vpop.eup %4241  ;;  %2838 = vmatprep.mubr.bf16.mxu1 %v2512_v53  ;;  %v2334_v63 = vpop.f32.mrb[92].mxu0  ;;  %4263 = vrcp.f32 %v2218_v30  ;;  %v2222_v2 = vadd.f32 1e-09, %v2221_v50  ;;  %v2456_v58 = vmul.f32 %v4240_v17, %v6447_v5 }
 0x4bf   : > { %v4244_v10 = vpop.eup %4243  ;;  %2935 = vmatprep.mubr.bf16.mxu0 %v2514_v55  ;;  %2839 = vmatmul.mubr.bf16.vlgmr.msra.gmra.mrb[96].mxu1 %v2511_v18  ;;  %v2335_v14 = vadd.f32 1e-09, %v2334_v63  ;;  %v2223_v21 = vpop.f32.mrb[77].mxu1  ;;  %4265 = vrcp.f32 %v2331_v11  ;;  %v2458_v53 = vmul.f32 %v4242_v51, %v6449_v8  ;;  %v6450_v55 = vld [vmem:[#allocation36_spill] sm:$0xff] }
 0x4c0   : > { %v2336_v60 = vpop.f32.mrb[93].mxu0  ;;  %v4246_v56 = vpop.eup %4245  ;;  %2936 = vmatmul.mubr.bf16.vlgmr.msra.gmra.mrb[112].mxu0 %v2513_v42  ;;  %v2224_v25 = vadd.f32 1e-09, %v2223_v21  ;;  %v2459_v39 = vmul.f32 %v4244_v10, %v6448_v13  ;;  %3812 = vmatpush3.bf16.msra.mxu1 %v6086_v6  ;;  %4267 = vrcp.f32 %v2222_v2  ;;  %v4069_v11 = vld [vmem:[#allocation10 + $0x10] sm:$0xff]   ;;  %v6452_v6 = vld [vmem:[#allocation22_spill] sm:$0xff] }
 0x4c1   : > { %v2337_v20 = vadd.f32 1e-09, %v2336_v60  ;;  %v2225_v35 = vpop.f32.mrb[78].mxu1  ;;  %v2338_v45 = vpop.f32.mrb[94].mxu0  ;;  %v2461_v17 = vmul.f32 %v4246_v56, %v6450_v55  ;;  %3813 = vmatprep.subr.bf16.mxu1 %v4068_v19  ;;  %4269 = vrcp.f32 %v2335_v14 }
 0x4c2   : > { %v4248_v30 = vpop.eup %4247  ;;  %v2226_v12 = vadd.f32 1e-09, %v2225_v35  ;;  %v2227_v9 = vpop.f32.mrb[79].mxu1  ;;  %v2339_v50 = vadd.f32 1e-09, %v2338_v45  ;;  %4271 = vrcp.f32 %v2224_v25  ;;  %v2515_v2 = vpack.c.bf16 %v2459_v39, %v2455_v40  ;;  %v6453_v40 = vld [vmem:[#allocation30_spill] sm:$0xff] }
 0x4c3   : > { %v2340_v18 = vpop.f32.mrb[95].mxu0  ;;  %v4250_v42 = vpop.eup %4249  ;;  %v2228_v63 = vadd.f32 1e-09, %v2227_v9  ;;  %v2460_v31 = vmul.f32 %v4248_v30, %v6451_v62  ;;  %v2517_v60 = vpack.c.bf16 %v2461_v17, %v2457_v52  ;;  %4273 = vrcp.f32 %v2337_v20  ;;  %v6454_v20 = vld [vmem:[#allocation18_spill] sm:$0xff]  ;;  %v6455_v30 = vld [vmem:[#allocation25_spill] sm:$0xff] }
 0x4c4   : > { %v4252_v10 = vpop.eup %4251  ;;  %v2462_v21 = vmul.f32 %v4250_v42, %v6452_v6  ;;  %v2341_v35 = vadd.f32 1e-09, %v2340_v18  ;;  %3814 = vmatpush3.bf16.msra.mxu1 %v4068_v19  ;;  %4275 = vrcp.f32 %v2226_v12  ;;  %v6456_v18 = vld [vmem:[#allocation37_spill] sm:$0xff] }
 0x4c5   : > { %v4254_v5 = vpop.eup %4253  ;;  %v2516_v51 = vpack.c.bf16 %v2460_v31, %v2456_v58  ;;  %3815 = vmatprep.subr.bf16.mxu1 %v4069_v11  ;;  %4277 = vrcp.f32 %v2339_v50  ;;  %v2463_v52 = vmul.f32 %v4252_v10, %v6453_v40  ;;  %v6458_v50 = vld [vmem:[#allocation44_spill] sm:$0xff]  ;;  %v6459_v62 = vld [vmem:[#allocation29_spill] sm:$0xff] }
 0x4c6   : > { %v4256_v56 = vpop.eup %4255  ;;  %v2518_v13 = vpack.c.bf16 %v2462_v21, %v2458_v53  ;;  %4279 = vrcp.f32 %v2228_v63  ;;  %v2465_v58 = vmul.f32 %v4254_v5, %v5849_v26  ;;  %v6457_v53 = vld [vmem:[#allocation43_spill] sm:$0xff] }
 0x4c7   : > { %v4258_v14 = vpop.eup %4257  ;;  %2846 = vmatprep.mubr.bf16.mxu1 %v2516_v51  ;;  %4281 = vrcp.f32 %v2341_v35  ;;  %v2464_v8 = vmul.f32 %v4256_v56, %v6456_v18 }
 0x4c8   : > { %v4260_v45 = vpop.eup %4259  ;;  %2943 = vmatprep.mubr.bf16.mxu0 %v2518_v13  ;;  %2847 = vmatmul.mubr.bf16.gmra.mrb[100].mxu1 %v2515_v2  ;;  %v2466_v63 = vmul.f32 %v4258_v14, %v6458_v50 }
 0x4c9   : > { %v4262_v25 = vpop.eup %4261  ;;  %2944 = vmatmul.mubr.bf16.gmra.mrb[116].mxu0 %v2517_v60  ;;  %v2467_v39 = vmul.f32 %v4260_v45, %v6454_v20  ;;  %3816 = vmatpush3.bf16.msra.mxu1 %v4069_v11 }
 0x4ca   : > { %v4264_v19 = vpop.eup %4263  ;;  %v2469_v12 = vmul.f32 %v4262_v25, %v6455_v30  ;;  %v6460_v25 = vld [vmem:[#allocation38_spill] sm:$0xff] }
 0x4cb   : > { %v4266_v9 = vpop.eup %4265  ;;  %v2468_v55 = vmul.f32 %v4264_v19, %v6457_v53  ;;  %v2519_v17 = vpack.c.bf16 %v2467_v39, %v2463_v52  ;;  %v6461_v52 = vld [vmem:[#allocation39_spill] sm:$0xff] }
 0x4cc   : > { %v4268_v42 = vpop.eup %4267  ;;  %v2470_v31 = vmul.f32 %v4266_v9, %v6459_v62  ;;  %v2521_v10 = vpack.c.bf16 %v2469_v12, %v2465_v58 }
 0x4cd   : > { %v4270_v6 = vpop.eup %4269  ;;  %v2520_v21 = vpack.c.bf16 %v2468_v55, %v2464_v8  ;;  %v2471_v35 = vmul.f32 %v4268_v42, %v5892_v61 }
 0x4ce   : > { %v4272_v11 = vpop.eup %4271  ;;  %v2522_v2 = vpack.c.bf16 %v2470_v31, %v2466_v63  ;;  %v2473_v13 = vmul.f32 %v4270_v6, %v5908_v38 }
 0x4cf   : > { %v4274_v60 = vpop.eup %4273  ;;  %2854 = vmatprep.mubr.bf16.mxu1 %v2520_v21  ;;  %v2472_v40 = vmul.f32 %v4272_v11, %v6460_v25 }
 0x4d0   : > { %v4276_v26 = vpop.eup %4275  ;;  %2951 = vmatprep.mubr.bf16.mxu0 %v2522_v2  ;;  %2855 = vmatmul.mubr.bf16.gmra.mrb[104].mxu1 %v2519_v17  ;;  %v2474_v19 = vmul.f32 %v4274_v60, %v5884_v47 }
 0x4d1   : > { %v4278_v5 = vpop.eup %4277  ;;  %2952 = vmatmul.mubr.bf16.gmra.mrb[120].mxu0 %v2521_v10  ;;  %v2475_v51 = vmul.f32 %v4276_v26, %v5904_v22 }
 0x4d2   : > { %v4280_v56 = vpop.eup %4279  ;;  %v2477_v14 = vmul.f32 %v4278_v5, %v5912_v24 }
 0x4d3   : > { %v4282_v45 = vpop.eup %4281  ;;  %v2476_v20 = vmul.f32 %v4280_v56, %v6461_v52  ;;  %v2523_v39 = vpack.c.bf16 %v2475_v51, %v2471_v35 }
 0x4d4   : > { %v2478_v58 = vmul.f32 %v4282_v45, %v5888_v41  ;;  %v2525_v30 = vpack.c.bf16 %v2477_v14, %v2473_v13 }
 0x4d5   : > { %v2524_v12 = vpack.c.bf16 %v2476_v20, %v2472_v40 }
 0x4d6   : > { %v2526_v61 = vpack.c.bf16 %v2478_v58, %v2474_v19 }
 0x4d7   : > { %2862 = vmatprep.mubr.bf16.mxu1 %v2524_v12  ;;  %v2231_v22 = vpop.f32.mrb[80].mxu1  ;;  %v2344_v38 = vpop.f32.mrb[96].mxu0 }
 0x4d8   : > { %2959 = vmatprep.mubr.bf16.mxu0 %v2526_v61  ;;  %2863 = vmatmul.mubr.bf16.gmra.mrb[108].mxu1 %v2523_v39  ;;  %v2232_v24 = vadd.f32 1e-09, %v2231_v22  ;;  %v2345_v9 = vadd.f32 1e-09, %v2344_v38  ;;  %v2233_v18 = vpop.f32.mrb[81].mxu1  ;;  %v2346_v8 = vpop.f32.mrb[97].mxu0 }
 0x4d9   : > { %2960 = vmatmul.mubr.bf16.gmra.mrb[124].mxu0 %v2525_v30  ;;  %v2234_v53 = vadd.f32 1e-09, %v2233_v18  ;;  %v2347_v55 = vadd.f32 1e-09, %v2346_v8  ;;  %v2235_v17 = vpop.f32.mrb[82].mxu1  ;;  %v2348_v42 = vpop.f32.mrb[98].mxu0 }
 0x4da   : > { %4283 = vrcp.f32 %v2232_v24  ;;  %v2236_v47 = vadd.f32 1e-09, %v2235_v17  ;;  %v2237_v41 = vpop.f32.mrb[83].mxu1  ;;  %v2350_v50 = vpop.f32.mrb[99].mxu0  ;;  %v2349_v63 = vadd.f32 1e-09, %v2348_v42 }
 0x4db   : > { %4285 = vrcp.f32 %v2345_v9  ;;  %v2238_v62 = vadd.f32 1e-09, %v2237_v41  ;;  %v2351_v31 = vadd.f32 1e-09, %v2350_v50 }
 0x4dc   : > { %4287 = vrcp.f32 %v2234_v53 }
 0x4dd   : > { %4289 = vrcp.f32 %v2347_v55 }
 0x4de   : > { %4291 = vrcp.f32 %v2236_v47 }
 0x4df   : > { %4293 = vrcp.f32 %v2349_v63  ;;  %v2241_v10 = vpop.f32.mrb[84].mxu1  ;;  %v2354_v6 = vpop.f32.mrb[100].mxu0 }
 0x4e0   : > { %4295 = vrcp.f32 %v2238_v62  ;;  %v2242_v21 = vadd.f32 1e-09, %v2241_v10  ;;  %v2355_v11 = vadd.f32 1e-09, %v2354_v6  ;;  %v2243_v2 = vpop.f32.mrb[85].mxu1  ;;  %v2356_v60 = vpop.f32.mrb[101].mxu0 }
 0x4e1   : > { %4297 = vrcp.f32 %v2351_v31  ;;  %v2244_v26 = vadd.f32 1e-09, %v2243_v2  ;;  %v2357_v5 = vadd.f32 1e-09, %v2356_v60  ;;  %v2245_v35 = vpop.f32.mrb[86].mxu1  ;;  %v2358_v51 = vpop.f32.mrb[102].mxu0 }
 0x4e2   : > { %4299 = vrcp.f32 %v2242_v21  ;;  %v2246_v56 = vadd.f32 1e-09, %v2245_v35  ;;  %v2247_v13 = vpop.f32.mrb[87].mxu1  ;;  %v2360_v14 = vpop.f32.mrb[103].mxu0  ;;  %v2359_v45 = vadd.f32 1e-09, %v2358_v51 }
 0x4e3   : > { %4301 = vrcp.f32 %v2355_v11  ;;  %v2248_v40 = vadd.f32 1e-09, %v2247_v13  ;;  %v2361_v20 = vadd.f32 1e-09, %v2360_v14 }
 0x4e4   : > { %v4284_v25 = vpop.eup %4283  ;;  %4303 = vrcp.f32 %v2244_v26 }
 0x4e5   : > { %v4286_v52 = vpop.eup %4285  ;;  %4305 = vrcp.f32 %v2357_v5  ;;  %v2479_v12 = vmul.f32 %v4284_v25, %v5925_v34 }
 0x4e6   : > { %v4288_v39 = vpop.eup %4287  ;;  %4307 = vrcp.f32 %v2246_v56  ;;  %v2481_v61 = vmul.f32 %v4286_v52, %v5951_v57 }
 0x4e7   : > { %v4290_v19 = vpop.eup %4289  ;;  %4309 = vrcp.f32 %v2359_v45  ;;  %v2251_v58 = vpop.f32.mrb[88].mxu1  ;;  %v2480_v8 = vmul.f32 %v4288_v39, %v5975_v28 }
 0x4e8   : > { %v2364_v30 = vpop.f32.mrb[104].mxu0  ;;  %v4292_v22 = vpop.eup %4291  ;;  %4311 = vrcp.f32 %v2248_v40  ;;  %v2252_v38 = vadd.f32 1e-09, %v2251_v58  ;;  %v2482_v62 = vmul.f32 %v4290_v19, %v6005_v44 }
 0x4e9   : > { %v2365_v24 = vadd.f32 1e-09, %v2364_v30  ;;  %v2253_v9 = vpop.f32.mrb[89].mxu1  ;;  %v2366_v18 = vpop.f32.mrb[105].mxu0  ;;  %4313 = vrcp.f32 %v2361_v20  ;;  %v2483_v41 = vmul.f32 %v4292_v22, %v5928_v32 }
 0x4ea   : > { %v4294_v53 = vpop.eup %4293  ;;  %v2254_v55 = vadd.f32 1e-09, %v2253_v9  ;;  %v2367_v17 = vadd.f32 1e-09, %v2366_v18  ;;  %v2255_v42 = vpop.f32.mrb[90].mxu1  ;;  %4315 = vrcp.f32 %v2252_v38 }
 0x4eb   : > { %v2368_v47 = vpop.f32.mrb[106].mxu0  ;;  %v4296_v50 = vpop.eup %4295  ;;  %v2256_v34 = vadd.f32 1e-09, %v2255_v42  ;;  %v2485_v31 = vmul.f32 %v4294_v53, %v5954_v0  ;;  %4317 = vrcp.f32 %v2365_v24  ;;  %v2527_v32 = vpack.c.bf16 %v2483_v41, %v2479_v12 }
 0x4ec   : > { %v2257_v57 = vpop.f32.mrb[91].mxu1  ;;  %v2370_v63 = vpop.f32.mrb[107].mxu0  ;;  %v2369_v28 = vadd.f32 1e-09, %v2368_v47  ;;  %v2484_v21 = vmul.f32 %v4296_v50, %v5978_v4  ;;  %4319 = vrcp.f32 %v2254_v55 }
 0x4ed   : > { %v4298_v10 = vpop.eup %4297  ;;  %v2258_v6 = vadd.f32 1e-09, %v2257_v57  ;;  %v2529_v60 = vpack.c.bf16 %v2485_v31, %v2481_v61  ;;  %4321 = vrcp.f32 %v2367_v17  ;;  %v2371_v5 = vadd.f32 1e-09, %v2370_v63 }
 0x4ee   : > { %v4300_v11 = vpop.eup %4299  ;;  %v2486_v2 = vmul.f32 %v4298_v10, %v6008_v54  ;;  %v2528_v35 = vpack.c.bf16 %v2484_v21, %v2480_v8  ;;  %4323 = vrcp.f32 %v2256_v34 }
 0x4ef   : > { %v4302_v26 = vpop.eup %4301  ;;  %4325 = vrcp.f32 %v2369_v28  ;;  %v2261_v56 = vpop.f32.mrb[92].mxu1  ;;  %v2487_v4 = vmul.f32 %v4300_v11, %v5931_v23 }
 0x4f0   : > { %v4304_v51 = vpop.eup %4303  ;;  %v2530_v44 = vpack.c.bf16 %v2486_v2, %v2482_v62  ;;  %2870 = vmatprep.mubr.bf16.mxu1 %v2528_v35  ;;  %v2374_v13 = vpop.f32.mrb[108].mxu0  ;;  %v2489_v14 = vmul.f32 %v4302_v26, %v5957_v1  ;;  %4327 = vrcp.f32 %v2258_v6  ;;  %v2262_v54 = vadd.f32 1e-09, %v2261_v56 }
 0x4f1   : > { %v4306_v0 = vpop.eup %4305  ;;  %2871 = vmatmul.mubr.bf16.gmra.mrb[112].mxu1 %v2527_v32  ;;  %v2375_v25 = vadd.f32 1e-09, %v2374_v13  ;;  %v2263_v40 = vpop.f32.mrb[93].mxu1  ;;  %v2488_v20 = vmul.f32 %v4304_v51, %v5981_v36  ;;  %4329 = vrcp.f32 %v2371_v5 }
 0x4f2   : > { %v4308_v45 = vpop.eup %4307  ;;  %2967 = vmatprep.mubr.bf16.mxu0 %v2530_v44  ;;  %v2376_v52 = vpop.f32.mrb[109].mxu0  ;;  %v2264_v19 = vadd.f32 1e-09, %v2263_v40  ;;  %4331 = vrcp.f32 %v2262_v54  ;;  %v2490_v24 = vmul.f32 %v4306_v0, %v6011_v33  ;;  %v6463_v44 = vld [vmem:[#allocation32_spill] sm:$0xff] }
 0x4f3   : > { %v4310_v39 = vpop.eup %4309  ;;  %2968 = vmatmul.mubr.bf16.gmra.mrb[128].mxu0 %v2529_v60  ;;  %v2377_v58 = vadd.f32 1e-09, %v2376_v52  ;;  %v2265_v30 = vpop.f32.mrb[94].mxu1  ;;  %v2491_v23 = vmul.f32 %v4308_v45, %v5934_v46  ;;  %4333 = vrcp.f32 %v2375_v25  ;;  %v6466_v45 = vld [vmem:[#allocation40_spill] sm:$0xff]  ;;  %v6467_v25 = vld [vmem:[#allocation41_spill] sm:$0xff] }
 0x4f4   : > { %v2378_v12 = vpop.f32.mrb[110].mxu0  ;;  %v4312_v1 = vpop.eup %4311  ;;  %v2266_v61 = vadd.f32 1e-09, %v2265_v30  ;;  %v2493_v9 = vmul.f32 %v4310_v39, %v5960_v48  ;;  %4335 = vrcp.f32 %v2264_v19  ;;  %v6469_v19 = vld [vmem:[#allocation33_spill] sm:$0xff] }
 0x4f5   : > { %v2267_v22 = vpop.f32.mrb[95].mxu1  ;;  %v2380_v38 = vpop.f32.mrb[111].mxu0  ;;  %v2379_v36 = vadd.f32 1e-09, %v2378_v12  ;;  %v2492_v53 = vmul.f32 %v4312_v1, %v5984_v29  ;;  %v2531_v46 = vpack.c.bf16 %v2491_v23, %v2487_v4  ;;  %4337 = vrcp.f32 %v2377_v58  ;;  %v4070_v1 = vld [vmem:[#allocation10 + $0x18] sm:$0xff]  }
 0x4f6   : > { %v4314_v18 = vpop.eup %4313  ;;  %v2268_v8 = vadd.f32 1e-09, %v2267_v22  ;;  %v2533_v42 = vpack.c.bf16 %v2493_v9, %v2489_v14  ;;  %v2381_v41 = vadd.f32 1e-09, %v2380_v38  ;;  %4339 = vrcp.f32 %v2266_v61  ;;  %3817 = vmatprep.subr.bf16.mxu1 %v4070_v1  ;;  %v4071_v61 = vld [vmem:[#allocation10 + $0x20] sm:$0xff]   ;;  %v4072_v22 = vld [vmem:[#allocation10 + $0x28] sm:$0xff]  }
 0x4f7   : > { %v4316_v55 = vpop.eup %4315  ;;  %v2494_v17 = vmul.f32 %v4314_v18, %v6014_v16  ;;  %v2532_v50 = vpack.c.bf16 %v2492_v53, %v2488_v20  ;;  %4341 = vrcp.f32 %v2379_v36  ;;  %v6468_v20 = vld [vmem:[#allocation45_spill] sm:$0xff]  ;;  %3818 = vmatpush3.bf16.msra.mxu1 %v4070_v1  ;;  %v4073_v38 = vld [vmem:[#allocation10 + $0x30] sm:$0xff]  }
 0x4f8   : > { %v4318_v47 = vpop.eup %4317  ;;  %4343 = vrcp.f32 %v2268_v8  ;;  %v2495_v16 = vmul.f32 %v4316_v55, %v5937_v15  ;;  %3819 = vmatprep.subr.bf16.mxu1 %v4071_v61  ;;  %v6157_v36 = vld [vmem:[%s6470_s23] ss:$0 sm:$0xff]  ;;  %s4493_s23 = sshll.u32 %s4573_s13, 4  ;;  %s4494_s23 = int_to_ptr.vmem [resolvable:$false] %s4493_s23 }
 0x4f9   : > { %v4320_v34 = vpop.eup %4319  ;;  %v2534_v33 = vpack.c.bf16 %v2494_v17, %v2490_v24  ;;  %2878 = vmatprep.mubr.bf16.mxu1 %v2532_v50  ;;  %4345 = vrcp.f32 %v2381_v41  ;;  %v2497_v31 = vmul.f32 %v4318_v47, %v5963_v59  ;;  %v4074_v24 = vld [vmem:[#allocation10 + $0x38] sm:$0xff]   ;;  %s4495_s25 = scalar_lea.vmem %s4494_s23, 4096  ;;  %p4496_p12 = scmp.lt.s32.totalorder %s6201_s8, %s4494_s23 }
 0x4fa   : > { %v4322_v48 = vpop.eup %4321  ;;  %2879 = vmatmul.mubr.bf16.gmra.mrb[116].mxu1 %v2531_v46  ;;  %v2496_v6 = vmul.f32 %v4320_v34, %v5987_v7  ;;  %v6462_v7 = vld [vmem:[#allocation31_spill] sm:$0xff]  ;;  %p4497_p1 = scmp.lt.s32.totalorder %s4495_s25, %s4489_s12 }
 0x4fb   : > { %v4324_v57 = vpop.eup %4323  ;;  %2975 = vmatprep.mubr.bf16.mxu0 %v2534_v33  ;;  %v2498_v32 = vmul.f32 %v4322_v48, %v6017_v49  ;;  %v6464_v49 = vld [vmem:[#allocation19_spill] sm:$0xff]  ;;  %3820 = vmatpush3.bf16.msra.mxu1 %v4071_v61 }
 0x4fc   : > { %v4326_v29 = vpop.eup %4325  ;;  %2976 = vmatmul.mubr.bf16.gmra.mrb[132].mxu0 %v2533_v42  ;;  %v2499_v63 = vmul.f32 %v4324_v57, %v5940_v43  ;;  %3821 = vmatprep.subr.bf16.mxu1 %v4072_v22  ;;  %p4498_p2 = por %p4497_p1, %p4496_p12 }
 0x4fd   : > { %v4328_v62 = vpop.eup %4327  ;;  %v2501_v10 = vmul.f32 %v4326_v29, %v5966_v3 }
 0x4fe   : > { %v4330_v28 = vpop.eup %4329  ;;  %v2500_v21 = vmul.f32 %v4328_v62, %v5990_v27  ;;  %v2535_v11 = vpack.c.bf16 %v2499_v63, %v2495_v16  ;;  %p4499_p13 = pnand %p4498_p2, %p4492_p7 }
 0x4ff   : > { %v4332_v2 = vpop.eup %4331  ;;  %v2502_v60 = vmul.f32 %v4330_v28, %v6020_v37  ;;  %v2537_v26 = vpack.c.bf16 %v2501_v10, %v2497_v31  ;;  %v6465_v37 = vld [vmem:[#allocation26_spill] sm:$0xff]  ;;  %3822 = vmatpush3.bf16.msra.mxu1 %v4072_v22 }
 0x500   : > { %v4334_v15 = vpop.eup %4333  ;;  %v2536_v5 = vpack.c.bf16 %v2500_v21, %v2496_v6  ;;  %v2503_v27 = vmul.f32 %v4332_v2, %v6462_v7  ;;  %3823 = vmatprep.subr.bf16.mxu1 %v4073_v38 }
 0x501   : > { %v4336_v43 = vpop.eup %4335  ;;  %v2538_v35 = vpack.c.bf16 %v2502_v60, %v2498_v32  ;;  %v2505_v13 = vmul.f32 %v4334_v15, %v6464_v49 }
 0x502   : > { %v4338_v51 = vpop.eup %4337  ;;  %2886 = vmatprep.mubr.bf16.mxu1 %v2536_v5  ;;  %v2504_v54 = vmul.f32 %v4336_v43, %v6466_v45 }
 0x503   : > { %v4340_v59 = vpop.eup %4339  ;;  %2983 = vmatprep.mubr.bf16.mxu0 %v2538_v35  ;;  %2887 = vmatmul.mubr.bf16.gmra.mrb[120].mxu1 %v2535_v11  ;;  %v2506_v39 = vmul.f32 %v4338_v51, %v6468_v20 }
 0x504   : > { %v4342_v3 = vpop.eup %4341  ;;  %2984 = vmatmul.mubr.bf16.gmra.mrb[136].mxu0 %v2537_v26  ;;  %v2507_v0 = vmul.f32 %v4340_v59, %v6463_v44  ;;  %3824 = vmatpush3.bf16.msra.mxu1 %v4073_v38 }
 0x505   : > { %v4344_v56 = vpop.eup %4343  ;;  %v2509_v4 = vmul.f32 %v4342_v3, %v6465_v37  ;;  %3825 = vmatprep.subr.bf16.mxu1 %v4074_v24 }
 0x506   : > { %v4346_v14 = vpop.eup %4345  ;;  %v2508_v40 = vmul.f32 %v4344_v56, %v6467_v25  ;;  %v2539_v52 = vpack.c.bf16 %v2507_v0, %v2503_v27 }
 0x507   : > { %v2510_v58 = vmul.f32 %v4346_v14, %v6469_v19  ;;  %v2541_v30 = vpack.c.bf16 %v2509_v4, %v2505_v13 }
 0x508   : > { %v2540_v12 = vpack.c.bf16 %v2508_v40, %v2504_v54  ;;  %3826 = vmatpush3.bf16.msra.mxu1 %v4074_v24 }
 0x509   : > { %v2542_v23 = vpack.c.bf16 %v2510_v58, %v2506_v39 }
 0x50a   : > { %2894 = vmatprep.mubr.bf16.mxu1 %v2540_v12 }
 0x50b   : > { %2991 = vmatprep.mubr.bf16.mxu0 %v2542_v23  ;;  %2895 = vmatmul.mubr.bf16.gmra.mrb[124].mxu1 %v2539_v52 }
 0x50c   : > { %2992 = vmatmul.mubr.bf16.gmra.mrb[140].mxu0 %v2541_v30 }
 0x592   : > { %v3651_v9 = vpop.f32.mrb[96].mxu1 }
 0x593   : > { %v3715_v18 = vpop.f32.mrb[112].mxu0  ;;  %v3652_v8 = vpop.f32.mrb[97].mxu1 }
 0x594   : > { %v3653_v53 = vadd.f32 %v3652_v8, %v3651_v9  ;;  %v3716_v55 = vpop.f32.mrb[113].mxu0  ;;  %v3654_v17 = vpop.f32.mrb[98].mxu1 }
 0x595   : > { %v3717_v46 = vadd.f32 %v3716_v55, %v3715_v18  ;;  %v3718_v42 = vpop.f32.mrb[114].mxu0  ;;  %v3655_v47 = vpop.f32.mrb[99].mxu1 }
 0x596   : > { %v2841_v41 = vadd.f32 %v3653_v53, %v6157_v36  ;;  %v3656_v50 = vadd.f32 %v3655_v47, %v3654_v17  ;;  %v3719_v34 = vpop.f32.mrb[115].mxu0 }
 0x597   : > { %v3720_v33 = vadd.f32 %v3719_v34, %v3718_v42 }
 0x598   : > { %v2938_v48 = vadd.f32 %v3717_v46, %v2841_v41  ;;  %v2844_v57 = vadd.f32 %v3656_v50, %v6157_v36 }
 0x59a   : > { %v2941_v29 = vadd.f32 %v3720_v33, %v2844_v57 }
 0x59b   : > { %v3657_v16 = vpop.f32.mrb[100].mxu1 }
 0x59c   : > { %v3721_v63 = vpop.f32.mrb[116].mxu0  ;;  %v3658_v62 = vpop.f32.mrb[101].mxu1  ;;  %v3000_v6 = vpack.c.bf16 %v2941_v29, %v2938_v48 }
 0x59d   : > { %v3659_v31 = vadd.f32 %v3658_v62, %v3657_v16  ;;  %v3722_v10 = vpop.f32.mrb[117].mxu0  ;;  %v3660_v28 = vpop.f32.mrb[102].mxu1 }
 0x59e   : > { %v3723_v21 = vadd.f32 %v3722_v10, %v3721_v63  ;;  %v3724_v11 = vpop.f32.mrb[118].mxu0  ;;  %v3661_v2 = vpop.f32.mrb[103].mxu1  ;;  %3827 = vmatprep.mubr.bf16.mxu1 %v3000_v6 }
 0x59f   : > { %v2849_v32 = vadd.f32 %v3659_v31, %v6157_v36  ;;  %v3662_v60 = vadd.f32 %v3661_v2, %v3660_v28  ;;  %v3725_v26 = vpop.f32.mrb[119].mxu0 }
 0x5a0   : > { %v3726_v15 = vadd.f32 %v3725_v26, %v3724_v11 }
 0x5a1   : > { %v2946_v5 = vadd.f32 %v3723_v21, %v2849_v32  ;;  %v2852_v43 = vadd.f32 %v3662_v60, %v6157_v36 }
 0x5a3   : > { %v2949_v35 = vadd.f32 %v3726_v15, %v2852_v43  ;;  %v3663_v51 = vpop.f32.mrb[104].mxu1 }
 0x5a4   : > { %v3727_v59 = vpop.f32.mrb[120].mxu0  ;;  %v3664_v3 = vpop.f32.mrb[105].mxu1 }
 0x5a5   : > { %v3001_v7 = vpack.c.bf16 %v2949_v35, %v2946_v5  ;;  %v3665_v27 = vadd.f32 %v3664_v3, %v3663_v51  ;;  %v3728_v44 = vpop.f32.mrb[121].mxu0  ;;  %v3666_v0 = vpop.f32.mrb[106].mxu1 }
 0x5a6   : > { %v3729_v56 = vadd.f32 %v3728_v44, %v3727_v59  ;;  %v3730_v49 = vpop.f32.mrb[122].mxu0  ;;  %v3667_v13 = vpop.f32.mrb[107].mxu1 }
 0x5a7   : > { %v2857_v37 = vadd.f32 %v3665_v27, %v6157_v36  ;;  %v3668_v4 = vadd.f32 %v3667_v13, %v3666_v0  ;;  %v3731_v14 = vpop.f32.mrb[123].mxu0  ;;  %3828 = vmatmul.mubr.bf16.vlgmr.msra.gmra.mrb[128].mxu1 %v3001_v7 }
 0x5a8   : > { %v3732_v45 = vadd.f32 %v3731_v14, %v3730_v49 }
 0x5a9   : > { %v2954_v54 = vadd.f32 %v3729_v56, %v2857_v37  ;;  %v2860_v25 = vadd.f32 %v3668_v4, %v6157_v36 }
 0x5ab   : > { %v2957_v40 = vadd.f32 %v3732_v45, %v2860_v25  ;;  %v3669_v52 = vpop.f32.mrb[108].mxu1 }
 0x5ac   : > { %v3733_v20 = vpop.f32.mrb[124].mxu0  ;;  %v3670_v39 = vpop.f32.mrb[109].mxu1 }
 0x5ad   : > { %v3671_v19 = vadd.f32 %v3670_v39, %v3669_v52  ;;  %v3734_v58 = vpop.f32.mrb[125].mxu0  ;;  %v3672_v30 = vpop.f32.mrb[110].mxu1  ;;  %v3002_v12 = vpack.c.bf16 %v2957_v40, %v2954_v54 }
 0x5ae   : > { %v3735_v23 = vadd.f32 %v3734_v58, %v3733_v20  ;;  %v3736_v1 = vpop.f32.mrb[126].mxu0  ;;  %v3673_v61 = vpop.f32.mrb[111].mxu1 }
 0x5af   : > { %v2865_v22 = vadd.f32 %v3671_v19, %v6157_v36  ;;  %v3674_v38 = vadd.f32 %v3673_v61, %v3672_v30  ;;  %v3737_v24 = vpop.f32.mrb[127].mxu0  ;;  %3831 = vmatprep.mubr.bf16.mxu1 %v3002_v12 }
 0x5b0   : > { %v3738_v9 = vadd.f32 %v3737_v24, %v3736_v1 }
 0x5b1   : > { %v2962_v18 = vadd.f32 %v3735_v23, %v2865_v22  ;;  %v2868_v8 = vadd.f32 %v3674_v38, %v6157_v36 }
 0x5b3   : > { %v2965_v53 = vadd.f32 %v3738_v9, %v2868_v8 }
 0x5b5   : > { %v3003_v55 = vpack.c.bf16 %v2965_v53, %v2962_v18 }
 0x5b7   : > { %3832 = vmatmul.mubr.bf16.gmra.mrb[132].mxu1 %v3003_v55 }
 0x5c4   : > { %v3675_v17 = vpop.f32.mrb[112].mxu1 }
 0x5c5   : > { %v3676_v42 = vpop.f32.mrb[113].mxu1 }
 0x5c6   : > { %v3739_v46 = vpop.f32.mrb[128].mxu0  ;;  %v3677_v47 = vadd.f32 %v3676_v42, %v3675_v17  ;;  %v3678_v50 = vpop.f32.mrb[114].mxu1 }
 0x5c7   : > { %v3740_v41 = vpop.f32.mrb[129].mxu0  ;;  %v3679_v48 = vpop.f32.mrb[115].mxu1 }
 0x5c8   : > { %v3741_v34 = vadd.f32 %v3740_v41, %v3739_v46  ;;  %v3742_v33 = vpop.f32.mrb[130].mxu0  ;;  %v2873_v57 = vadd.f32 %v3677_v47, %v6157_v36  ;;  %v3680_v29 = vadd.f32 %v3679_v48, %v3678_v50  ;;  %v3472_v50 = vld [vmem:[%s6471_s26] ss:$0 sm:$0xff] }
 0x5c9   : > { %v3743_v16 = vpop.f32.mrb[131].mxu0 }
 0x5ca   : > { %v3744_v63 = vadd.f32 %v3743_v16, %v3742_v33  ;;  %v2970_v62 = vadd.f32 %v3741_v34, %v2873_v57  ;;  %v2876_v31 = vadd.f32 %v3680_v29, %v6157_v36 }
 0x5cc   : > { %v2973_v10 = vadd.f32 %v3744_v63, %v2876_v31 }
 0x5cd   : > { %v3681_v28 = vpop.f32.mrb[116].mxu1 }
 0x5ce   : > { %v3682_v21 = vpop.f32.mrb[117].mxu1  ;;  %v3004_v60 = vpack.c.bf16 %v2973_v10, %v2970_v62 }
 0x5cf   : > { %v3745_v6 = vpop.f32.mrb[132].mxu0  ;;  %v3683_v11 = vadd.f32 %v3682_v21, %v3681_v28  ;;  %v3684_v32 = vpop.f32.mrb[118].mxu1 }
 0x5d0   : > { %v3746_v2 = vpop.f32.mrb[133].mxu0  ;;  %v3685_v5 = vpop.f32.mrb[119].mxu1  ;;  %3835 = vmatprep.mubr.bf16.mxu1 %v3004_v60 }
 0x5d1   : > { %v3747_v26 = vadd.f32 %v3746_v2, %v3745_v6  ;;  %v3748_v15 = vpop.f32.mrb[134].mxu0  ;;  %v2881_v43 = vadd.f32 %v3683_v11, %v6157_v36  ;;  %v3686_v35 = vadd.f32 %v3685_v5, %v3684_v32 }
 0x5d2   : > { %v3749_v51 = vpop.f32.mrb[135].mxu0 }
 0x5d3   : > { %v3750_v59 = vadd.f32 %v3749_v51, %v3748_v15  ;;  %v2978_v3 = vadd.f32 %v3747_v26, %v2881_v43  ;;  %v2884_v7 = vadd.f32 %v3686_v35, %v6157_v36 }
 0x5d5   : > { %v2981_v27 = vadd.f32 %v3750_v59, %v2884_v7 }
 0x5d6   : > { %v3687_v44 = vpop.f32.mrb[120].mxu1 }
 0x5d7   : > { %v3751_v0 = vpop.f32.mrb[136].mxu0  ;;  %v3688_v56 = vpop.f32.mrb[121].mxu1  ;;  %v3005_v4 = vpack.c.bf16 %v2981_v27, %v2978_v3 }
 0x5d8   : > { %v3689_v49 = vadd.f32 %v3688_v56, %v3687_v44  ;;  %v3752_v13 = vpop.f32.mrb[137].mxu0  ;;  %v3690_v37 = vpop.f32.mrb[122].mxu1 }
 0x5d9   : > { %v3753_v14 = vadd.f32 %v3752_v13, %v3751_v0  ;;  %v3754_v45 = vpop.f32.mrb[138].mxu0  ;;  %v3691_v54 = vpop.f32.mrb[123].mxu1  ;;  %3836 = vmatmul.mubr.bf16.gmra.mrb[136].mxu1 %v3005_v4 }
 0x5da   : > { %v2889_v25 = vadd.f32 %v3689_v49, %v6157_v36  ;;  %v3692_v40 = vadd.f32 %v3691_v54, %v3690_v37  ;;  %v3755_v52 = vpop.f32.mrb[139].mxu0 }
 0x5db   : > { %v3756_v20 = vadd.f32 %v3755_v52, %v3754_v45 }
 0x5dc   : > { %v2986_v39 = vadd.f32 %v3753_v14, %v2889_v25  ;;  %v2892_v19 = vadd.f32 %v3692_v40, %v6157_v36 }
 0x5de   : > { %v2989_v58 = vadd.f32 %v3756_v20, %v2892_v19  ;;  %v3693_v30 = vpop.f32.mrb[124].mxu1 }
 0x5df   : > { %v3757_v12 = vpop.f32.mrb[140].mxu0  ;;  %v3694_v23 = vpop.f32.mrb[125].mxu1 }
 0x5e0   : > { %v3695_v1 = vadd.f32 %v3694_v23, %v3693_v30  ;;  %v3758_v61 = vpop.f32.mrb[141].mxu0  ;;  %v3696_v22 = vpop.f32.mrb[126].mxu1  ;;  %v3006_v38 = vpack.c.bf16 %v2989_v58, %v2986_v39 }
 0x5e1   : > { %v3759_v24 = vadd.f32 %v3758_v61, %v3757_v12  ;;  %v3760_v9 = vpop.f32.mrb[142].mxu0  ;;  %v3697_v18 = vpop.f32.mrb[127].mxu1 }
 0x5e2   : > { %v2897_v8 = vadd.f32 %v3695_v1, %v6157_v36  ;;  %v3698_v53 = vadd.f32 %v3697_v18, %v3696_v22  ;;  %v3761_v55 = vpop.f32.mrb[143].mxu0  ;;  %3839 = vmatprep.mubr.bf16.mxu1 %v3006_v38 }
 0x5e3   : > { %v3762_v17 = vadd.f32 %v3761_v55, %v3760_v9 }
 0x5e4   : > { %v2994_v46 = vadd.f32 %v3759_v24, %v2897_v8  ;;  %v2900_v42 = vadd.f32 %v3698_v53, %v6157_v36 }
 0x5e6   : > { %v2997_v47 = vadd.f32 %v3762_v17, %v2900_v42 }
 0x5e8   : > { %v3007_v41 = vpack.c.bf16 %v2997_v47, %v2994_v46 }
 0x5ea   : > { %3840 = vmatmul.mubr.bf16.gmra.mrb[140].mxu1 %v3007_v41 }
 0x67a   : > { %v3829_v34 = vpop.f32.mrb[128].mxu1 }
 0x67b   : > { %v3122_v33 = vadd.f32 %v3829_v34, %v3472_v50  ;;  %v3113_v48 = vpop.f32.mrb[129].mxu1 }
 0x67c   : > { %v3114_v57 = vadd.f32 %v3472_v50, %v3113_v48  ;;  %v3830_v29 = vpop.f32.mrb[130].mxu1 }
 0x67d   : > { %3178 = vst [vmem:[%s6179_s27 + $0x10] sm:$0xff] %v3122_v33  ;;  %v3125_v36 = vadd.f32 %v3830_v29, %v3472_v50  ;;  %v3116_v16 = vpop.f32.mrb[131].mxu1 }
 0x67e   : > { %3176 = vst [vmem:[%s6179_s27] sm:$0xff] %v3114_v57  ;;  %v3117_v63 = vadd.f32 %v3472_v50, %v3116_v16 }
 0x67f   : > { %3179 = vst [vmem:[%s6179_s27 + $0x18] sm:$0xff] %v3125_v36 }
 0x680   : > { %3177 = vst [vmem:[%s6179_s27 + $0x8] sm:$0xff] %v3117_v63 }
 0x68a   : > { %v3833_v62 = vpop.f32.mrb[132].mxu1 }
 0x68b   : > { %v3138_v31 = vadd.f32 %v3833_v62, %v3472_v50  ;;  %v3129_v10 = vpop.f32.mrb[133].mxu1 }
 0x68c   : > { %v3130_v28 = vadd.f32 %v3472_v50, %v3129_v10  ;;  %v3834_v6 = vpop.f32.mrb[134].mxu1 }
 0x68d   : > { %3182 = vst [vmem:[%s6179_s27 + $0x30] sm:$0xff] %v3138_v31  ;;  %v3141_v21 = vadd.f32 %v3834_v6, %v3472_v50  ;;  %v3132_v11 = vpop.f32.mrb[135].mxu1 }
 0x68e   : > { %3180 = vst [vmem:[%s6179_s27 + $0x20] sm:$0xff] %v3130_v28  ;;  %v3133_v2 = vadd.f32 %v3472_v50, %v3132_v11 }
 0x68f   : > { %3183 = vst [vmem:[%s6179_s27 + $0x38] sm:$0xff] %v3141_v21 }
 0x690   : > { %3181 = vst [vmem:[%s6179_s27 + $0x28] sm:$0xff] %v3133_v2 }
 0x6ac   : > { %v3837_v32 = vpop.f32.mrb[136].mxu1 }
 0x6ad   : > { %v3154_v60 = vadd.f32 %v3837_v32, %v3472_v50  ;;  %v3145_v26 = vpop.f32.mrb[137].mxu1 }
 0x6ae   : > { %v3146_v15 = vadd.f32 %v3472_v50, %v3145_v26  ;;  %v3838_v5 = vpop.f32.mrb[138].mxu1 }
 0x6af   : > { %3186 = vst [vmem:[%s6179_s27 + $0x50] sm:$0xff] %v3154_v60  ;;  %v3157_v43 = vadd.f32 %v3838_v5, %v3472_v50  ;;  %v3148_v35 = vpop.f32.mrb[139].mxu1 }
 0x6b0   : > { %3184 = vst [vmem:[%s6179_s27 + $0x40] sm:$0xff] %v3146_v15  ;;  %v3149_v51 = vadd.f32 %v3472_v50, %v3148_v35 }
 0x6b1   : > { %3187 = vst [vmem:[%s6179_s27 + $0x58] sm:$0xff] %v3157_v43 }
 0x6b2   : > { %3185 = vst [vmem:[%s6179_s27 + $0x48] sm:$0xff] %v3149_v51 }
 0x6bd   : > { %v3841_v59 = vpop.f32.mrb[140].mxu1 }
 0x6be   : > { %v3170_v3 = vadd.f32 %v3841_v59, %v3472_v50  ;;  %v3161_v7 = vpop.f32.mrb[141].mxu1 }
 0x6bf   : > { %v3162_v27 = vadd.f32 %v3472_v50, %v3161_v7  ;;  %v3842_v44 = vpop.f32.mrb[142].mxu1 }
 0x6c0   : > { %3190 = vst [vmem:[%s6179_s27 + $0x70] sm:$0xff] %v3170_v3  ;;  %v3173_v0 = vadd.f32 %v3842_v44, %v3472_v50  ;;  %v3164_v56 = vpop.f32.mrb[143].mxu1 }
 0x6c1   : > { %3188 = vst [vmem:[%s6179_s27 + $0x60] sm:$0xff] %v3162_v27  ;;  %v3165_v49 = vadd.f32 %v3472_v50, %v3164_v56 }
 0x6c2   : > { %3191 = vst [vmem:[%s6179_s27 + $0x78] sm:$0xff] %v3173_v0 }
 0x6c3   : > { %3189 = vst [vmem:[%s6179_s27 + $0x68] sm:$0xff] %v3165_v49 }
 0x6c4   : > { %4502 = shalt.err (!%p4499_p13)
}
 0x6c5   : > { %s4503_s15 = scalar_lea.hbm %s6199_s14, 2048  ;;  %s4507_s27 = scalar_lea.hbm %s6472_s11, 4096 }
 0x6c6   : > { %p4504_p9 = scmp.ne.s32.totalorder %s6199_s14, %s4503_s15  ;;  %p4508_p6 = scmp.lt.u32.totalorder %s6199_s14, %s6472_s11 }
 0x6c7   : > { %p4509_p4 = scmp.lt.u32.totalorder %s4507_s27, %s4503_s15  ;;  %p4511_p3 = scmp.lt.u32.totalorder %s4503_s15, %s6199_s14 }
 0x6c8   : > { %p4505_p0 = pnand %p4504_p9, %p4804_p10 }
 0x6c9   : > { %p4510_p8 = por %p4509_p4, %p4508_p6 }
 0x6ca   : > { %p4506_p11 = pneg %p4505_p0 }
 0x6cb   : > { %p4512_p5 = por %p4511_p3, %p4510_p8 }
 0x6cd   : > { %p4513_p7 = pnand %p4512_p5, %p4506_p11 }
 0x6cf   : > { %4516 = shalt.err (!%p4513_p7)
}
 0x6d0   : > { %s4574_s29 = smov 128   ;;  %s4575_s12 = smov 8  }
 0x6d1   : > { %3861 = dma.vmem_to_hbm [thread:$0]  (%p4804_p10), %s6201_s8, 2048, %s6199_s14, %s3193_s21, %s4574_s29, %s4574_s29, %s4575_s12  }
 0x6d2 PF: > { %s6473_s13 = sld [smem:[#allocation16_spill]]  ;;  %s6474_s23 = sld [smem:[#allocation17_spill]] }
 0x6d3   : > { %p6476_p1 = scmp.ge.s32.totalorder %s4563_s20, 2 }
 0x6d8   : > { %s3222_s25 = sand.u32 1, %s6473_s13   ;;  %p6475_p12 = scmp.ne.s32.totalorder %s6474_s23, 0 }
 0x6d9   : > { %s3223_s15 = scalar_lea.sflag [#allocation4], %s3222_s25 }
 0x6da   : > { %p3881_p2 = pnand %p6476_p1, %p6475_p12 }
 0x6dc   : > { %4546 = dma.done.wait (!%p3881_p2), %s3223_s15, 2048  }
 0x6dd   : > { %4548 = vsyncadd (!%p3881_p2), %s3223_s15, 4294965248  ;;  %p26_p13 = scmp.ge.s32.totalorder %s4794_s24, 4   ;;  %s6477_s17 = smov %s4555_s18 }
 0x6de   : > { %s6478_s18 = smov %s4559_s19  ;;  %s6479_s19 = smov %s4810_s22 }
 0x6df   : > { %s6480_s20 = smov %s4794_s24  ;;  %28 = sbr.rel (!%p26_p13) target bundleno = 11 (0xb), region = 125 }
 0x6e6   :  { %3228 = vsyncpa [#allocation3], 1 }
 0x6e7   :  { %3230 = vsyncpa [#allocation3 + $0x1], 1 }
 0x6e8   :  { %3231 = vsyncpa [#allocation6], 1 }
 0x6e9   :  { %3232 = vsyncpa [#allocation9], 1 }
 0x6ea   :  { %3233 = vsyncpa [#allocation4], 1 }
 0x6eb   :  { %3235 = vsyncpa [#allocation4 + $0x1], 1 }

</bundles_post_ra>
